<compile_context>
chip_gen: v6e
topology: v6e:2x2x1
jax: 0.10.0
libtpu: 0.0.40
codegen_flags: <defaults>
</compile_context>

<pallas_src>
import functools

import jax
import jax.numpy as jnp
from jax import lax
from jax.experimental import pallas as pl
from jax.experimental.pallas import tpu as pltpu

EPS = 1e-5

# TODO(synk): flip to jnp.bfloat16 on v6e/v7x for higher MXU throughput (f32
# accumulation is kept via preferred_element_type); loosen the test tolerance.
MXU_DTYPE = jnp.float32


def _round_up(x, m):
    return (x + m - 1) // m * m


# ---------------------------------------------------------------------------
# tap bookkeeping for conv1 (3x3, stride 2, pad 1) on the phase-split input
# ---------------------------------------------------------------------------
def _conv1_tap_table(wp):
    """For each of the 9 taps: ((row_parity, col_parity) of the phase buffer,
    flat row offset into that zero-padded width-`wp` phase buffer, relative to
    the output's flat index)."""
    taps = []
    for ky in range(3):
        for kx in range(3):
            dy, dx = ky - 1, kx - 1
            rp = 0 if dy == 0 else 1          # 0 = even rows, 1 = odd rows
            cp = 0 if dx == 0 else 1
            a = -1 if dy == -1 else 0         # shift inside the phase grid
            b = -1 if dx == -1 else 0
            taps.append(((rp, cp), (a + 1) * wp + (b + 1)))
    return taps


# ---------------------------------------------------------------------------
# the fused kernel: one batch-block (bt images) per grid step
# ---------------------------------------------------------------------------
def _block2_kernel(x_ref, s1_ref, t1_ref, w1_ref, b1_ref, s2_ref, t2_ref,
                   wr_ref, br_ref, w2_ref, b2_ref, o_ref, ysc_ref, zsc_ref,
                   *, ho, wo, wp):
    bt = x_ref.shape[0]
    c = x_ref.shape[-1]
    c2 = o_ref.shape[-1]
    lp = (ho + 2) * wp                 # flat rows of a padded phase buffer
    lacc = ho * wp                     # flat rows of the stride-2 output grid
    lz = zsc_ref.shape[1]
    f32 = jnp.float32

    # ---- zero only the border strips of the padded phase scratch (cheap,
    # ---- O(perimeter); correct regardless of how the parallel grid axis is
    # ---- split across TensorCores, unlike a program_id==0 one-time zero).
    ysc_ref[:, :, 0:1, :, :] = jnp.zeros((4, bt, 1, wp, c), f32)
    ysc_ref[:, :, ho + 1:ho + 2, :, :] = jnp.zeros((4, bt, 1, wp, c), f32)
    ysc_ref[:, :, 1:ho + 1, 0:1, :] = jnp.zeros((4, bt, ho, 1, c), f32)
    ysc_ref[:, :, 1:ho + 1, wo + 1:wp, :] = jnp.zeros(
        (4, bt, ho, wp - wo - 1, c), f32)

    # ---- bn1 + relu fused, written into the interior of the zero-padded
    # ---- per-phase scratch (borders provide exact conv zero padding).
    s1 = s1_ref[...]                   # (1, c) -> broadcasts over (bt,ho,wo,c)
    t1 = t1_ref[...]
    for ph in range(4):
        ysc_ref[ph, :, 1:ho + 1, 1:wo + 1, :] = jnp.maximum(
            x_ref[:, ph] * s1 + t1, 0.0)

    # flat row-major views of the four post-activation phase buffers
    phases = {(rp, cp): ysc_ref[2 * rp + cp].reshape(bt, lp, c)
              for rp in range(2) for cp in range(2)}

    # ---- conv1 (3x3 s2 p1): K-pack the 9 taps -> ONE MXU matmul, K = 9*c ----
    taps1 = [phases[pc][:, off:off + lacc, :]
             for pc, off in _conv1_tap_table(wp)]
    im2col1 = jnp.concatenate(taps1, axis=-1)                  # (bt,lacc,9c)
    acc1 = jnp.dot(im2col1.reshape(bt * lacc, 9 * c).astype(MXU_DTYPE),
                   w1_ref[...].astype(MXU_DTYPE),
                   preferred_element_type=jnp.float32)         # (bt*lacc,c2)

    # ---- shortcut conv_r (1x1 s2) = centre tap of the even/even phase -------
    res = jnp.dot(
        phases[(0, 0)][:, wp + 1:wp + 1 + lacc, :]
        .reshape(bt * lacc, c).astype(MXU_DTYPE),
        wr_ref[...].astype(MXU_DTYPE),
        preferred_element_type=jnp.float32) + br_ref[...]

    # ---- bias + bn2 + relu; zero the flat-layout wrap columns so they double
    # ---- as conv2's left/right zero padding inside the z scratch ------------
    z = jnp.maximum((acc1 + b1_ref[...]) * s2_ref[...] + t2_ref[...], 0.0)
    z = z.reshape(bt, lacc, c2)
    col = lax.broadcasted_iota(jnp.int32, (lacc, 1), 0) % wp
    z = jnp.where(col < wo, z, 0.0)

    # z scratch: only the top / bottom strips need zeroing (wrap columns of z
    # already provide the horizontal padding); interior overwritten each step.
    zsc_ref[:, 0:wp + 1, :] = jnp.zeros((bt, wp + 1, c2), f32)
    zsc_ref[:, (ho + 1) * wp + 1:lz, :] = jnp.zeros(
        (bt, lz - (ho + 1) * wp - 1, c2), f32)
    zsc_ref[:, wp + 1:wp + 1 + lacc, :] = z

    # ---- conv2 (3x3 s1 p1): again ONE K-packed matmul, K = 9*c2 -------------
    taps2 = [zsc_ref[:, ky * wp + kx:ky * wp + kx + lacc, :]
             for ky in range(3) for kx in range(3)]
    im2col2 = jnp.concatenate(taps2, axis=-1)                  # (bt,lacc,9c2)
    acc2 = jnp.dot(im2col2.reshape(bt * lacc, 9 * c2).astype(MXU_DTYPE),
                   w2_ref[...].astype(MXU_DTYPE),
                   preferred_element_type=jnp.float32)

    o_ref[...] = (acc2 + b2_ref[...] + res).reshape(bt, lacc, c2)


# ---------------------------------------------------------------------------
# helpers for the wrapper
# ---------------------------------------------------------------------------
def _pick_block_batch(n, per_image_bytes, target_bytes=1 << 20):
    """Largest batch-block that (a) keeps the per-step input slab under
    `target_bytes`, (b) divides n, and (c) leaves >= 2 grid steps when n >= 2
    so dual-TensorCore chips can split the 'parallel' grid axis."""
    cap = max(1, target_bytes // max(per_image_bytes, 1))
    best = 1
    for bt in range(1, n + 1):
        if n % bt == 0 and bt <= cap and (n // bt >= 2 or n == 1):
            best = bt
    return best


def _padded_bytes(shape, elt=4):
    s = list(shape)
    s[-1] = _round_up(s[-1], 128)
    if len(s) > 1:
        s[-2] = _round_up(s[-2], 8)
    sz = elt
    for d in s:
        sz *= d
    return sz


# ---------------------------------------------------------------------------
# forward pass
# ---------------------------------------------------------------------------
@jax.jit
def block2_forward(x_nchw, p):
    n, c, h, w = x_nchw.shape
    assert h % 2 == 0 and w % 2 == 0, "Block2 stride-2 path expects even H, W"
    c2 = 2 * c
    ho, wo = h // 2, w // 2
    wp = _round_up(wo + 2, 8)         # padded flat width, sublane aligned
    lacc = ho * wp                    # flat rows of the stride-2 output layout
    lz = (ho + 2) * wp + 8            # conv2 scratch rows (slack, 8-aligned)

    # single space-to-depth (phase-split) copy of x: (N, 4, Ho, Wo, C).
    # No padded HBM copies -- padding is rebuilt on-chip in VMEM scratch.
    x = jnp.transpose(x_nchw, (0, 2, 3, 1)).astype(jnp.float32)        # NHWC
    xs = x.reshape(n, ho, 2, wo, 2, c).transpose(0, 2, 4, 1, 3, 5)
    xs = xs.reshape(n, 4, ho, wo, c)

    # fold eval-mode BatchNorm into per-channel (scale, shift)
    inv1 = 1.0 / jnp.sqrt(p["v1"] + EPS)
    inv2 = 1.0 / jnp.sqrt(p["v2"] + EPS)
    s1 = (p["g1"] * inv1).reshape(1, c)
    t1 = (p["bt1"] - p["m1"] * p["g1"] * inv1).reshape(1, c)
    s2 = (p["g2"] * inv2).reshape(1, c2)
    t2 = (p["bt2"] - p["m2"] * p["g2"] * inv2).reshape(1, c2)

    # conv weights: HWIO -> K-packed (9*Cin, Cout), tap-major / channel-minor
    # (matches the in-kernel lane-concatenation order of the 9 taps).
    w1 = p["w1"].reshape(9 * c, c2)
    w2 = p["w2"].reshape(9 * c2, c2)
    wr = p["wr"].reshape(c, c2)
    b1 = p["cb1"].reshape(1, c2)
    b2 = p["cb2"].reshape(1, c2)
    br = p["cbr"].reshape(1, c2)

    # images per grid step (amortizes ~0.35us/step overhead, keeps grid >= 2)
    per_img = 4 * 4 * ho * wo * c
    bt = _pick_block_batch(n, per_img)
    grid = (n // bt,)

    kernel = functools.partial(_block2_kernel, ho=ho, wo=wo, wp=wp)

    def rep_spec(a):                  # whole array, VMEM-resident across grid
        return pl.BlockSpec(a.shape, lambda i, _nd=a.ndim: (0,) * _nd)

    # explicit VMEM budget (lane/sublane padded, double-buffered I/O blocks)
    vmem_need = (2 * _padded_bytes((bt, 4, ho, wo, c))
                 + 2 * _padded_bytes((bt, lacc, c2))
                 + _padded_bytes((4, bt, ho + 2, wp, c))
                 + _padded_bytes((bt, lz, c2))
                 + sum(_padded_bytes(a.shape) for a in
                       (s1, t1, w1, b1, s2, t2, wr, br, w2, b2)))
    vmem_limit = int(min(max(2 * vmem_need, 32 << 20), 48 << 20))

    flops = 2 * n * ho * wp * (9 * c * c2 + c * c2 + 9 * c2 * c2)
    bytes_accessed = 4 * (n * 4 * ho * wo * c + n * lacc * c2
                          + 9 * c * c2 + 9 * c2 * c2 + c * c2)

    out_flat = pl.pallas_call(
        kernel,
        grid=grid,
        in_specs=[pl.BlockSpec((bt, 4, ho, wo, c),
                               lambda i: (i, 0, 0, 0, 0)),
                  rep_spec(s1), rep_spec(t1), rep_spec(w1), rep_spec(b1),
                  rep_spec(s2), rep_spec(t2), rep_spec(wr), rep_spec(br),
                  rep_spec(w2), rep_spec(b2)],
        out_specs=pl.BlockSpec((bt, lacc, c2), lambda i: (i, 0, 0)),
        out_shape=jax.ShapeDtypeStruct((n, lacc, c2), jnp.float32),
        scratch_shapes=[pltpu.VMEM((4, bt, ho + 2, wp, c), jnp.float32),
                        pltpu.VMEM((bt, lz, c2), jnp.float32)],
        compiler_params=pltpu.CompilerParams(
            dimension_semantics=("parallel",),
            vmem_limit_bytes=vmem_limit),
        cost_estimate=pl.CostEstimate(flops=flops, transcendentals=0,
                                      bytes_accessed=bytes_accessed),
    )(xs, s1, t1, w1, b1, s2, t2, wr, br, w2, b2)

    # drop the wrap/pad columns of the flat layout, back to NCHW
    out = out_flat.reshape(n, ho, wp, c2)[:, :, :wo, :]
    return jnp.transpose(out, (0, 3, 1, 2))


# ---------------------------------------------------------------------------
# pure-JAX reference (lax conv) for correctness check
# ---------------------------------------------------------------------------
def block2_reference(x_nchw, p):
    x = jnp.transpose(x_nchw, (0, 2, 3, 1)).astype(jnp.float32)
    dn = ("NHWC", "HWIO", "NHWC")

    y = (x - p["m1"]) / jnp.sqrt(p["v1"] + EPS) * p["g1"] + p["bt1"]
    y = jnp.maximum(y, 0.0)

    res = lax.conv_general_dilated(y, p["wr"], (2, 2), [(0, 0), (0, 0)],
                                   dimension_numbers=dn) + p["cbr"]
    hmain = lax.conv_general_dilated(y, p["w1"], (2, 2), [(1, 1), (1, 1)],
                                     dimension_numbers=dn) + p["cb1"]
    hmain = (hmain - p["m2"]) / jnp.sqrt(p["v2"] + EPS) * p["g2"] + p["bt2"]
    hmain = jnp.maximum(hmain, 0.0)
    out = lax.conv_general_dilated(hmain, p["w2"], (1, 1), [(1, 1), (1, 1)],
                                   dimension_numbers=dn) + p["cb2"]
    out = res + out
    return jnp.transpose(out, (0, 3, 1, 2))


# ---------------------------------------------------------------------------
# deterministic parameter init (shapes follow the PyTorch __init__)
# ---------------------------------------------------------------------------
def init_params(key, f_size):
    c, c2 = f_size, 2 * f_size
    ks = jax.random.split(key, 14)

    def uni(k, shape, fan_in):
        b = fan_in ** -0.5
        return jax.random.uniform(k, shape, jnp.float32, -b, b)

    return {
        # conv weights stored as HWIO
        "w1": uni(ks[0], (3, 3, c, c2), 9 * c),
        "cb1": uni(ks[1], (c2,), 9 * c),
        "w2": uni(ks[2], (3, 3, c2, c2), 9 * c2),
        "cb2": uni(ks[3], (c2,), 9 * c2),
        "wr": uni(ks[4], (1, 1, c, c2), c),
        "cbr": uni(ks[5], (c2,), c),
        # bn1 (eval-mode "running" stats, deterministic, non-trivial)
        "g1": 1.0 + 0.1 * jax.random.normal(ks[6], (c,), jnp.float32),
        "bt1": 0.1 * jax.random.normal(ks[7], (c,), jnp.float32),
        "m1": 0.1 * jax.random.normal(ks[8], (c,), jnp.float32),
        "v1": 1.0 + 0.5 * jax.random.uniform(ks[9], (c,), jnp.float32),
        # bn2
        "g2": 1.0 + 0.1 * jax.random.normal(ks[10], (c2,), jnp.float32),
        "bt2": 0.1 * jax.random.normal(ks[11], (c2,), jnp.float32),
        "m2": 0.1 * jax.random.normal(ks[12], (c2,), jnp.float32),
        "v2": 1.0 + 0.5 * jax.random.uniform(ks[13], (c2,), jnp.float32),
    }


if __name__ == "__main__":
    key = jax.random.PRNGKey(0)
    k_x, k_p = jax.random.split(key)

    f_size = 4
    x = jax.random.normal(k_x, (2, f_size, 16, 16), jnp.float32)   # NCHW
    params = init_params(k_p, f_size)

    out = block2_forward(x, params)
    out = jax.block_until_ready(out)

    ref = jax.block_until_ready(block2_reference(x, params))

    assert out.shape == (2, 2 * f_size, 8, 8), out.shape
    assert jnp.allclose(out, ref, atol=1e-4, rtol=1e-4), (
        float(jnp.max(jnp.abs(out - ref))))
    print("KERNEL_OK")
</pallas_src>

<mosaic_0001>
module attributes {stable_mosaic.version = 11 : i64} {
  func.func @_block2_kernel(%arg0: i32, %arg1: memref<1x4x8x8x4xf32, #tpu.memory_space<vmem>>, %arg2: memref<1x4xf32, #tpu.memory_space<vmem>>, %arg3: memref<1x4xf32, #tpu.memory_space<vmem>>, %arg4: memref<36x8xf32, #tpu.memory_space<vmem>>, %arg5: memref<1x8xf32, #tpu.memory_space<vmem>>, %arg6: memref<1x8xf32, #tpu.memory_space<vmem>>, %arg7: memref<1x8xf32, #tpu.memory_space<vmem>>, %arg8: memref<4x8xf32, #tpu.memory_space<vmem>>, %arg9: memref<1x8xf32, #tpu.memory_space<vmem>>, %arg10: memref<72x8xf32, #tpu.memory_space<vmem>>, %arg11: memref<1x8xf32, #tpu.memory_space<vmem>>, %arg12: memref<1x128x8xf32, #tpu.memory_space<vmem>>, %arg13: memref<4x1x10x16x4xf32, #tpu.memory_space<vmem>>, %arg14: memref<1x168x8xf32, #tpu.memory_space<vmem>>) attributes {dimension_semantics = [#tpu.dimension_semantics<parallel>], iteration_bounds = array<i64: 2>, scalar_prefetch = 0 : i64, scratch_operands = 2 : i64, tpu.core_type = #tpu.core_type<tc>, window_params = [{transform_indices = @transform_0, window_bounds = array<i64: 1, 4, 8, 8, 4>}, {pipeline_mode = #tpu.pipeline_mode<synchronous>, transform_indices = @transform_1, window_bounds = array<i64: 1, 4>}, {pipeline_mode = #tpu.pipeline_mode<synchronous>, transform_indices = @transform_2, window_bounds = array<i64: 1, 4>}, {pipeline_mode = #tpu.pipeline_mode<synchronous>, transform_indices = @transform_3, window_bounds = array<i64: 36, 8>}, {pipeline_mode = #tpu.pipeline_mode<synchronous>, transform_indices = @transform_4, window_bounds = array<i64: 1, 8>}, {pipeline_mode = #tpu.pipeline_mode<synchronous>, transform_indices = @transform_5, window_bounds = array<i64: 1, 8>}, {pipeline_mode = #tpu.pipeline_mode<synchronous>, transform_indices = @transform_6, window_bounds = array<i64: 1, 8>}, {pipeline_mode = #tpu.pipeline_mode<synchronous>, transform_indices = @transform_7, window_bounds = array<i64: 4, 8>}, {pipeline_mode = #tpu.pipeline_mode<synchronous>, transform_indices = @transform_8, window_bounds = array<i64: 1, 8>}, {pipeline_mode = #tpu.pipeline_mode<synchronous>, transform_indices = @transform_9, window_bounds = array<i64: 72, 8>}, {pipeline_mode = #tpu.pipeline_mode<synchronous>, transform_indices = @transform_10, window_bounds = array<i64: 1, 8>}, {transform_indices = @transform_11, window_bounds = array<i64: 1, 128, 8>}]} {
    %cst = arith.constant 0.000000e+00 : f32
    %0 = vector.broadcast %cst : f32 to vector<4x1x1x16x4xf32>
    %c0 = arith.constant 0 : index
    %c0_0 = arith.constant 0 : index
    %c0_1 = arith.constant 0 : index
    %c0_2 = arith.constant 0 : index
    %c0_3 = arith.constant 0 : index
    %1 = vector.load %arg13[%c0, %c0_0, %c0_1, %c0_2, %c0_3] : memref<4x1x10x16x4xf32, #tpu.memory_space<vmem>>, vector<4x1x1x16x4xf32>
    tpu.vector_store %arg13[%c0, %c0_0, %c0_1, %c0_2, %c0_3], %0 {strides = array<i32>} : memref<4x1x10x16x4xf32, #tpu.memory_space<vmem>>, vector<4x1x1x16x4xf32>,
    %cst_4 = arith.constant 0.000000e+00 : f32
    %2 = vector.broadcast %cst_4 : f32 to vector<4x1x1x16x4xf32>
    %c0_5 = arith.constant 0 : index
    %c0_6 = arith.constant 0 : index
    %c9 = arith.constant 9 : index
    %c0_7 = arith.constant 0 : index
    %c0_8 = arith.constant 0 : index
    %3 = vector.load %arg13[%c0_5, %c0_6, %c9, %c0_7, %c0_8] : memref<4x1x10x16x4xf32, #tpu.memory_space<vmem>>, vector<4x1x1x16x4xf32>
    tpu.vector_store %arg13[%c0_5, %c0_6, %c9, %c0_7, %c0_8], %2 {strides = array<i32>} : memref<4x1x10x16x4xf32, #tpu.memory_space<vmem>>, vector<4x1x1x16x4xf32>,
    %cst_9 = arith.constant 0.000000e+00 : f32
    %4 = vector.broadcast %cst_9 : f32 to vector<4x1x8x1x4xf32>
    %c0_10 = arith.constant 0 : index
    %c0_11 = arith.constant 0 : index
    %c1 = arith.constant 1 : index
    %c0_12 = arith.constant 0 : index
    %c0_13 = arith.constant 0 : index
    %5 = vector.load %arg13[%c0_10, %c0_11, %c1, %c0_12, %c0_13] : memref<4x1x10x16x4xf32, #tpu.memory_space<vmem>>, vector<4x1x8x1x4xf32>
    tpu.vector_store %arg13[%c0_10, %c0_11, %c1, %c0_12, %c0_13], %4 {strides = array<i32>} : memref<4x1x10x16x4xf32, #tpu.memory_space<vmem>>, vector<4x1x8x1x4xf32>,
    %cst_14 = arith.constant 0.000000e+00 : f32
    %6 = vector.broadcast %cst_14 : f32 to vector<4x1x8x7x4xf32>
    %c0_15 = arith.constant 0 : index
    %c0_16 = arith.constant 0 : index
    %c1_17 = arith.constant 1 : index
    %c9_18 = arith.constant 9 : index
    %c0_19 = arith.constant 0 : index
    %7 = vector.load %arg13[%c0_15, %c0_16, %c1_17, %c9_18, %c0_19] : memref<4x1x10x16x4xf32, #tpu.memory_space<vmem>>, vector<4x1x8x7x4xf32>
    tpu.vector_store %arg13[%c0_15, %c0_16, %c1_17, %c9_18, %c0_19], %6 {strides = array<i32>} : memref<4x1x10x16x4xf32, #tpu.memory_space<vmem>>, vector<4x1x8x7x4xf32>,
    %c0_20 = arith.constant 0 : index
    %c0_21 = arith.constant 0 : index
    %8 = vector.load %arg2[%c0_20, %c0_21] : memref<1x4xf32, #tpu.memory_space<vmem>>, vector<1x4xf32>
    %c0_22 = arith.constant 0 : index
    %c0_23 = arith.constant 0 : index
    %9 = vector.load %arg3[%c0_22, %c0_23] : memref<1x4xf32, #tpu.memory_space<vmem>>, vector<1x4xf32>
    %c0_24 = arith.constant 0 : index
    %c0_25 = arith.constant 0 : index
    %c0_26 = arith.constant 0 : index
    %c0_27 = arith.constant 0 : index
    %c0_28 = arith.constant 0 : index
    %10 = vector.load %arg1[%c0_24, %c0_25, %c0_26, %c0_27, %c0_28] : memref<1x4x8x8x4xf32, #tpu.memory_space<vmem>>, vector<1x1x8x8x4xf32>
    %11 = vector.shape_cast %10 : vector<1x1x8x8x4xf32> to vector<1x8x8x4xf32>
    %12 = vector.shape_cast %8 : vector<1x4xf32> to vector<1x1x1x4xf32>
    %13 = vector.broadcast %12 : vector<1x1x1x4xf32> to vector<1x8x8x4xf32>
    %14 = arith.mulf %11, %13 : vector<1x8x8x4xf32>
    %15 = vector.shape_cast %9 : vector<1x4xf32> to vector<1x1x1x4xf32>
    %16 = vector.broadcast %15 : vector<1x1x1x4xf32> to vector<1x8x8x4xf32>
    %17 = arith.addf %14, %16 : vector<1x8x8x4xf32>
    %cst_29 = arith.constant 0.000000e+00 : f32
    %18 = vector.broadcast %cst_29 : f32 to vector<1x8x8x4xf32>
    %19 = arith.maximumf %17, %18 : vector<1x8x8x4xf32>
    %c0_30 = arith.constant 0 : index
    %c0_31 = arith.constant 0 : index
    %c1_32 = arith.constant 1 : index
    %c1_33 = arith.constant 1 : index
    %c0_34 = arith.constant 0 : index
    %20 = vector.load %arg13[%c0_30, %c0_31, %c1_32, %c1_33, %c0_34] : memref<4x1x10x16x4xf32, #tpu.memory_space<vmem>>, vector<1x1x8x8x4xf32>
    %21 = vector.shape_cast %20 : vector<1x1x8x8x4xf32> to vector<1x8x8x4xf32>
    %22 = vector.shape_cast %19 : vector<1x8x8x4xf32> to vector<1x1x8x8x4xf32>
    tpu.vector_store %arg13[%c0_30, %c0_31, %c1_32, %c1_33, %c0_34], %22 {strides = array<i32>} : memref<4x1x10x16x4xf32, #tpu.memory_space<vmem>>, vector<1x1x8x8x4xf32>,
    %c0_35 = arith.constant 0 : index
    %c1_36 = arith.constant 1 : index
    %c0_37 = arith.constant 0 : index
    %c0_38 = arith.constant 0 : index
    %c0_39 = arith.constant 0 : index
    %23 = vector.load %arg1[%c0_35, %c1_36, %c0_37, %c0_38, %c0_39] : memref<1x4x8x8x4xf32, #tpu.memory_space<vmem>>, vector<1x1x8x8x4xf32>
    %24 = vector.shape_cast %23 : vector<1x1x8x8x4xf32> to vector<1x8x8x4xf32>
    %25 = vector.shape_cast %8 : vector<1x4xf32> to vector<1x1x1x4xf32>
    %26 = vector.broadcast %25 : vector<1x1x1x4xf32> to vector<1x8x8x4xf32>
    %27 = arith.mulf %24, %26 : vector<1x8x8x4xf32>
    %28 = vector.shape_cast %9 : vector<1x4xf32> to vector<1x1x1x4xf32>
    %29 = vector.broadcast %28 : vector<1x1x1x4xf32> to vector<1x8x8x4xf32>
    %30 = arith.addf %27, %29 : vector<1x8x8x4xf32>
    %cst_40 = arith.constant 0.000000e+00 : f32
    %31 = vector.broadcast %cst_40 : f32 to vector<1x8x8x4xf32>
    %32 = arith.maximumf %30, %31 : vector<1x8x8x4xf32>
    %c1_41 = arith.constant 1 : index
    %c0_42 = arith.constant 0 : index
    %c1_43 = arith.constant 1 : index
    %c1_44 = arith.constant 1 : index
    %c0_45 = arith.constant 0 : index
    %33 = vector.load %arg13[%c1_41, %c0_42, %c1_43, %c1_44, %c0_45] : memref<4x1x10x16x4xf32, #tpu.memory_space<vmem>>, vector<1x1x8x8x4xf32>
    %34 = vector.shape_cast %33 : vector<1x1x8x8x4xf32> to vector<1x8x8x4xf32>
    %35 = vector.shape_cast %32 : vector<1x8x8x4xf32> to vector<1x1x8x8x4xf32>
    tpu.vector_store %arg13[%c1_41, %c0_42, %c1_43, %c1_44, %c0_45], %35 {strides = array<i32>} : memref<4x1x10x16x4xf32, #tpu.memory_space<vmem>>, vector<1x1x8x8x4xf32>,
    %c0_46 = arith.constant 0 : index
    %c2 = arith.constant 2 : index
    %c0_47 = arith.constant 0 : index
    %c0_48 = arith.constant 0 : index
    %c0_49 = arith.constant 0 : index
    %36 = vector.load %arg1[%c0_46, %c2, %c0_47, %c0_48, %c0_49] : memref<1x4x8x8x4xf32, #tpu.memory_space<vmem>>, vector<1x1x8x8x4xf32>
    %37 = vector.shape_cast %36 : vector<1x1x8x8x4xf32> to vector<1x8x8x4xf32>
    %38 = vector.shape_cast %8 : vector<1x4xf32> to vector<1x1x1x4xf32>
    %39 = vector.broadcast %38 : vector<1x1x1x4xf32> to vector<1x8x8x4xf32>
    %40 = arith.mulf %37, %39 : vector<1x8x8x4xf32>
    %41 = vector.shape_cast %9 : vector<1x4xf32> to vector<1x1x1x4xf32>
    %42 = vector.broadcast %41 : vector<1x1x1x4xf32> to vector<1x8x8x4xf32>
    %43 = arith.addf %40, %42 : vector<1x8x8x4xf32>
    %cst_50 = arith.constant 0.000000e+00 : f32
    %44 = vector.broadcast %cst_50 : f32 to vector<1x8x8x4xf32>
    %45 = arith.maximumf %43, %44 : vector<1x8x8x4xf32>
    %c2_51 = arith.constant 2 : index
    %c0_52 = arith.constant 0 : index
    %c1_53 = arith.constant 1 : index
    %c1_54 = arith.constant 1 : index
    %c0_55 = arith.constant 0 : index
    %46 = vector.load %arg13[%c2_51, %c0_52, %c1_53, %c1_54, %c0_55] : memref<4x1x10x16x4xf32, #tpu.memory_space<vmem>>, vector<1x1x8x8x4xf32>
    %47 = vector.shape_cast %46 : vector<1x1x8x8x4xf32> to vector<1x8x8x4xf32>
    %48 = vector.shape_cast %45 : vector<1x8x8x4xf32> to vector<1x1x8x8x4xf32>
    tpu.vector_store %arg13[%c2_51, %c0_52, %c1_53, %c1_54, %c0_55], %48 {strides = array<i32>} : memref<4x1x10x16x4xf32, #tpu.memory_space<vmem>>, vector<1x1x8x8x4xf32>,
    %c0_56 = arith.constant 0 : index
    %c3 = arith.constant 3 : index
    %c0_57 = arith.constant 0 : index
    %c0_58 = arith.constant 0 : index
    %c0_59 = arith.constant 0 : index
    %49 = vector.load %arg1[%c0_56, %c3, %c0_57, %c0_58, %c0_59] : memref<1x4x8x8x4xf32, #tpu.memory_space<vmem>>, vector<1x1x8x8x4xf32>
    %50 = vector.shape_cast %49 : vector<1x1x8x8x4xf32> to vector<1x8x8x4xf32>
    %51 = vector.shape_cast %8 : vector<1x4xf32> to vector<1x1x1x4xf32>
    %52 = vector.broadcast %51 : vector<1x1x1x4xf32> to vector<1x8x8x4xf32>
    %53 = arith.mulf %50, %52 : vector<1x8x8x4xf32>
    %54 = vector.shape_cast %9 : vector<1x4xf32> to vector<1x1x1x4xf32>
    %55 = vector.broadcast %54 : vector<1x1x1x4xf32> to vector<1x8x8x4xf32>
    %56 = arith.addf %53, %55 : vector<1x8x8x4xf32>
    %cst_60 = arith.constant 0.000000e+00 : f32
    %57 = vector.broadcast %cst_60 : f32 to vector<1x8x8x4xf32>
    %58 = arith.maximumf %56, %57 : vector<1x8x8x4xf32>
    %c3_61 = arith.constant 3 : index
    %c0_62 = arith.constant 0 : index
    %c1_63 = arith.constant 1 : index
    %c1_64 = arith.constant 1 : index
    %c0_65 = arith.constant 0 : index
    %59 = vector.load %arg13[%c3_61, %c0_62, %c1_63, %c1_64, %c0_65] : memref<4x1x10x16x4xf32, #tpu.memory_space<vmem>>, vector<1x1x8x8x4xf32>
    %60 = vector.shape_cast %59 : vector<1x1x8x8x4xf32> to vector<1x8x8x4xf32>
    %61 = vector.shape_cast %58 : vector<1x8x8x4xf32> to vector<1x1x8x8x4xf32>
    tpu.vector_store %arg13[%c3_61, %c0_62, %c1_63, %c1_64, %c0_65], %61 {strides = array<i32>} : memref<4x1x10x16x4xf32, #tpu.memory_space<vmem>>, vector<1x1x8x8x4xf32>,
    %c0_66 = arith.constant 0 : index
    %c0_67 = arith.constant 0 : index
    %c0_68 = arith.constant 0 : index
    %c0_69 = arith.constant 0 : index
    %c0_70 = arith.constant 0 : index
    %62 = vector.load %arg13[%c0_66, %c0_67, %c0_68, %c0_69, %c0_70] : memref<4x1x10x16x4xf32, #tpu.memory_space<vmem>>, vector<1x1x10x16x4xf32>
    %63 = vector.shape_cast %62 : vector<1x1x10x16x4xf32> to vector<1x10x16x4xf32>
    %64 = vector.shape_cast %63 : vector<1x10x16x4xf32> to vector<1x160x4xf32>
    %c1_71 = arith.constant 1 : index
    %c0_72 = arith.constant 0 : index
    %c0_73 = arith.constant 0 : index
    %c0_74 = arith.constant 0 : index
    %c0_75 = arith.constant 0 : index
    %65 = vector.load %arg13[%c1_71, %c0_72, %c0_73, %c0_74, %c0_75] : memref<4x1x10x16x4xf32, #tpu.memory_space<vmem>>, vector<1x1x10x16x4xf32>
    %66 = vector.shape_cast %65 : vector<1x1x10x16x4xf32> to vector<1x10x16x4xf32>
    %67 = vector.shape_cast %66 : vector<1x10x16x4xf32> to vector<1x160x4xf32>
    %c2_76 = arith.constant 2 : index
    %c0_77 = arith.constant 0 : index
    %c0_78 = arith.constant 0 : index
    %c0_79 = arith.constant 0 : index
    %c0_80 = arith.constant 0 : index
    %68 = vector.load %arg13[%c2_76, %c0_77, %c0_78, %c0_79, %c0_80] : memref<4x1x10x16x4xf32, #tpu.memory_space<vmem>>, vector<1x1x10x16x4xf32>
    %69 = vector.shape_cast %68 : vector<1x1x10x16x4xf32> to vector<1x10x16x4xf32>
    %70 = vector.shape_cast %69 : vector<1x10x16x4xf32> to vector<1x160x4xf32>
    %c3_81 = arith.constant 3 : index
    %c0_82 = arith.constant 0 : index
    %c0_83 = arith.constant 0 : index
    %c0_84 = arith.constant 0 : index
    %c0_85 = arith.constant 0 : index
    %71 = vector.load %arg13[%c3_81, %c0_82, %c0_83, %c0_84, %c0_85] : memref<4x1x10x16x4xf32, #tpu.memory_space<vmem>>, vector<1x1x10x16x4xf32>
    %72 = vector.shape_cast %71 : vector<1x1x10x16x4xf32> to vector<1x10x16x4xf32>
    %73 = vector.shape_cast %72 : vector<1x10x16x4xf32> to vector<1x160x4xf32>
    %74 = vector.extract_strided_slice %73 {offsets = [0, 0, 0], sizes = [1, 128, 4], strides = [1, 1, 1]} : vector<1x160x4xf32> to vector<1x128x4xf32>
    %75 = vector.extract_strided_slice %70 {offsets = [0, 1, 0], sizes = [1, 128, 4], strides = [1, 1, 1]} : vector<1x160x4xf32> to vector<1x128x4xf32>
    %76 = vector.extract_strided_slice %73 {offsets = [0, 1, 0], sizes = [1, 128, 4], strides = [1, 1, 1]} : vector<1x160x4xf32> to vector<1x128x4xf32>
    %77 = vector.extract_strided_slice %67 {offsets = [0, 16, 0], sizes = [1, 128, 4], strides = [1, 1, 1]} : vector<1x160x4xf32> to vector<1x128x4xf32>
    %78 = vector.extract_strided_slice %64 {offsets = [0, 17, 0], sizes = [1, 128, 4], strides = [1, 1, 1]} : vector<1x160x4xf32> to vector<1x128x4xf32>
    %79 = vector.extract_strided_slice %67 {offsets = [0, 17, 0], sizes = [1, 128, 4], strides = [1, 1, 1]} : vector<1x160x4xf32> to vector<1x128x4xf32>
    %80 = vector.extract_strided_slice %73 {offsets = [0, 16, 0], sizes = [1, 128, 4], strides = [1, 1, 1]} : vector<1x160x4xf32> to vector<1x128x4xf32>
    %81 = vector.extract_strided_slice %70 {offsets = [0, 17, 0], sizes = [1, 128, 4], strides = [1, 1, 1]} : vector<1x160x4xf32> to vector<1x128x4xf32>
    %82 = vector.extract_strided_slice %73 {offsets = [0, 17, 0], sizes = [1, 128, 4], strides = [1, 1, 1]} : vector<1x160x4xf32> to vector<1x128x4xf32>
    %83 = tpu.concatenate %74, %75, %76, %77, %78, %79, %80, %81, %82 in 2 : vector<1x128x4xf32>, vector<1x128x4xf32>, vector<1x128x4xf32>, vector<1x128x4xf32>, vector<1x128x4xf32>, vector<1x128x4xf32>, vector<1x128x4xf32>, vector<1x128x4xf32>, vector<1x128x4xf32> -> vector<1x128x36xf32>
    %84 = vector.shape_cast %83 : vector<1x128x36xf32> to vector<128x36xf32>
    %c0_86 = arith.constant 0 : index
    %c0_87 = arith.constant 0 : index
    %85 = vector.load %arg4[%c0_86, %c0_87] : memref<36x8xf32, #tpu.memory_space<vmem>>, vector<36x8xf32>
    %cst_88 = arith.constant dense<0.000000e+00> : vector<128x8xf32>
    %86 = tpu.matmul %84, %85, %cst_88 {dimension_numbers = #tpu.dot_dimension_numbers<[1], [0], [0], [1], [0, 0, 1, 1], [], []>} : vector<128x36xf32>, vector<36x8xf32>, vector<128x8xf32> -> vector<128x8xf32>
    %87 = vector.extract_strided_slice %64 {offsets = [0, 17, 0], sizes = [1, 128, 4], strides = [1, 1, 1]} : vector<1x160x4xf32> to vector<1x128x4xf32>
    %88 = vector.shape_cast %87 : vector<1x128x4xf32> to vector<128x4xf32>
    %c0_89 = arith.constant 0 : index
    %c0_90 = arith.constant 0 : index
    %89 = vector.load %arg8[%c0_89, %c0_90] : memref<4x8xf32, #tpu.memory_space<vmem>>, vector<4x8xf32>
    %cst_91 = arith.constant dense<0.000000e+00> : vector<128x8xf32>
    %90 = tpu.matmul %88, %89, %cst_91 {dimension_numbers = #tpu.dot_dimension_numbers<[1], [0], [0], [1], [0, 0, 1, 1], [], []>} : vector<128x4xf32>, vector<4x8xf32>, vector<128x8xf32> -> vector<128x8xf32>
    %c0_92 = arith.constant 0 : index
    %c0_93 = arith.constant 0 : index
    %91 = vector.load %arg9[%c0_92, %c0_93] : memref<1x8xf32, #tpu.memory_space<vmem>>, vector<1x8xf32>
    %92 = vector.broadcast %91 : vector<1x8xf32> to vector<128x8xf32>
    %93 = arith.addf %90, %92 : vector<128x8xf32>
    %c0_94 = arith.constant 0 : index
    %c0_95 = arith.constant 0 : index
    %94 = vector.load %arg5[%c0_94, %c0_95] : memref<1x8xf32, #tpu.memory_space<vmem>>, vector<1x8xf32>
    %95 = vector.broadcast %94 : vector<1x8xf32> to vector<128x8xf32>
    %96 = arith.addf %86, %95 : vector<128x8xf32>
    %c0_96 = arith.constant 0 : index
    %c0_97 = arith.constant 0 : index
    %97 = vector.load %arg6[%c0_96, %c0_97] : memref<1x8xf32, #tpu.memory_space<vmem>>, vector<1x8xf32>
    %98 = vector.broadcast %97 : vector<1x8xf32> to vector<128x8xf32>
    %99 = arith.mulf %96, %98 : vector<128x8xf32>
    %c0_98 = arith.constant 0 : index
    %c0_99 = arith.constant 0 : index
    %100 = vector.load %arg7[%c0_98, %c0_99] : memref<1x8xf32, #tpu.memory_space<vmem>>, vector<1x8xf32>
    %101 = vector.broadcast %100 : vector<1x8xf32> to vector<128x8xf32>
    %102 = arith.addf %99, %101 : vector<128x8xf32>
    %cst_100 = arith.constant 0.000000e+00 : f32
    %103 = vector.broadcast %cst_100 : f32 to vector<128x8xf32>
    %104 = arith.maximumf %102, %103 : vector<128x8xf32>
    %105 = vector.shape_cast %104 : vector<128x8xf32> to vector<1x128x8xf32>
    %106 = tpu.iota {dimensions = array<i32: 0>} : vector<128x1xi32>
    %c16_i32 = arith.constant 16 : i32
    %c0_i32 = arith.constant 0 : i32
    %107 = arith.cmpi eq, %c16_i32, %c0_i32 : i32
    %c1_i32 = arith.constant 1 : i32
    %108 = arith.select %107, %c1_i32, %c16_i32 : i32
    %109 = vector.broadcast %108 : i32 to vector<128x1xi32>
    %110 = arith.remsi %106, %109 : vector<128x1xi32>
    %c0_i32_101 = arith.constant 0 : i32
    %111 = vector.broadcast %c0_i32_101 : i32 to vector<128x1xi32>
    %112 = arith.cmpi ne, %110, %111 : vector<128x1xi32>
    %c0_i32_102 = arith.constant 0 : i32
    %113 = vector.broadcast %c0_i32_102 : i32 to vector<128x1xi32>
    %114 = arith.cmpi slt, %110, %113 : vector<128x1xi32>
    %c0_i32_103 = arith.constant 0 : i32
    %115 = arith.cmpi slt, %108, %c0_i32_103 : i32
    %116 = vector.broadcast %115 : i1 to vector<128x1xi1>
    %117 = vector.broadcast %116 : vector<128x1xi1> to vector<128x1xi1>
    %118 = arith.xori %114, %117 : vector<128x1xi1>
    %119 = arith.andi %118, %112 : vector<128x1xi1>
    %120 = vector.broadcast %108 : i32 to vector<128x1xi32>
    %121 = arith.addi %110, %120 : vector<128x1xi32>
    %122 = arith.select %119, %121, %110 : vector<128x1xi1>, vector<128x1xi32>
    %c8_i32 = arith.constant 8 : i32
    %123 = vector.broadcast %c8_i32 : i32 to vector<128x1xi32>
    %124 = arith.cmpi slt, %122, %123 : vector<128x1xi32>
    %cst_104 = arith.constant 0.000000e+00 : f32
    %125 = vector.shape_cast %124 : vector<128x1xi1> to vector<1x128x1xi1>
    %126 = vector.broadcast %125 : vector<1x128x1xi1> to vector<1x128x8xi1>
    %127 = vector.broadcast %cst_104 : f32 to vector<1x128x8xf32>
    %128 = arith.select %126, %105, %127 : vector<1x128x8xi1>, vector<1x128x8xf32>
    %cst_105 = arith.constant 0.000000e+00 : f32
    %129 = vector.broadcast %cst_105 : f32 to vector<1x17x8xf32>
    %c0_106 = arith.constant 0 : index
    %c0_107 = arith.constant 0 : index
    %c0_108 = arith.constant 0 : index
    %130 = vector.load %arg14[%c0_106, %c0_107, %c0_108] : memref<1x168x8xf32, #tpu.memory_space<vmem>>, vector<1x17x8xf32>
    tpu.vector_store %arg14[%c0_106, %c0_107, %c0_108], %129 {strides = array<i32>} : memref<1x168x8xf32, #tpu.memory_space<vmem>>, vector<1x17x8xf32>,
    %cst_109 = arith.constant 0.000000e+00 : f32
    %131 = vector.broadcast %cst_109 : f32 to vector<1x23x8xf32>
    %c0_110 = arith.constant 0 : index
    %c145 = arith.constant 145 : index
    %c0_111 = arith.constant 0 : index
    %132 = vector.load %arg14[%c0_110, %c145, %c0_111] : memref<1x168x8xf32, #tpu.memory_space<vmem>>, vector<1x23x8xf32>
    tpu.vector_store %arg14[%c0_110, %c145, %c0_111], %131 {strides = array<i32>} : memref<1x168x8xf32, #tpu.memory_space<vmem>>, vector<1x23x8xf32>,
    %c0_112 = arith.constant 0 : index
    %c17 = arith.constant 17 : index
    %c0_113 = arith.constant 0 : index
    %133 = vector.load %arg14[%c0_112, %c17, %c0_113] : memref<1x168x8xf32, #tpu.memory_space<vmem>>, vector<1x128x8xf32>
    tpu.vector_store %arg14[%c0_112, %c17, %c0_113], %128 {strides = array<i32>} : memref<1x168x8xf32, #tpu.memory_space<vmem>>, vector<1x128x8xf32>,
    %c0_114 = arith.constant 0 : index
    %c0_115 = arith.constant 0 : index
    %c0_116 = arith.constant 0 : index
    %134 = vector.load %arg14[%c0_114, %c0_115, %c0_116] : memref<1x168x8xf32, #tpu.memory_space<vmem>>, vector<1x128x8xf32>
    %c0_117 = arith.constant 0 : index
    %c1_118 = arith.constant 1 : index
    %c0_119 = arith.constant 0 : index
    %135 = vector.load %arg14[%c0_117, %c1_118, %c0_119] : memref<1x168x8xf32, #tpu.memory_space<vmem>>, vector<1x128x8xf32>
    %c0_120 = arith.constant 0 : index
    %c2_121 = arith.constant 2 : index
    %c0_122 = arith.constant 0 : index
    %136 = vector.load %arg14[%c0_120, %c2_121, %c0_122] : memref<1x168x8xf32, #tpu.memory_space<vmem>>, vector<1x128x8xf32>
    %c0_123 = arith.constant 0 : index
    %c16 = arith.constant 16 : index
    %c0_124 = arith.constant 0 : index
    %137 = vector.load %arg14[%c0_123, %c16, %c0_124] : memref<1x168x8xf32, #tpu.memory_space<vmem>>, vector<1x128x8xf32>
    %c0_125 = arith.constant 0 : index
    %c17_126 = arith.constant 17 : index
    %c0_127 = arith.constant 0 : index
    %138 = vector.load %arg14[%c0_125, %c17_126, %c0_127] : memref<1x168x8xf32, #tpu.memory_space<vmem>>, vector<1x128x8xf32>
    %c0_128 = arith.constant 0 : index
    %c18 = arith.constant 18 : index
    %c0_129 = arith.constant 0 : index
    %139 = vector.load %arg14[%c0_128, %c18, %c0_129] : memref<1x168x8xf32, #tpu.memory_space<vmem>>, vector<1x128x8xf32>
    %c0_130 = arith.constant 0 : index
    %c32 = arith.constant 32 : index
    %c0_131 = arith.constant 0 : index
    %140 = vector.load %arg14[%c0_130, %c32, %c0_131] : memref<1x168x8xf32, #tpu.memory_space<vmem>>, vector<1x128x8xf32>
    %c0_132 = arith.constant 0 : index
    %c33 = arith.constant 33 : index
    %c0_133 = arith.constant 0 : index
    %141 = vector.load %arg14[%c0_132, %c33, %c0_133] : memref<1x168x8xf32, #tpu.memory_space<vmem>>, vector<1x128x8xf32>
    %c0_134 = arith.constant 0 : index
    %c34 = arith.constant 34 : index
    %c0_135 = arith.constant 0 : index
    %142 = vector.load %arg14[%c0_134, %c34, %c0_135] : memref<1x168x8xf32, #tpu.memory_space<vmem>>, vector<1x128x8xf32>
    %143 = tpu.concatenate %134, %135, %136, %137, %138, %139, %140, %141, %142 in 2 : vector<1x128x8xf32>, vector<1x128x8xf32>, vector<1x128x8xf32>, vector<1x128x8xf32>, vector<1x128x8xf32>, vector<1x128x8xf32>, vector<1x128x8xf32>, vector<1x128x8xf32>, vector<1x128x8xf32> -> vector<1x128x72xf32>
    %144 = vector.shape_cast %143 : vector<1x128x72xf32> to vector<128x72xf32>
    %c0_136 = arith.constant 0 : index
    %c0_137 = arith.constant 0 : index
    %145 = vector.load %arg10[%c0_136, %c0_137] : memref<72x8xf32, #tpu.memory_space<vmem>>, vector<72x8xf32>
    %cst_138 = arith.constant dense<0.000000e+00> : vector<128x8xf32>
    %146 = tpu.matmul %144, %145, %cst_138 {dimension_numbers = #tpu.dot_dimension_numbers<[1], [0], [0], [1], [0, 0, 1, 1], [], []>} : vector<128x72xf32>, vector<72x8xf32>, vector<128x8xf32> -> vector<128x8xf32>
    %c0_139 = arith.constant 0 : index
    %c0_140 = arith.constant 0 : index
    %147 = vector.load %arg11[%c0_139, %c0_140] : memref<1x8xf32, #tpu.memory_space<vmem>>, vector<1x8xf32>
    %148 = vector.broadcast %147 : vector<1x8xf32> to vector<128x8xf32>
    %149 = arith.addf %146, %148 : vector<128x8xf32>
    %150 = arith.addf %149, %93 : vector<128x8xf32>
    %151 = vector.shape_cast %150 : vector<128x8xf32> to vector<1x128x8xf32>
    %c0_141 = arith.constant 0 : index
    %c0_142 = arith.constant 0 : index
    %c0_143 = arith.constant 0 : index
    %152 = vector.load %arg12[%c0_141, %c0_142, %c0_143] : memref<1x128x8xf32, #tpu.memory_space<vmem>>, vector<1x128x8xf32>
    tpu.vector_store %arg12[%c0_141, %c0_142, %c0_143], %151 {strides = array<i32>} : memref<1x128x8xf32, #tpu.memory_space<vmem>>, vector<1x128x8xf32>,
    return
  }
  func.func @transform_0(%arg0: i32) -> (i32, i32, i32, i32, i32) {
    %c0_i32 = arith.constant 0 : i32
    %c0_i32_0 = arith.constant 0 : i32
    %c0_i32_1 = arith.constant 0 : i32
    %c0_i32_2 = arith.constant 0 : i32
    %c0_i32_3 = arith.constant 0 : i32
    return %arg0, %c0_i32, %c0_i32_0, %c0_i32_1, %c0_i32_2 : i32, i32, i32, i32, i32
  }
  func.func @transform_1(%arg0: i32) -> (i32, i32) {
    %c0_i32 = arith.constant 0 : i32
    %c0_i32_0 = arith.constant 0 : i32
    %c0_i32_1 = arith.constant 0 : i32
    return %c0_i32, %c0_i32_0 : i32, i32
  }
  func.func @transform_2(%arg0: i32) -> (i32, i32) {
    %c0_i32 = arith.constant 0 : i32
    %c0_i32_0 = arith.constant 0 : i32
    %c0_i32_1 = arith.constant 0 : i32
    return %c0_i32, %c0_i32_0 : i32, i32
  }
  func.func @transform_3(%arg0: i32) -> (i32, i32) {
    %c0_i32 = arith.constant 0 : i32
    %c0_i32_0 = arith.constant 0 : i32
    %c0_i32_1 = arith.constant 0 : i32
    return %c0_i32, %c0_i32_0 : i32, i32
  }
  func.func @transform_4(%arg0: i32) -> (i32, i32) {
    %c0_i32 = arith.constant 0 : i32
    %c0_i32_0 = arith.constant 0 : i32
    %c0_i32_1 = arith.constant 0 : i32
    return %c0_i32, %c0_i32_0 : i32, i32
  }
  func.func @transform_5(%arg0: i32) -> (i32, i32) {
    %c0_i32 = arith.constant 0 : i32
    %c0_i32_0 = arith.constant 0 : i32
    %c0_i32_1 = arith.constant 0 : i32
    return %c0_i32, %c0_i32_0 : i32, i32
  }
  func.func @transform_6(%arg0: i32) -> (i32, i32) {
    %c0_i32 = arith.constant 0 : i32
    %c0_i32_0 = arith.constant 0 : i32
    %c0_i32_1 = arith.constant 0 : i32
    return %c0_i32, %c0_i32_0 : i32, i32
  }
  func.func @transform_7(%arg0: i32) -> (i32, i32) {
    %c0_i32 = arith.constant 0 : i32
    %c0_i32_0 = arith.constant 0 : i32
    %c0_i32_1 = arith.constant 0 : i32
    return %c0_i32, %c0_i32_0 : i32, i32
  }
  func.func @transform_8(%arg0: i32) -> (i32, i32) {
    %c0_i32 = arith.constant 0 : i32
    %c0_i32_0 = arith.constant 0 : i32
    %c0_i32_1 = arith.constant 0 : i32
    return %c0_i32, %c0_i32_0 : i32, i32
  }
  func.func @transform_9(%arg0: i32) -> (i32, i32) {
    %c0_i32 = arith.constant 0 : i32
    %c0_i32_0 = arith.constant 0 : i32
    %c0_i32_1 = arith.constant 0 : i32
    return %c0_i32, %c0_i32_0 : i32, i32
  }
  func.func @transform_10(%arg0: i32) -> (i32, i32) {
    %c0_i32 = arith.constant 0 : i32
    %c0_i32_0 = arith.constant 0 : i32
    %c0_i32_1 = arith.constant 0 : i32
    return %c0_i32, %c0_i32_0 : i32, i32
  }
  func.func @transform_11(%arg0: i32) -> (i32, i32, i32) {
    %c0_i32 = arith.constant 0 : i32
    %c0_i32_0 = arith.constant 0 : i32
    %c0_i32_1 = arith.constant 0 : i32
    return %arg0, %c0_i32, %c0_i32_0 : i32, i32, i32
  }
}

</mosaic_0001>

<bundles_post_ra>
// kernel: block2_forward.1
= control target key start
LH: loop header
LB: loop body
LE: loop exit
PB: predicated region body
PF: predicated region fallthrough
CT: control target
= control target key end

     0   :  { %s3528_s17 = smov 0   ;;  %s5315_s0 = inlined_call_operand.vmem [shape: f32[2,4,8,8,4], index: 0, kind: input, shape index: {}]   ;;  %s5316_s1 = inlined_call_operand.vmem [shape: f32[1,4], index: 1, kind: input, shape index: {}]   ;;  %s5317_s2 = inlined_call_operand.vmem [shape: f32[1,4], index: 2, kind: input, shape index: {}]   ;;  %s5318_s3 = inlined_call_operand.vmem [shape: f32[36,8], index: 3, kind: input, shape index: {}]   ;;  %s5319_s4 = inlined_call_operand.vmem [shape: f32[1,8], index: 4, kind: input, shape index: {}]   ;;  %s5320_s5 = inlined_call_operand.vmem [shape: f32[1,8], index: 5, kind: input, shape index: {}]   ;;  %s5321_s6 = inlined_call_operand.vmem [shape: f32[1,8], index: 6, kind: input, shape index: {}]   ;;  %s5322_s7 = inlined_call_operand.vmem [shape: f32[4,8], index: 7, kind: input, shape index: {}]   ;;  %s5323_s8 = inlined_call_operand.vmem [shape: f32[1,8], index: 8, kind: input, shape index: {}]   ;;  %s5324_s9 = inlined_call_operand.vmem [shape: f32[72,8], index: 9, kind: input, shape index: {}]   ;;  %s5325_s10 = inlined_call_operand.vmem [shape: f32[1,8], index: 10, kind: input, shape index: {}]   ;;  %s5326_s11 = inlined_call_operand.vmem [shape: f32[2,128,8], index: 11, kind: output, shape index: {}]  }
   0x1 LB: > { %s3147_s18 = sadd.s32 4294967295, %s3453_s17   ;;  %p3151_p0 = scmp.ge.s32.totalorder %s3453_s17, 1  ;;  %s3453_s17 = sphi %s3528_s17, %s21_s17  }
   0x2   : > { %p337_p1 = scmp.lt.s32.totalorder %s3453_s17, 3 }
   0x4   : > { %p338_p2 = pnand %p3151_p0, %p337_p1 }
   0x5   : > { %p3554_p3 = scmp.lt.s32.totalorder (!%p338_p2), %s3147_s18, 1  ;;  %s3456_s28 = smov (!%p338_p2), 8  }
   0x6   : > { %341 = sbr.rel (%p338_p2) target bundleno = 1023 (0x3ff), region = 64  ;;  %s3457_s29 = smov (!%p338_p2), 4  }
   0x7   : > { %s3458_s30 = smov (!%p338_p2), 12   ;;  %s3459_s12 = smov (!%p338_p2), 24  }
   0x8   : > { %s3460_s13 = smov (!%p338_p2), 16   ;;  %s3461_s14 = smov (!%p338_p2), 20  }
   0x9   : > { %s3462_s21 = smov (!%p338_p2), 28   ;;  %s3463_s22 = smov (!%p338_p2), 32  }
   0xa   : > { %s3465_s26 = smov (!%p338_p2), 40   ;;  %s3466_s27 = smov (!%p338_p2), 48  }
   0xb   : > { %vm387_vm0 = vcmask 31744   ;;  %vm439_vm1 = vcmask 30720   ;;  %v3455_v0 = vmov 0.0   ;;  %vm406_vm2 = vcmask 24576   ;;  %s5329_s18 = smov (!%p3554_p3, %s3147_s18), 1 }
   0xc   : > { %394 = vst.msk [vmem:[#allocation2 + $0x1e0] sm:$0xff] %vm387_vm0, %v3455_v0  ;;  %395 = vst.msk [vmem:[#allocation2 + $0x1e8] sm:$0xff] %vm387_vm0, %v3455_v0  ;;  %s3239_s20 = sshll.u32 %s5329_s18, 8  ;;  %v3696_v1 = vld [vmem:[%s5316_s1] ss:$0 sm:$0xff]  ;;  %vm1340_vm3 = vcmask 64512  }
   0xd   : > { %392 = vst.msk [vmem:[#allocation2 + $0x140] sm:$0xff] %vm387_vm0, %v3455_v0  ;;  %393 = vst.msk [vmem:[#allocation2 + $0x148] sm:$0xff] %vm387_vm0, %v3455_v0  ;;  %s3701_s25 = scalar_lea.vmem %s5315_s0, %s3239_s20  ;;  %v3706_v2 = vld [vmem:[%s5317_s2] ss:$0 sm:$0xff]  ;;  %vm744_vm4 = vcmask 1046528   ;;  %vm1504_vm5 = vcmask 1043456  }
   0xe   : > { %397 = vst.msk [vmem:[#allocation2 + $0x90] sm:$0xff] %vm387_vm0, %v3455_v0  ;;  %399 = vst.msk [vmem:[#allocation2 + $0x130] sm:$0xff] %vm387_vm0, %v3455_v0  ;;  %v3158_v3 = vld [vmem:[%s3701_s25 + $0x40] sm:$0xff]  ;;  %v475_v17 = vld [vmem:[%s3701_s25 + $0x8] sm:$0xff]  ;;  %vm1357_vm6 = vcmask 97280   ;;  %vm1374_vm7 = vcmask 130048  }
   0xf   : > { %401 = vst.msk [vmem:[#allocation2 + $0x1d0] sm:$0xff] %vm387_vm0, %v3455_v0  ;;  %403 = vst.msk [vmem:[#allocation2 + $0x270] sm:$0xff] %vm387_vm0, %v3455_v0  ;;  %v3174_v4 = vld [vmem:[%s3701_s25 + $0xc0] sm:$0xff]  ;;  %v535_v9 = vmul.f32 %v3158_v3, %v3696_v1  ;;  %v3167_v22 = vld [vmem:[%s3701_s25 + $0x88] sm:$0xff]  ;;  %v489_v27 = vmul.f32 %v3696_v1, %v475_v17  ;;  %vm1391_vm8 = vcmask 162816   ;;  %vm1408_vm9 = vcmask 195584  }
  0x10   : > { %448 = vst.msk [vmem:[#allocation2 + $0xb9] sm:$0x7f] %vm439_vm1, %v3455_v0  ;;  %440 = vst.msk [vmem:[#allocation2 + $0x19] sm:$0x7f] %vm439_vm1, %v3455_v0  ;;  %v3166_v5 = vld [vmem:[%s3701_s25 + $0x80] sm:$0xff]  ;;  %v619_v10 = vmul.f32 %v3174_v4, %v3696_v1  ;;  %v3159_v23 = vld [vmem:[%s3701_s25 + $0x48] sm:$0xff]  ;;  %v578_v28 = vmul.f32 %v3167_v22, %v3696_v1 }
  0x11   : > { %441 = vst.msk [vmem:[#allocation2 + $0x29] sm:$0x7f] %vm439_vm1, %v3455_v0  ;;  %442 = vst.msk [vmem:[#allocation2 + $0x39] sm:$0x7f] %vm439_vm1, %v3455_v0  ;;  %v577_v11 = vmul.f32 %v3166_v5, %v3696_v1  ;;  %v474_v16 = vld [vmem:[%s3701_s25] sm:$0xff]  ;;  %v543_v19 = vadd.f32 %v3706_v2, %v535_v9  ;;  %v3175_v24 = vld [vmem:[%s3701_s25 + $0xc8] sm:$0xff]  ;;  %v503_v37 = vadd.f32 %v3706_v2, %v489_v27 }
  0x12   : > { %443 = vst.msk [vmem:[#allocation2 + $0x49] sm:$0x7f] %vm439_vm1, %v3455_v0  ;;  %444 = vst.msk [vmem:[#allocation2 + $0x59] sm:$0x7f] %vm439_vm1, %v3455_v0  ;;  %v627_v20 = vadd.f32 %v3706_v2, %v619_v10  ;;  %v488_v26 = vmul.f32 %v3696_v1, %v474_v16  ;;  %v476_v29 = vld [vmem:[%s3701_s25 + $0x10] sm:$0xff]  ;;  %v586_v38 = vadd.f32 %v3706_v2, %v578_v28  ;;  %v477_v45 = vld [vmem:[%s3701_s25 + $0x18] sm:$0xff] }
  0x13   : > { %445 = vst.msk [vmem:[#allocation2 + $0x69] sm:$0x7f] %vm439_vm1, %v3455_v0  ;;  %446 = vst.msk [vmem:[#allocation2 + $0x79] sm:$0x7f] %vm439_vm1, %v3455_v0  ;;  %v3735_v6 = vld [vmem:[#allocation2 + $0x1e0] sm:$0xff]  ;;  %v3737_v7 = vld [vmem:[#allocation2 + $0x1e8] sm:$0xff]  ;;  %v585_v21 = vadd.f32 %v3706_v2, %v577_v11  ;;  %v536_v39 = vmul.f32 %v3159_v23, %v3696_v1  ;;  %v620_v40 = vmul.f32 %v3175_v24, %v3696_v1 }
  0x14   : > { %447 = vst.msk [vmem:[#allocation2 + $0x89] sm:$0x7f] %vm439_vm1, %v3455_v0  ;;  %449 = vst.msk [vmem:[#allocation2 + $0xc9] sm:$0x7f] %vm439_vm1, %v3455_v0  ;;  %v688_v8 = vld [vmem:[#allocation2 + $0x140] sm:$0xff]  ;;  %v843_v12 = vrot.slane %v3735_v6, 1  ;;  %v502_v36 = vadd.f32 %v3706_v2, %v488_v26  ;;  %v490_v41 = vmul.f32 %v3696_v1, %v476_v29  ;;  %v491_v58 = vmul.f32 %v3696_v1, %v477_v45 }
  0x15   : > { %450 = vst.msk [vmem:[#allocation2 + $0xd9] sm:$0x7f] %vm439_vm1, %v3455_v0  ;;  %451 = vst.msk [vmem:[#allocation2 + $0xe9] sm:$0x7f] %vm439_vm1, %v3455_v0  ;;  %v844_v13 = vrot.slane %v3737_v7, 1  ;;  %v3744_v14 = vld [vmem:[#allocation2 + $0x148] sm:$0xff]  ;;  %v544_v50 = vadd.f32 %v3706_v2, %v536_v39  ;;  %v628_v51 = vadd.f32 %v3706_v2, %v620_v40 }
  0x16   : > { %452 = vst.msk [vmem:[#allocation2 + $0xf9] sm:$0x7f] %vm439_vm1, %v3455_v0  ;;  %453 = vst.msk [vmem:[#allocation2 + $0x109] sm:$0x7f] %vm439_vm1, %v3455_v0  ;;  %v745_v15 = vrot.slane %v688_v8, 1  ;;  %v746_v18 = vrot.slane %v3744_v14, 1  ;;  %v504_v52 = vadd.f32 %v3706_v2, %v490_v41  ;;  %v505_v5 = vadd.f32 %v3706_v2, %v491_v58 }
  0x17   : > { %454 = vst.msk [vmem:[#allocation2 + $0x119] sm:$0x7f] %vm439_vm1, %v3455_v0  ;;  %455 = vst.msk [vmem:[#allocation2 + $0x129] sm:$0x7f] %vm439_vm1, %v3455_v0  ;;  %v845_v25 = vsel %vm744_vm4, %v843_v12, %v844_v13  ;;  %v3168_v30 = vld [vmem:[%s3701_s25 + $0x90] sm:$0xff]  ;;  %v551_v33 = vmax.f32 %v543_v19, 0.0 }
  0x18   : > { %456 = vst.msk [vmem:[#allocation2 + $0x159] sm:$0x7f] %vm439_vm1, %v3455_v0  ;;  %457 = vst.msk [vmem:[#allocation2 + $0x169] sm:$0x7f] %vm439_vm1, %v3455_v0  ;;  %v3160_v31 = vld [vmem:[%s3701_s25 + $0x50] sm:$0xff]  ;;  %876 = vrot.lane.b32.xlu1 %v845_v25, %s3456_s28  ;;  %v747_v32 = vsel %vm744_vm4, %v745_v15, %v746_v18  ;;  %v635_v34 = vmax.f32 %v627_v20, 0.0  ;;  %v579_v42 = vmul.f32 %v3168_v30, %v3696_v1 }
  0x19   : > { %458 = vst.msk [vmem:[#allocation2 + $0x179] sm:$0x7f] %vm439_vm1, %v3455_v0  ;;  %459 = vst.msk [vmem:[#allocation2 + $0x189] sm:$0x7f] %vm439_vm1, %v3455_v0  ;;  %v593_v35 = vmax.f32 %v585_v21, 0.0  ;;  %778 = vrot.lane.b32.xlu0 %v747_v32, %s3457_s29  ;;  %v537_v43 = vmul.f32 %v3160_v31, %v3696_v1  ;;  %v3176_v44 = vld [vmem:[%s3701_s25 + $0xd0] sm:$0xff] }
  0x1a   : > { %460 = vst.msk [vmem:[#allocation2 + $0x199] sm:$0x7f] %vm439_vm1, %v3455_v0  ;;  %461 = vst.msk [vmem:[#allocation2 + $0x1a9] sm:$0x7f] %vm439_vm1, %v3455_v0  ;;  %v3169_v46 = vld [vmem:[%s3701_s25 + $0x98] sm:$0xff]  ;;  %v510_v47 = vmax.f32 %v502_v36, 0.0  ;;  %v587_v53 = vadd.f32 %v3706_v2, %v579_v42  ;;  %v621_v57 = vmul.f32 %v3176_v44, %v3696_v1 }
  0x1b   : > { %462 = vst.msk [vmem:[#allocation2 + $0x1b9] sm:$0x7f] %vm439_vm1, %v3455_v0  ;;  %463 = vst.msk [vmem:[#allocation2 + $0x1c9] sm:$0x7f] %vm439_vm1, %v3455_v0  ;;  %v511_v48 = vmax.f32 %v503_v37, 0.0  ;;  %v594_v49 = vmax.f32 %v586_v38, 0.0  ;;  %v545_v54 = vadd.f32 %v3706_v2, %v537_v43  ;;  %v580_v59 = vmul.f32 %v3169_v46, %v3696_v1 }
  0x1c   : > { %464 = vst.msk [vmem:[#allocation2 + $0x1f9] sm:$0x7f] %vm439_vm1, %v3455_v0  ;;  %465 = vst.msk [vmem:[#allocation2 + $0x209] sm:$0x7f] %vm439_vm1, %v3455_v0  ;;  %v3161_v55 = vld [vmem:[%s3701_s25 + $0x58] sm:$0xff]  ;;  %v552_v56 = vmax.f32 %v544_v50, 0.0  ;;  %v629_v4 = vadd.f32 %v3706_v2, %v621_v57 }
  0x1d   : > { %466 = vst.msk [vmem:[#allocation2 + $0x219] sm:$0x7f] %vm439_vm1, %v3455_v0  ;;  %467 = vst.msk [vmem:[#allocation2 + $0x229] sm:$0x7f] %vm439_vm1, %v3455_v0  ;;  %v3177_v60 = vld [vmem:[%s3701_s25 + $0xd8] sm:$0xff]  ;;  %v636_v61 = vmax.f32 %v628_v51, 0.0  ;;  %v588_v8 = vadd.f32 %v3706_v2, %v580_v59  ;;  %v538_v9 = vmul.f32 %v3161_v55, %v3696_v1 }
  0x1e   : > { %468 = vst.msk [vmem:[#allocation2 + $0x239] sm:$0x7f] %vm439_vm1, %v3455_v0  ;;  %469 = vst.msk [vmem:[#allocation2 + $0x249] sm:$0x7f] %vm439_vm1, %v3455_v0  ;;  %v512_v62 = vmax.f32 %v504_v52, 0.0  ;;  %v595_v63 = vmax.f32 %v587_v53, 0.0  ;;  %v622_v10 = vmul.f32 %v3177_v60, %v3696_v1 }
  0x1f   : > { %470 = vst.msk [vmem:[#allocation2 + $0x259] sm:$0x7f] %vm439_vm1, %v3455_v0  ;;  %471 = vst.msk [vmem:[#allocation2 + $0x269] sm:$0x7f] %vm439_vm1, %v3455_v0  ;;  %v553_v3 = vmax.f32 %v545_v54, 0.0  ;;  %v637_v16 = vmax.f32 %v629_v4, 0.0  ;;  %v546_v20 = vadd.f32 %v3706_v2, %v538_v9 }
  0x20   : > { %415 = vst.msk [vmem:[#allocation2 + $0xb0] sm:$0x1] %vm406_vm2, %v3455_v0  ;;  %407 = vst.msk [vmem:[#allocation2 + $0x10] sm:$0x1] %vm406_vm2, %v3455_v0  ;;  %v513_v17 = vmax.f32 %v505_v5, 0.0  ;;  %v596_v19 = vmax.f32 %v588_v8, 0.0  ;;  %v630_v22 = vadd.f32 %v3706_v2, %v622_v10 }
  0x21   : > { %408 = vst.msk [vmem:[#allocation2 + $0x20] sm:$0x1] %vm406_vm2, %v3455_v0  ;;  %409 = vst.msk [vmem:[#allocation2 + $0x30] sm:$0x1] %vm406_vm2, %v3455_v0  ;;  %v554_v26 = vmax.f32 %v546_v20, 0.0  ;;  %v3170_v43 = vld [vmem:[%s3701_s25 + $0xa0] sm:$0xff] }
  0x22   : > { %410 = vst.msk [vmem:[#allocation2 + $0x40] sm:$0x1] %vm406_vm2, %v3455_v0  ;;  %411 = vst.msk [vmem:[#allocation2 + $0x50] sm:$0x1] %vm406_vm2, %v3455_v0  ;;  %v638_v30 = vmax.f32 %v630_v22, 0.0  ;;  %v3162_v44 = vld [vmem:[%s3701_s25 + $0x60] sm:$0xff] }
  0x23   : > { %412 = vst.msk [vmem:[#allocation2 + $0x60] sm:$0x1] %vm406_vm2, %v3455_v0  ;;  %413 = vst.msk [vmem:[#allocation2 + $0x70] sm:$0x1] %vm406_vm2, %v3455_v0  ;;  %v3178_v54 = vld [vmem:[%s3701_s25 + $0xe0] sm:$0xff]  ;;  %v479_v57 = vld [vmem:[%s3701_s25 + $0x28] sm:$0xff] }
  0x24   : > { %414 = vst.msk [vmem:[#allocation2 + $0x80] sm:$0x1] %vm406_vm2, %v3455_v0  ;;  %416 = vst.msk [vmem:[#allocation2 + $0xc0] sm:$0x1] %vm406_vm2, %v3455_v0  ;;  %v493_v4 = vmul.f32 %v3696_v1, %v479_v57  ;;  %v480_v5 = vld [vmem:[%s3701_s25 + $0x30] sm:$0xff]  ;;  %v3171_v8 = vld [vmem:[%s3701_s25 + $0xa8] sm:$0xff] }
  0x25   : > { %417 = vst.msk [vmem:[#allocation2 + $0xd0] sm:$0x1] %vm406_vm2, %v3455_v0  ;;  %418 = vst.msk [vmem:[#allocation2 + $0xe0] sm:$0x1] %vm406_vm2, %v3455_v0  ;;  %v481_v9 = vld [vmem:[%s3701_s25 + $0x38] sm:$0xff]  ;;  %vm1425_vm10 = vcmask 228352  }
  0x26   : > { %419 = vst.msk [vmem:[#allocation2 + $0xf0] sm:$0x1] %vm406_vm2, %v3455_v0  ;;  %420 = vst.msk [vmem:[#allocation2 + $0x100] sm:$0x1] %vm406_vm2, %v3455_v0  ;;  %v507_v20 = vadd.f32 %v3706_v2, %v493_v4  ;;  %v3172_v4 = vld [vmem:[%s3701_s25 + $0xb0] sm:$0xff]  ;;  %vm1442_vm11 = vcmask 261120  }
  0x27   : > { %421 = vst.msk [vmem:[#allocation2 + $0x110] sm:$0x1] %vm406_vm2, %v3455_v0  ;;  %422 = vst.msk [vmem:[#allocation2 + $0x120] sm:$0x1] %vm406_vm2, %v3455_v0  ;;  %vm1660_vm12 = vcmask 293888   ;;  %vm2194_vm13 = vcmask 57344  }
  0x28   : > { %423 = vst.msk [vmem:[#allocation2 + $0x150] sm:$0x1] %vm406_vm2, %v3455_v0  ;;  %424 = vst.msk [vmem:[#allocation2 + $0x160] sm:$0x1] %vm406_vm2, %v3455_v0  ;;  %vm2198_vm14 = vcmask 63488   ;;  %vm2782_vm15 = vcmask 326656  }
  0x29   : > { %425 = vst.msk [vmem:[#allocation2 + $0x170] sm:$0x1] %vm406_vm2, %v3455_v0  ;;  %426 = vst.msk [vmem:[#allocation2 + $0x180] sm:$0x1] %vm406_vm2, %v3455_v0  ;;  %vm2816_vm1 = vcmask 457728  }
  0x2a   : > { %427 = vst.msk [vmem:[#allocation2 + $0x190] sm:$0x1] %vm406_vm2, %v3455_v0  ;;  %428 = vst.msk [vmem:[#allocation2 + $0x1a0] sm:$0x1] %vm406_vm2, %v3455_v0 }
  0x2b   : > { %429 = vst.msk [vmem:[#allocation2 + $0x1b0] sm:$0x1] %vm406_vm2, %v3455_v0  ;;  %430 = vst.msk [vmem:[#allocation2 + $0x1c0] sm:$0x1] %vm406_vm2, %v3455_v0 }
  0x2c   : > { %431 = vst.msk [vmem:[#allocation2 + $0x1f0] sm:$0x1] %vm406_vm2, %v3455_v0  ;;  %432 = vst.msk [vmem:[#allocation2 + $0x200] sm:$0x1] %vm406_vm2, %v3455_v0 }
  0x2d   : > { %433 = vst.msk [vmem:[#allocation2 + $0x210] sm:$0x1] %vm406_vm2, %v3455_v0  ;;  %434 = vst.msk [vmem:[#allocation2 + $0x220] sm:$0x1] %vm406_vm2, %v3455_v0 }
  0x2e   : > { %435 = vst.msk [vmem:[#allocation2 + $0x230] sm:$0x1] %vm406_vm2, %v3455_v0  ;;  %436 = vst.msk [vmem:[#allocation2 + $0x240] sm:$0x1] %vm406_vm2, %v3455_v0 }
  0x2f   : > { %437 = vst.msk [vmem:[#allocation2 + $0x250] sm:$0x1] %vm406_vm2, %v3455_v0  ;;  %438 = vst.msk [vmem:[#allocation2 + $0x260] sm:$0x1] %vm406_vm2, %v3455_v0  ;;  %vm2833_vm2 = vcmask 523264  }
  0x30   : > { %2192 = vst.msk [vmem:[#allocation3] sm:$0xff] %vm1340_vm3, %v3455_v0  ;;  %2193 = vst.msk [vmem:[#allocation3 + $0x8] sm:$0xff] %vm1340_vm3, %v3455_v0 }
  0x31   : > { %2196 = vst.msk [vmem:[#allocation3 + $0x91] sm:$0xff] %vm1340_vm3, %v3455_v0  ;;  %2197 = vst.msk [vmem:[#allocation3 + $0x99] sm:$0xff] %vm1340_vm3, %v3455_v0 }
  0x32   : > { %2201 = vst.msk [vmem:[#allocation3 + $0x19] sm:$0xff] %vm1340_vm3, %v3455_v0  ;;  %2203 = vst.msk [vmem:[#allocation3 + $0x29] sm:$0xff] %vm1340_vm3, %v3455_v0 }
  0x33   : > { %2205 = vst.msk [vmem:[#allocation3 + $0x39] sm:$0xff] %vm1340_vm3, %v3455_v0  ;;  %2207 = vst.msk [vmem:[#allocation3 + $0x49] sm:$0xff] %vm1340_vm3, %v3455_v0 }
  0x34   : > { %2209 = vst.msk [vmem:[#allocation3 + $0x59] sm:$0xff] %vm1340_vm3, %v3455_v0  ;;  %2211 = vst.msk [vmem:[#allocation3 + $0x69] sm:$0xff] %vm1340_vm3, %v3455_v0 }
  0x35   : > { %2213 = vst.msk [vmem:[#allocation3 + $0x79] sm:$0xff] %vm1340_vm3, %v3455_v0  ;;  %2215 = vst.msk [vmem:[#allocation3 + $0x89] sm:$0xff] %vm1340_vm3, %v3455_v0 }
  0x36   : > { %560 = vst.msk [vmem:[#allocation2 + $0xb1] sm:$0xff] %vm387_vm0, %v551_v33  ;;  %644 = vst.msk [vmem:[#allocation2 + $0x1f1] sm:$0xff] %vm387_vm0, %v635_v34  ;;  %v478_v34 = vld [vmem:[%s3701_s25 + $0x20] sm:$0xff] }
  0x37   : > { %602 = vst.msk [vmem:[#allocation2 + $0x151] sm:$0xff] %vm387_vm0, %v593_v35  ;;  %518 = vst.msk [vmem:[#allocation2 + $0x11] sm:$0xff] %vm387_vm0, %v510_v47  ;;  %v492_v38 = vmul.f32 %v3696_v1, %v478_v34 }
  0x38   : > { %519 = vst.msk [vmem:[#allocation2 + $0x21] sm:$0xff] %vm387_vm0, %v511_v48  ;;  %603 = vst.msk [vmem:[#allocation2 + $0x161] sm:$0xff] %vm387_vm0, %v594_v49  ;;  %v581_v48 = vmul.f32 %v3170_v43, %v3696_v1  ;;  %v539_v49 = vmul.f32 %v3162_v44, %v3696_v1 }
  0x39   : > { %561 = vst.msk [vmem:[#allocation2 + $0xc1] sm:$0xff] %vm387_vm0, %v552_v56  ;;  %645 = vst.msk [vmem:[#allocation2 + $0x201] sm:$0xff] %vm387_vm0, %v636_v61  ;;  %v506_v47 = vadd.f32 %v3706_v2, %v492_v38  ;;  %v623_v61 = vmul.f32 %v3178_v54, %v3696_v1 }
  0x3a   : > { %520 = vst.msk [vmem:[#allocation2 + $0x31] sm:$0xff] %vm387_vm0, %v512_v62  ;;  %604 = vst.msk [vmem:[#allocation2 + $0x171] sm:$0xff] %vm387_vm0, %v595_v63  ;;  %v589_v59 = vadd.f32 %v3706_v2, %v581_v48  ;;  %v547_v60 = vadd.f32 %v3706_v2, %v539_v49 }
  0x3b   : > { %562 = vst.msk [vmem:[#allocation2 + $0xd1] sm:$0xff] %vm387_vm0, %v553_v3  ;;  %646 = vst.msk [vmem:[#allocation2 + $0x211] sm:$0xff] %vm387_vm0, %v637_v16  ;;  %v514_v56 = vmax.f32 %v506_v47, 0.0  ;;  %v1464_v16 = vld [vmem:[%s5322_s7] sm:$0xf] }
  0x3c   : > { %521 = vst.msk [vmem:[#allocation2 + $0x41] sm:$0xff] %vm387_vm0, %v513_v17  ;;  %605 = vst.msk [vmem:[#allocation2 + $0x181] sm:$0xff] %vm387_vm0, %v596_v19  ;;  %v597_v10 = vmax.f32 %v589_v59, 0.0  ;;  %v3163_v17 = vld [vmem:[%s3701_s25 + $0x68] sm:$0xff]  ;;  %3406 = vmatprep.subr.msk.mxu1 %vm1504_vm5, %v1464_v16  ;;  %3304 = vmatprep.subr.msk.mxu0 %vm1504_vm5, %v1464_v16 }
  0x3d   : > { %v3806_v11 = vld [vmem:[#allocation2 + $0xb8] sm:$0xff]  ;;  %v670_v12 = vld [vmem:[#allocation2 + $0xb0] sm:$0xff]  ;;  %563 = vst.msk [vmem:[#allocation2 + $0xe1] sm:$0xff] %vm387_vm0, %v554_v26  ;;  %647 = vst.msk [vmem:[#allocation2 + $0x221] sm:$0xff] %vm387_vm0, %v638_v30  ;;  %v515_v30 = vmax.f32 %v507_v20, 0.0  ;;  %3407 = vmatpush3.msk.msra.mxu1 %vm1504_vm5, %v1464_v16  ;;  %3305 = vmatpush3.msk.msra.mxu0 %vm1504_vm5, %v1464_v16 }
  0x3e   : > { %v3808_v15 = vld [vmem:[#allocation2 + $0x1f0] sm:$0xff]  ;;  %942 = vrot.lane.b32.xlu1 %v3806_v11, %s3458_s30  ;;  %940 = vrot.lane.b32.xlu0 %v670_v12, %s3458_s30  ;;  %v691_v25 = vld [vmem:[#allocation2 + $0x158] sm:$0xff]  ;;  %v1088_v39 = vrot.slane %v3806_v11, 1  ;;  %522 = vst.msk [vmem:[#allocation2 + $0x51] sm:$0xff] %vm387_vm0, %v514_v56  ;;  %v555_v11 = vmax.f32 %v547_v60, 0.0  ;;  %606 = vst.msk [vmem:[#allocation2 + $0x191] sm:$0xff] %vm387_vm0, %v597_v10 }
  0x3f   : > { %v690_v21 = vld [vmem:[#allocation2 + $0x150] sm:$0xff]  ;;  %v846_v23 = vrot.slane %v3808_v15, 1  ;;  %v653_v28 = vld [vmem:[#allocation2 + $0x18] sm:$0xff]  ;;  %v3819_v29 = vld [vmem:[#allocation2 + $0x20] sm:$0xff]  ;;  %v750_v35 = vrot.slane %v691_v25, 1  ;;  %v495_v25 = vmul.f32 %v3696_v1, %v481_v9  ;;  %523 = vst.msk [vmem:[#allocation2 + $0x61] sm:$0xff] %vm387_vm0, %v515_v30 }
  0x40   : > { %v748_v24 = vrot.slane %v690_v21, 1  ;;  %v652_v27 = vld [vmem:[#allocation2 + $0x10] sm:$0xff]  ;;  %v1006_v33 = vrot.slane %v653_v28, 1  ;;  %v1008_v36 = vrot.slane %v3819_v29, 1  ;;  %v3835_v37 = vld [vmem:[#allocation2 + $0x160] sm:$0xff]  ;;  %v3853_v45 = vld [vmem:[#allocation2 + $0x1f8] sm:$0xff] }
  0x41   : > { %v1005_v32 = vrot.slane %v652_v27, 1  ;;  %v847_v14 = vsel %vm744_vm4, %v844_v13, %v846_v23  ;;  %v1087_v13 = vrot.slane %v670_v12, 1  ;;  %v752_v42 = vrot.slane %v3835_v37, 1  ;;  %v3855_v46 = vld [vmem:[#allocation2 + $0xc0] sm:$0xff]  ;;  %v3879_v58 = vld [vmem:[#allocation2 + $0x28] sm:$0xff]  ;;  %564 = vst.msk [vmem:[#allocation2 + $0xf1] sm:$0xff] %vm387_vm0, %v555_v11 }
  0x42   : > { %v749_v31 = vsel %vm744_vm4, %v746_v18, %v748_v24  ;;  %1169 = vrot.lane.b32.xlu1 %v3808_v15, %s3459_s12  ;;  %v3843_v40 = vsel %vm744_vm4, %v748_v24, %v750_v35  ;;  %v3848_v41 = vsel %vm744_vm4, %v1006_v33, %v1008_v36  ;;  %v848_v52 = vrot.slane %v3853_v45, 1  ;;  %v3873_v55 = vld [vmem:[#allocation2 + $0x200] sm:$0xff]  ;;  %v3179_v21 = vld [vmem:[%s3701_s25 + $0xe8] sm:$0xff]  ;;  %v656_v28 = vld [vmem:[#allocation2 + $0x30] sm:$0xff]  ;;  %2195 = vst.msk [vmem:[#allocation3 + $0x10] sm:$0x1] %vm2194_vm13, %v3455_v0 }
  0x43   : > { %780 = vrot.lane.b32.xlu0 %v749_v31, %s3457_s29  ;;  %v1007_v18 = vsel %vm744_vm4, %v1005_v32, %v1006_v33  ;;  %v1089_v50 = vsel %vm744_vm4, %v1087_v13, %v1088_v39  ;;  %v3868_v51 = vsel %vm744_vm4, %v750_v35, %v752_v42  ;;  %v1090_v53 = vrot.slane %v3855_v46, 1  ;;  %v3915_v26 = vld [vmem:[%s5318_s3 + $0x20] sm:$0xf]  ;;  %v657_v32 = vld [vmem:[#allocation2 + $0x38] sm:$0xff]  ;;  %v3958_v54 = vld [vmem:[#allocation2 + $0xc8] sm:$0xff] }
  0x44   : > { %3306 = vmatprep.mubr.msk.f32.mxu0 %vm387_vm0, %v1007_v18  ;;  %v3886_v62 = vsel %vm744_vm4, %v846_v23, %v848_v52  ;;  %v850_v3 = vrot.slane %v3873_v55, 1  ;;  %v631_v12 = vadd.f32 %v3706_v2, %v623_v61  ;;  %v1010_v19 = vrot.slane %v3879_v58, 1  ;;  %3330 = vmatprep.subr.msk.mxu1 %vm1504_vm5, %v3915_v26  ;;  %v658_v47 = vld [vmem:[#allocation2 + $0x40] sm:$0xff]  ;;  %v3966_v58 = vld [vmem:[#allocation2 + $0x168] sm:$0xff]  ;;  %2199 = vst.msk [vmem:[#allocation3 + $0xa1] sm:$0x7f] %vm2198_vm14, %v3455_v0 }
  0x45   : > { %v1091_v63 = vsel %vm744_vm4, %v1088_v39, %v1090_v53  ;;  %v494_v23 = vmul.f32 %v3696_v1, %v480_v5  ;;  %v582_v24 = vmul.f32 %v3171_v8, %v3696_v1  ;;  %v540_v31 = vmul.f32 %v3163_v17, %v3696_v1  ;;  %3307 = vmatmul.mubr.msk.f32.vlgmr.msra.gmra.mxu0 %vm387_vm0, %v3848_v41  ;;  %v660_v60 = vld [vmem:[#allocation2 + $0x50] sm:$0xff]  ;;  %v661_v11 = vld [vmem:[#allocation2 + $0x58] sm:$0xff] }
  0x46   : > { %878 = vrot.lane.b32.xlu1 %v847_v14, %s3456_s28  ;;  %v639_v22 = vmax.f32 %v631_v12, 0.0  ;;  %v3920_v27 = vsel %vm744_vm4, %v848_v52, %v850_v3  ;;  %v509_v14 = vadd.f32 %v3706_v2, %v495_v25  ;;  %v1011_v38 = vsel %vm744_vm4, %v1008_v36, %v1010_v19  ;;  %v3946_v52 = vld [vmem:[#allocation2 + $0x48] sm:$0xff] }
  0x47   : > { %1038 = vrot.lane.b32.xlu0 %v1007_v18, %s3460_s13  ;;  %v508_v33 = vadd.f32 %v3706_v2, %v494_v23  ;;  %v590_v34 = vadd.f32 %v3706_v2, %v582_v24  ;;  %v624_v18 = vmul.f32 %v3179_v21, %v3696_v1  ;;  %v548_v35 = vadd.f32 %v3706_v2, %v540_v31  ;;  %v663_v59 = vld [vmem:[#allocation2 + $0x68] sm:$0xff]  ;;  %v668_v24 = vld [vmem:[#allocation2 + $0x90] sm:$0xff] }
  0x48   : > { %648 = vst.msk [vmem:[#allocation2 + $0x231] sm:$0xff] %vm387_vm0, %v639_v22  ;;  %v1012_v39 = vrot.slane %v656_v28, 1  ;;  %v1014_v44 = vrot.slane %v657_v32, 1  ;;  %v517_v48 = vmax.f32 %v509_v14, 0.0  ;;  %3309 = vmatprep.mubr.msk.f32.mxu0 %vm387_vm0, %v1011_v38  ;;  %v1018_v57 = vrot.slane %v3946_v52, 1  ;;  %v3164_v31 = vld [vmem:[%s3701_s25 + $0x70] sm:$0xff] }
  0x49   : > { %v516_v13 = vmax.f32 %v508_v33, 0.0  ;;  %v598_v43 = vmax.f32 %v590_v34, 0.0  ;;  %v556_v49 = vmax.f32 %v548_v35, 0.0  ;;  %v583_v8 = vmul.f32 %v3172_v4, %v3696_v1  ;;  %v1462_v14 = vld [vmem:[%s5318_s3 + $0x18] sm:$0xff]  ;;  %v4019_v35 = vld [vmem:[#allocation2 + $0x208] sm:$0xff] }
  0x4a   : > { %782 = vrot.lane.b32.xlu1 %v3843_v40, %s3457_s29  ;;  %525 = vst.msk [vmem:[#allocation2 + $0x81] sm:$0xff] %vm387_vm0, %v517_v48  ;;  %v1013_v36 = vsel %vm744_vm4, %v1010_v19, %v1012_v39  ;;  %v3961_v56 = vsel %vm744_vm4, %v1012_v39, %v1014_v44  ;;  %v754_v9 = vrot.slane %v3966_v58, 1  ;;  %v1020_v19 = vrot.slane %v660_v60, 1 }
  0x4b   : > { %1040 = vrot.lane.b32.xlu0 %v3848_v41, %s3460_s13  ;;  %524 = vst.msk [vmem:[#allocation2 + $0x71] sm:$0xff] %vm387_vm0, %v516_v13  ;;  %607 = vst.msk [vmem:[#allocation2 + $0x1a1] sm:$0xff] %vm387_vm0, %v598_v43  ;;  %v1016_v41 = vrot.slane %v658_v47, 1  ;;  %3310 = vmatmul.mubr.msk.f32.gmra.mxu0 %vm387_vm0, %v1013_v36  ;;  %v591_v25 = vadd.f32 %v3706_v2, %v583_v8  ;;  %v1022_v32 = vrot.slane %v661_v11, 1  ;;  %v675_v8 = vld [vmem:[#allocation2 + $0xd8] sm:$0xff] }
  0x4c   : > { %565 = vst.msk [vmem:[#allocation2 + $0x101] sm:$0xff] %vm387_vm0, %v556_v49  ;;  %3312 = vmatprep.mubr.msk.f32.mxu0 %vm387_vm0, %v3961_v56  ;;  %v4024_v39 = vsel %vm744_vm4, %v1018_v57, %v1020_v19  ;;  %v3173_v11 = vld [vmem:[%s3701_s25 + $0xb8] sm:$0xff] }
  0x4d   : > { %v3978_v5 = vsel %vm744_vm4, %v1014_v44, %v1016_v41  ;;  %v3983_v10 = vsel %vm744_vm4, %v1016_v41, %v1018_v57  ;;  %v599_v37 = vmax.f32 %v591_v25, 0.0  ;;  %v3180_v44 = vld [vmem:[%s3701_s25 + $0xf0] sm:$0xff]  ;;  %v4043_v47 = vsel %vm744_vm4, %v1020_v19, %v1022_v32  ;;  %v1460_v57 = vld [vmem:[%s5318_s3 + $0x8] sm:$0xff]  ;;  %v696_v25 = vld [vmem:[#allocation2 + $0x180] sm:$0xff] }
  0x4e   : > { %1120 = vrot.lane.b32.xlu1 %v1089_v50, %s3461_s14  ;;  %v632_v50 = vadd.f32 %v3706_v2, %v624_v18  ;;  %v1092_v18 = vrot.slane %v3958_v54, 1 }
  0x4f   : > { %784 = vrot.lane.b32.xlu0 %v3868_v51, %s3457_s29  ;;  %3313 = vmatmul.mubr.msk.f32.gmra.mxu0 %vm387_vm0, %v3978_v5  ;;  %608 = vst.msk [vmem:[#allocation2 + $0x1b1] sm:$0xff] %vm387_vm0, %v599_v37 }
  0x50   : > { %v640_v29 = vmax.f32 %v632_v50, 0.0  ;;  %3315 = vmatprep.mubr.msk.f32.mxu0 %vm387_vm0, %v3983_v10  ;;  %v1093_v49 = vsel %vm744_vm4, %v1090_v53, %v1092_v18  ;;  %v852_v50 = vrot.slane %v4019_v35, 1 }
  0x51   : > { %v666_v22 = vld [vmem:[#allocation2 + $0x80] sm:$0xff]  ;;  %v667_v23 = vld [vmem:[#allocation2 + $0x88] sm:$0xff] }
  0x52   : > { %880 = vrot.lane.b32.xlu1 %v3886_v62, %s3456_s28  ;;  %649 = vst.msk [vmem:[#allocation2 + $0x241] sm:$0xff] %vm387_vm0, %v640_v29  ;;  %v664_v16 = vld [vmem:[#allocation2 + $0x70] sm:$0xff]  ;;  %v665_v17 = vld [vmem:[#allocation2 + $0x78] sm:$0xff]  ;;  %v1032_v28 = vrot.slane %v666_v22, 1  ;;  %v1034_v30 = vrot.slane %v667_v23, 1  ;;  %v625_v29 = vmul.f32 %v3180_v44, %v3696_v1  ;;  %v1096_v23 = vrot.slane %v675_v8, 1 }
  0x53   : > { %1122 = vrot.lane.b32.xlu0 %v1091_v63, %s3461_s14  ;;  %v1026_v63 = vrot.slane %v663_v59, 1  ;;  %v1028_v20 = vrot.slane %v664_v16, 1  ;;  %v1030_v21 = vrot.slane %v665_v17, 1  ;;  %3316 = vmatmul.mubr.msk.f32.gmra.mxu0 %vm387_vm0, %v4024_v39  ;;  %v584_v16 = vmul.f32 %v3173_v11, %v3696_v1  ;;  %v4139_v44 = vld [vmem:[#allocation2 + $0x220] sm:$0xff] }
  0x54   : > { %v4035_v43 = vsel %vm744_vm4, %v1032_v28, %v1034_v30  ;;  %3318 = vmatprep.mubr.msk.f32.mxu0 %vm387_vm0, %v4043_v47 }
  0x55   : > { %v4003_v33 = vsel %vm744_vm4, %v1026_v63, %v1028_v20  ;;  %v4006_v34 = vsel %vm744_vm4, %v1028_v20, %v1030_v21  ;;  %v4029_v13 = vsel %vm744_vm4, %v1030_v21, %v1032_v28  ;;  %v592_v19 = vadd.f32 %v3706_v2, %v584_v16  ;;  %v3165_v20 = vld [vmem:[%s3701_s25 + $0x78] sm:$0xff] }
  0x56   : > { %944 = vrot.lane.b32.xlu1 %v3855_v46, %s3458_s30  ;;  %v542_v22 = vmul.f32 %v3165_v20, %v3696_v1 }
  0x57   : > { %882 = vrot.lane.b32.xlu0 %v3920_v27, %s3456_s28  ;;  %v600_v21 = vmax.f32 %v592_v19, 0.0 }
  0x58   : > { %v550_v28 = vadd.f32 %v3706_v2, %v542_v22  ;;  %v679_v22 = vld [vmem:[#allocation2 + $0xf8] sm:$0xff] }
  0x59   : > { %609 = vst.msk [vmem:[#allocation2 + $0x1c1] sm:$0xff] %vm387_vm0, %v600_v21 }
  0x5a   : > { %1223 = vrot.lane.b32.xlu1 %v3843_v40, %s3462_s21  ;;  %v3968_v40 = vld [vmem:[#allocation2 + $0x60] sm:$0xff] }
  0x5b   : > { %1171 = vrot.lane.b32.xlu0 %v3853_v45, %s3459_s12  ;;  %v1024_v61 = vrot.slane %v3968_v40, 1  ;;  %v853_v40 = vsel %vm744_vm4, %v850_v3, %v852_v50 }
  0x5d   : > { %v3988_v12 = vsel %vm744_vm4, %v1024_v61, %v1026_v63  ;;  %v4065_v46 = vsel %vm744_vm4, %v1022_v32, %v1024_v61  ;;  %v4091_v61 = vld [vmem:[#allocation2 + $0x210] sm:$0xff]  ;;  %v1459_v63 = vld [vmem:[%s5318_s3] sm:$0xff] }
  0x5e   : > { %1042 = vrot.lane.b32.xlu1 %v1011_v38, %s3460_s13  ;;  %3321 = vmatprep.mubr.msk.f32.mxu1 %vm387_vm0, %v3988_v12  ;;  %v4021_v38 = vld [vmem:[#allocation2 + $0x170] sm:$0xff]  ;;  %v854_v58 = vrot.slane %v4091_v61, 1 }
  0x5f   : > { %946 = vrot.lane.b32.xlu0 %v3958_v54, %s3458_s30  ;;  %3322 = vmatmul.mubr.msk.f32.vlgmr.msra.gmra.mxu1 %vm387_vm0, %v4003_v33  ;;  %v756_v52 = vrot.slane %v4021_v38, 1  ;;  %v633_v54 = vadd.f32 %v3706_v2, %v625_v29 }
  0x60   : > { %3324 = vmatprep.mubr.msk.f32.mxu1 %vm387_vm0, %v4006_v34  ;;  %3331 = vmatpush3.msk.msra.mxu1 %vm1504_vm5, %v3915_v26  ;;  %v1461_v26 = vld [vmem:[%s5318_s3 + $0x10] sm:$0xff]  ;;  %v855_v4 = vsel %vm744_vm4, %v852_v50, %v854_v58  ;;  %v697_v50 = vld [vmem:[#allocation2 + $0x188] sm:$0xff] }
  0x61   : > { %3332 = vmatprep.subr.mxu1 %v1462_v14  ;;  %3319 = vmatmul.mubr.msk.f32.gmra.mxu0 %vm387_vm0, %v4065_v46  ;;  %v757_v59 = vsel %vm744_vm4, %v754_v9, %v756_v52 }
  0x62   : > { %1276 = vrot.lane.b32.xlu1 %v3886_v62, %s3463_s22  ;;  %v1036_v62 = vrot.slane %v668_v24, 1  ;;  %3333 = vmatpush3.msra.mxu1 %v1462_v14 }
  0x63   : > { %1225 = vrot.lane.b32.xlu0 %v3868_v51, %s3462_s21  ;;  %v755_v51 = vsel %vm744_vm4, %v752_v42, %v754_v9  ;;  %v541_v42 = vmul.f32 %v3164_v31, %v3696_v1  ;;  %3325 = vmatmul.mubr.msk.f32.gmra.mxu1 %vm387_vm0, %v4029_v13  ;;  %v695_v9 = vld [vmem:[#allocation2 + $0x178] sm:$0xff]  ;;  %v558_v31 = vmax.f32 %v550_v28, 0.0 }
  0x64   : > { %3327 = vmatprep.mubr.msk.f32.mxu1 %vm387_vm0, %v4035_v43  ;;  %v4070_v53 = vsel %vm744_vm4, %v1034_v30, %v1036_v62  ;;  %3334 = vmatprep.subr.mxu1 %v1461_v26  ;;  %v758_v17 = vrot.slane %v695_v9, 1  ;;  %v3181_v30 = vld [vmem:[%s3701_s25 + $0xf8] sm:$0xff]  ;;  %v676_v62 = vld [vmem:[#allocation2 + $0xe0] sm:$0xff]  ;;  %s3464_s25 = smov 56  }
  0x65   : > { %v549_v48 = vadd.f32 %v3706_v2, %v541_v42  ;;  %3335 = vmatpush3.msra.mxu1 %v1461_v26  ;;  %v626_v32 = vmul.f32 %v3181_v30, %v3696_v1  ;;  %567 = vst.msk [vmem:[#allocation2 + $0x121] sm:$0xff] %vm387_vm0, %v558_v31  ;;  %v1098_v1 = vrot.slane %v676_v62, 1  ;;  %v858_v26 = vrot.slane %v4139_v44, 1 }
  0x66   : > { %1044 = vrot.lane.b32.xlu1 %v1013_v36, %s3460_s13  ;;  %v4060_v36 = vld [vmem:[#allocation2 + $0xd0] sm:$0xff]  ;;  %3336 = vmatprep.subr.mxu1 %v1460_v57  ;;  %v759_v24 = vsel %vm744_vm4, %v756_v52, %v758_v17  ;;  %v762_v52 = vrot.slane %v697_v50, 1 }
  0x67   : > { %786 = vrot.lane.b32.xlu0 %v755_v51, %s3457_s29  ;;  %v557_v41 = vmax.f32 %v549_v48, 0.0  ;;  %v1094_v60 = vrot.slane %v4060_v36, 1  ;;  %3328 = vmatmul.mubr.msk.f32.gmra.mxu1 %vm387_vm0, %v4070_v53  ;;  %v634_v38 = vadd.f32 %v3706_v2, %v626_v32  ;;  %v1099_v2 = vsel %vm744_vm4, %v1096_v23, %v1098_v1 }
  0x68   : > { %3337 = vmatpush3.msra.mxu1 %v1460_v57  ;;  %v1104_v32 = vrot.slane %v679_v22, 1 }
  0x69   : > { %566 = vst.msk [vmem:[#allocation2 + $0x111] sm:$0xff] %vm387_vm0, %v557_v41  ;;  %v1095_v3 = vsel %vm744_vm4, %v1092_v18, %v1094_v60  ;;  %3338 = vmatprep.subr.mxu1 %v1459_v63  ;;  %v1097_v14 = vsel %vm744_vm4, %v1094_v60, %v1096_v23  ;;  %v4161_v41 = vld [vmem:[#allocation2 + $0x228] sm:$0xff] }
  0x6a   : > { %1278 = vrot.lane.b32.xlu1 %v3920_v27, %s3463_s22  ;;  %v641_v27 = vmax.f32 %v633_v54, 0.0  ;;  %3339 = vmatpush3.msra.mxu1 %v1459_v63  ;;  %v698_v54 = vld [vmem:[#allocation2 + $0x190] sm:$0xff]  ;;  %v860_v57 = vrot.slane %v4161_v41, 1 }
  0x6b   : > { %1124 = vrot.lane.b32.xlu0 %v1093_v49, %s3461_s14  ;;  %v677_v49 = vld [vmem:[#allocation2 + $0xe8] sm:$0xff] }
  0x6c   : > { %650 = vst.msk [vmem:[#allocation2 + $0x251] sm:$0xff] %vm387_vm0, %v641_v27  ;;  %v1100_v29 = vrot.slane %v677_v49, 1  ;;  %v861_v63 = vsel %vm744_vm4, %v858_v26, %v860_v57 }
  0x6e   : > { %884 = vrot.lane.b32.xlu1 %v853_v40, %s3456_s28 }
  0x6f   : > { %788 = vrot.lane.b32.xlu0 %v757_v59, %s3457_s29 }
  0x72   : > { %1173 = vrot.lane.b32.xlu1 %v3873_v55, %s3459_s12 }
  0x73   : > { %1126 = vrot.lane.b32.xlu0 %v1095_v3, %s3461_s14 }
  0x76   : > { %948 = vrot.lane.b32.xlu1 %v4060_v36, %s3458_s30 }
  0x77   : > { %886 = vrot.lane.b32.xlu0 %v855_v4, %s3456_s28 }
  0x7a   : > { %1227 = vrot.lane.b32.xlu1 %v755_v51, %s3462_s21  ;;  %v760_v51 = vrot.slane %v696_v25, 1  ;;  %v699_v25 = vld [vmem:[#allocation2 + $0x198] sm:$0xff] }
  0x7b   : > { %1175 = vrot.lane.b32.xlu0 %v4019_v35, %s3459_s12  ;;  %v766_v28 = vrot.slane %v699_v25, 1  ;;  %v681_v25 = vld [vmem:[#allocation2 + $0x108] sm:$0xff] }
  0x7c   : > { %v761_v42 = vsel %vm744_vm4, %v758_v17, %v760_v51  ;;  %v763_v36 = vsel %vm744_vm4, %v760_v51, %v762_v52 }
  0x7e   : > { %1046 = vrot.lane.b32.xlu1 %v3961_v56, %s3460_s13  ;;  %v4122_v56 = vld [vmem:[#allocation2 + $0x218] sm:$0xff] }
  0x7f   : > { %950 = vrot.lane.b32.xlu0 %v675_v8, %s3458_s30  ;;  %v856_v18 = vrot.slane %v4122_v56, 1 }
  0x81   : > { %v857_v37 = vsel %vm744_vm4, %v854_v58, %v856_v18  ;;  %v859_v48 = vsel %vm744_vm4, %v856_v18, %v858_v26 }
  0x82   : > { %1280 = vrot.lane.b32.xlu1 %v853_v40, %s3463_s22  ;;  %v764_v40 = vrot.slane %v698_v54, 1 }
  0x83   : > { %1229 = vrot.lane.b32.xlu0 %v757_v59, %s3462_s21  ;;  %v678_v59 = vld [vmem:[#allocation2 + $0xf0] sm:$0xff] }
  0x84   : > { %v765_v3 = vsel %vm744_vm4, %v762_v52, %v764_v40  ;;  %v1102_v58 = vrot.slane %v678_v59, 1 }
  0x86   : > { %1048 = vrot.lane.b32.xlu1 %v3978_v5, %s3460_s13  ;;  %v642_v5 = vmax.f32 %v634_v38, 0.0  ;;  %v4207_v38 = vld [vmem:[#allocation2 + $0x1a0] sm:$0xff] }
  0x87   : > { %790 = vrot.lane.b32.xlu0 %v759_v24, %s3457_s29 }
  0x88   : > { %651 = vst.msk [vmem:[#allocation2 + $0x261] sm:$0xff] %vm387_vm0, %v642_v5 }
  0x8a   : > { %1282 = vrot.lane.b32.xlu1 %v855_v4, %s3463_s22  ;;  %v877_v60 = vpop.permute.xlu1 %876  ;;  %v1103_v4 = vsel %vm744_vm4, %v1100_v29, %v1102_v58 }
  0x8b   : > { %1128 = vrot.lane.b32.xlu0 %v1097_v14, %s3461_s14  ;;  %v779_v27 = vpop.permute.xlu0 %778  ;;  %v767_v14 = vsel %vm744_vm4, %v764_v40, %v766_v28 }
  0x8c   : > { %v1324_v26 = vsel %vm387_vm0, %v3735_v6, %v779_v27 }
  0x8d   : > { %v1341_v6 = vsel %vm1340_vm3, %v1324_v26, %v877_v60 }
  0x8e   : > { %888 = vrot.lane.b32.xlu1 %v857_v37, %s3456_s28 }
  0x8f   : > { %792 = vrot.lane.b32.xlu0 %v761_v42, %s3457_s29 }
  0x92   : > { %1177 = vrot.lane.b32.xlu1 %v4091_v61, %s3459_s12 }
  0x93   : > { %1130 = vrot.lane.b32.xlu0 %v1099_v2, %s3461_s14  ;;  %v4219_v2 = vld [vmem:[#allocation2 + $0x100] sm:$0xff] }
  0x96   : > { %952 = vrot.lane.b32.xlu1 %v676_v62, %s3458_s30  ;;  %v4205_v62 = vld [vmem:[#allocation2 + $0x238] sm:$0xff] }
  0x97   : > { %890 = vrot.lane.b32.xlu0 %v859_v48, %s3456_s28  ;;  %v864_v5 = vrot.slane %v4205_v62, 1 }
  0x9a   : > { %1231 = vrot.lane.b32.xlu1 %v759_v24, %s3462_s21 }
  0x9b   : > { %1179 = vrot.lane.b32.xlu0 %v4122_v56, %s3459_s12 }
  0x9e   : > { %1050 = vrot.lane.b32.xlu1 %v3983_v10, %s3460_s13  ;;  %v1101_v10 = vsel %vm744_vm4, %v1098_v1, %v1100_v29  ;;  %v4230_v29 = vld [vmem:[#allocation2 + $0x240] sm:$0xff] }
  0x9f   : > { %954 = vrot.lane.b32.xlu0 %v677_v49, %s3458_s30  ;;  %v1106_v49 = vrot.slane %v4219_v2, 1 }
  0xa2   : > { %1284 = vrot.lane.b32.xlu1 %v857_v37, %s3463_s22  ;;  %v768_v37 = vrot.slane %v4207_v38, 1 }
  0xa3   : > { %1233 = vrot.lane.b32.xlu0 %v761_v42, %s3462_s21 }
  0xa6   : > { %1052 = vrot.lane.b32.xlu1 %v4024_v39, %s3460_s13  ;;  %v4172_v39 = vld [vmem:[#allocation2 + $0x230] sm:$0xff] }
  0xa7   : > { %794 = vrot.lane.b32.xlu0 %v763_v36, %s3457_s29  ;;  %v862_v8 = vrot.slane %v4172_v39, 1 }
  0xa9   : > { %v863_v16 = vsel %vm744_vm4, %v860_v57, %v862_v8  ;;  %v866_v57 = vrot.slane %v4230_v29, 1 }
  0xaa   : > { %1286 = vrot.lane.b32.xlu1 %v859_v48, %s3463_s22  ;;  %v769_v48 = vsel %vm744_vm4, %v766_v28, %v768_v37 }
  0xab   : > { %1132 = vrot.lane.b32.xlu0 %v1101_v10, %s3461_s14  ;;  %v1107_v10 = vsel %vm744_vm4, %v1104_v32, %v1106_v49 }
  0xae   : > { %892 = vrot.lane.b32.xlu1 %v861_v63, %s3456_s28 }
  0xaf   : > { %796 = vrot.lane.b32.xlu0 %v765_v3, %s3457_s29 }
  0xb0   : > { %v4178_v9 = vpop.permute.xlu1 %942  ;;  %v941_v11 = vpop.permute.xlu0 %940 }
  0xb2   : > { %1181 = vrot.lane.b32.xlu1 %v4139_v44, %s3459_s12 }
  0xb3   : > { %1134 = vrot.lane.b32.xlu0 %v1103_v4, %s3461_s14 }
  0xb4   : > { %v1170_v17 = vpop.permute.xlu1 %1169 }
  0xb5   : > { %v781_v19 = vpop.permute.xlu0 %780 }
  0xb6   : > { %956 = vrot.lane.b32.xlu1 %v678_v59, %s3458_s30 }
  0xb7   : > { %894 = vrot.lane.b32.xlu0 %v863_v16, %s3456_s28 }
  0xb8   : > { %v4186_v20 = vpop.permute.xlu1 %878 }
  0xb9   : > { %v1039_v21 = vpop.permute.xlu0 %1038 }
  0xba   : > { %1235 = vrot.lane.b32.xlu1 %v763_v36, %s3462_s21  ;;  %v1358_v36 = vsel %vm1357_vm6, %v1341_v6, %v941_v11  ;;  %v4291_v6 = vld [vmem:[#allocation2 + $0x1b0] sm:$0xff] }
  0xbb   : > { %1183 = vrot.lane.b32.xlu0 %v4161_v41, %s3459_s12  ;;  %v1375_v54 = vsel %vm1374_vm7, %v1358_v36, %v1039_v21  ;;  %v772_v38 = vrot.slane %v4291_v6, 1 }
  0xbc   : > { %v4191_v23 = vpop.permute.xlu1 %782 }
  0xbd   : > { %v4193_v24 = vpop.permute.xlu0 %1040 }
  0xbe   : > { %1054 = vrot.lane.b32.xlu1 %v4043_v47, %s3460_s13  ;;  %v1105_v47 = vsel %vm744_vm4, %v1102_v58, %v1104_v32  ;;  %v701_v32 = vld [vmem:[#allocation2 + $0x1a8] sm:$0xff] }
  0xbf   : > { %958 = vrot.lane.b32.xlu0 %v679_v22, %s3458_s30 }
  0xc0   : > { %v1121_v30 = vpop.permute.xlu1 %1120 }
  0xc1   : > { %v4198_v31 = vpop.permute.xlu0 %784  ;;  %v1392_v40 = vsel %vm1391_vm8, %v1375_v54, %v1121_v30  ;;  %v4305_v54 = vld [vmem:[#allocation2 + $0x110] sm:$0xff] }
  0xc2   : > { %1288 = vrot.lane.b32.xlu1 %v861_v63, %s3463_s22  ;;  %v1409_v27 = vsel %vm1408_vm9, %v1392_v40, %v1170_v17  ;;  %v867_v63 = vsel %vm744_vm4, %v864_v5, %v866_v57 }
  0xc3   : > { %1237 = vrot.lane.b32.xlu0 %v765_v3, %s3462_s21  ;;  %v1325_v3 = vsel %vm387_vm0, %v3737_v7, %v781_v19 }
  0xc4   : > { %v4203_v18 = vpop.permute.xlu1 %880  ;;  %v1342_v11 = vsel %vm1340_vm3, %v1325_v3, %v4186_v20  ;;  %v1326_v3 = vsel %vm387_vm0, %v3808_v15, %v4191_v23 }
  0xc5   : > { %v1123_v51 = vpop.permute.xlu0 %1122  ;;  %v1359_v7 = vsel %vm1357_vm6, %v1342_v11, %v4178_v9 }
  0xc6   : > { %1056 = vrot.lane.b32.xlu1 %v4065_v46, %s3460_s13  ;;  %v865_v46 = vsel %vm744_vm4, %v862_v8, %v864_v5  ;;  %v1376_v21 = vsel %vm1374_vm7, %v1359_v7, %v4193_v24  ;;  %v770_v24 = vrot.slane %v701_v32, 1  ;;  %v1108_v5 = vrot.slane %v681_v25, 1 }
  0xc7   : > { %798 = vrot.lane.b32.xlu0 %v767_v14, %s3457_s29  ;;  %v1393_v20 = vsel %vm1391_vm8, %v1376_v21, %v1123_v51 }
  0xc8   : > { %v4215_v42 = vpop.permute.xlu1 %944  ;;  %v771_v26 = vsel %vm744_vm4, %v768_v37, %v770_v24 }
  0xc9   : > { %v4217_v1 = vpop.permute.xlu0 %882 }
  0xca   : > { %1290 = vrot.lane.b32.xlu1 %v863_v16, %s3463_s22 }
  0xcb   : > { %1136 = vrot.lane.b32.xlu0 %v1105_v47, %s3461_s14 }
  0xcc   : > { %v1224_v50 = vpop.permute.xlu1 %1223 }
  0xcd   : > { %v1172_v52 = vpop.permute.xlu0 %1171  ;;  %v1426_v58 = vsel %vm1425_vm10, %v1409_v27, %v1224_v50  ;;  %v4312_v27 = vld [vmem:[#allocation2 + $0x250] sm:$0xff] }
  0xce   : > { %896 = vrot.lane.b32.xlu1 %v865_v46, %s3456_s28  ;;  %v1410_v22 = vsel %vm1408_vm9, %v1393_v20, %v1172_v52  ;;  %v4289_v52 = vld [vmem:[#allocation2 + $0x248] sm:$0xff] }
  0xcf   : > { %800 = vrot.lane.b32.xlu0 %v769_v48, %s3457_s29 }
  0xd0   : > { %v4242_v59 = vpop.permute.xlu1 %1042 }
  0xd1   : > { %v4244_v60 = vpop.permute.xlu0 %946 }
  0xd2   : > { %1185 = vrot.lane.b32.xlu1 %v4172_v39, %s3459_s12 }
  0xd3   : > { %1138 = vrot.lane.b32.xlu0 %v1107_v10, %s3461_s14 }
  0xd4   : > { %v1277_v4 = vpop.permute.xlu1 %1276 }
  0xd5   : > { %v1226_v8 = vpop.permute.xlu0 %1225  ;;  %v1443_v16 = vsel %vm1442_vm11, %v1426_v58, %v1277_v4  ;;  %v870_v58 = vrot.slane %v4312_v27, 1 }
  0xd6   : > { %960 = vrot.lane.b32.xlu1 %v4219_v2, %s3458_s30  ;;  %3340 = vmatprep.mubr.msk.f32.mxu1 %vm1660_vm12, %v1443_v16  ;;  %v1427_v28 = vsel %vm1425_vm10, %v1410_v22, %v1226_v8  ;;  %v773_v2 = vsel %vm744_vm4, %v770_v24, %v772_v38  ;;  %v703_v24 = vld [vmem:[#allocation2 + $0x1b8] sm:$0xff] }
  0xd7   : > { %898 = vrot.lane.b32.xlu0 %v867_v63, %s3456_s28 }
  0xd8   : > { %v4263_v17 = vpop.permute.xlu1 %1044 }
  0xd9   : > { %v4265_v19 = vpop.permute.xlu0 %786 }
  0xda   : > { %1239 = vrot.lane.b32.xlu1 %v767_v14, %s3462_s21 }
  0xdb   : > { %1187 = vrot.lane.b32.xlu0 %v4205_v62, %s3459_s12 }
  0xdc   : > { %v1279_v9 = vpop.permute.xlu1 %1278 }
  0xdd   : > { %v1125_v30 = vpop.permute.xlu0 %1124  ;;  %v1444_v47 = vsel %vm1442_vm11, %v1427_v28, %v1279_v9 }
  0xde   : > { %1058 = vrot.lane.b32.xlu1 %v3988_v12, %s3460_s13  ;;  %3341 = vmatmul.mubr.msk.f32.vlgmr.msra.gmra.mxu1 %vm1660_vm12, %v1444_v47 }
  0xdf   : > { %962 = vrot.lane.b32.xlu0 %v681_v25, %s3458_s30 }
  0xe0   : > { %v4280_v14 = vpop.permute.xlu1 %884 }
  0xe1   : > { %v4282_v51 = vpop.permute.xlu0 %788 }
  0xe2   : > { %1292 = vrot.lane.b32.xlu1 %v865_v46, %s3463_s22  ;;  %v1109_v46 = vsel %vm744_vm4, %v1106_v49, %v1108_v5  ;;  %v1110_v49 = vrot.slane %v4305_v54, 1 }
  0xe3   : > { %1241 = vrot.lane.b32.xlu0 %v769_v48, %s3462_s21  ;;  %v868_v48 = vrot.slane %v4289_v52, 1 }
  0xe4   : > { %v1174_v50 = vpop.permute.xlu1 %1173 }
  0xe5   : > { %v1127_v12 = vpop.permute.xlu0 %1126  ;;  %v871_v16 = vsel %vm744_vm4, %v868_v48, %v870_v58 }
  0xe6   : > { %1060 = vrot.lane.b32.xlu1 %v4003_v33, %s3460_s13  ;;  %v869_v33 = vsel %vm744_vm4, %v866_v57, %v868_v48  ;;  %v1111_v57 = vsel %vm744_vm4, %v1108_v5, %v1110_v49 }
  0xe7   : > { %802 = vrot.lane.b32.xlu0 %v771_v26, %s3457_s29 }
  0xe8   : > { %v4301_v37 = vpop.permute.xlu1 %948 }
  0xe9   : > { %v4303_v36 = vpop.permute.xlu0 %886 }
  0xea   : > { %1294 = vrot.lane.b32.xlu1 %v867_v63, %s3463_s22  ;;  %v1343_v63 = vsel %vm1340_vm3, %v1326_v3, %v4203_v18  ;;  %v684_v3 = vld [vmem:[#allocation2 + $0x120] sm:$0xff] }
  0xeb   : > { %1140 = vrot.lane.b32.xlu0 %v1109_v46, %s3461_s14  ;;  %v1360_v4 = vsel %vm1357_vm6, %v1343_v63, %v4215_v42 }
  0xec   : > { %v1228_v10 = vpop.permute.xlu1 %1227  ;;  %v1377_v15 = vsel %vm1374_vm7, %v1360_v4, %v4242_v59  ;;  %v1327_v59 = vsel %vm387_vm0, %v3853_v45, %v4198_v31 }
  0xed   : > { %v1176_v40 = vpop.permute.xlu0 %1175  ;;  %v1394_v23 = vsel %vm1391_vm8, %v1377_v15, %v1125_v30  ;;  %v1344_v22 = vsel %vm1340_vm3, %v1327_v59, %v4217_v1  ;;  %v683_v30 = vld [vmem:[#allocation2 + $0x118] sm:$0xff]  ;;  %v4394_v15 = vld [vmem:[#allocation2 + $0x260] sm:$0xff] }
  0xee   : > { %900 = vrot.lane.b32.xlu1 %v869_v33, %s3456_s28  ;;  %v1411_v18 = vsel %vm1408_vm9, %v1394_v23, %v1174_v50  ;;  %v1361_v25 = vsel %vm1357_vm6, %v1344_v22, %v4244_v60  ;;  %v1328_v23 = vsel %vm387_vm0, %v3873_v55, %v4265_v19 }
  0xef   : > { %804 = vrot.lane.b32.xlu0 %v773_v2, %s3457_s29  ;;  %v1428_v42 = vsel %vm1425_vm10, %v1411_v18, %v1228_v10  ;;  %v1378_v45 = vsel %vm1374_vm7, %v1361_v25, %v4263_v17  ;;  %v774_v17 = vrot.slane %v703_v24, 1 }
  0xf0   : > { %v4325_v8 = vpop.permute.xlu1 %1046  ;;  %v1395_v31 = vsel %vm1391_vm8, %v1378_v45, %v1127_v12  ;;  %v1112_v12 = vrot.slane %v683_v30, 1 }
  0xf1   : > { %v4327_v11 = vpop.permute.xlu0 %950  ;;  %v1412_v1 = vsel %vm1408_vm9, %v1395_v31, %v1176_v40  ;;  %v775_v6 = vsel %vm744_vm4, %v772_v38, %v774_v17 }
  0xf2   : > { %1189 = vrot.lane.b32.xlu1 %v4230_v29, %s3459_s12  ;;  %v1113_v10 = vsel %vm744_vm4, %v1110_v49, %v1112_v12  ;;  %v1114_v49 = vrot.slane %v684_v3, 1 }
  0xf3   : > { %1142 = vrot.lane.b32.xlu0 %v1111_v57, %s3461_s14 }
  0xf4   : > { %v1281_v7 = vpop.permute.xlu1 %1280  ;;  %v1115_v18 = vsel %vm744_vm4, %v1112_v12, %v1114_v49  ;;  %v686_v12 = vld [vmem:[#allocation2 + $0x130] sm:$0xff] }
  0xf5   : > { %v1230_v21 = vpop.permute.xlu0 %1229  ;;  %v1445_v20 = vsel %vm1442_vm11, %v1428_v42, %v1281_v7 }
  0xf6   : > { %964 = vrot.lane.b32.xlu1 %v4305_v54, %s3458_s30  ;;  %3343 = vmatprep.mubr.msk.f32.mxu1 %vm1660_vm12, %v1445_v20  ;;  %v1429_v32 = vsel %vm1425_vm10, %v1412_v1, %v1230_v21  ;;  %v4374_v54 = vld [vmem:[#allocation2 + $0x258] sm:$0xff] }
  0xf7   : > { %902 = vrot.lane.b32.xlu0 %v871_v16, %s3456_s28 }
  0xf8   : > { %v4350_v28 = vpop.permute.xlu1 %1048 }
  0xf9   : > { %v4352_v9 = vpop.permute.xlu0 %790 }
  0xfa   : > { %1243 = vrot.lane.b32.xlu1 %v771_v26, %s3462_s21 }
  0xfb   : > { %1191 = vrot.lane.b32.xlu0 %v4289_v52, %s3459_s12 }
  0xfc   : > { %v1283_v60 = vpop.permute.xlu1 %1282 }
  0xfd   : > { %v1129_v47 = vpop.permute.xlu0 %1128  ;;  %v1446_v5 = vsel %vm1442_vm11, %v1429_v32, %v1283_v60 }
  0xfe   : > { %1062 = vrot.lane.b32.xlu1 %v4006_v34, %s3460_s13  ;;  %3344 = vmatmul.mubr.msk.f32.gmra.mxu1 %vm1660_vm12, %v1446_v5  ;;  %v4376_v34 = vld [vmem:[#allocation2 + $0x1c0] sm:$0xff] }
  0xff   : > { %966 = vrot.lane.b32.xlu0 %v683_v30, %s3458_s30 }
 0x100   : > { %v4367_v26 = vpop.permute.xlu1 %888 }
 0x101   : > { %v4369_v50 = vpop.permute.xlu0 %792 }
 0x102   : > { %1296 = vrot.lane.b32.xlu1 %v869_v33, %s3463_s22  ;;  %v872_v33 = vrot.slane %v4374_v54, 1 }
 0x103   : > { %1245 = vrot.lane.b32.xlu0 %v773_v2, %s3462_s21  ;;  %v776_v2 = vrot.slane %v4376_v34, 1 }
 0x104   : > { %v1178_v46 = vpop.permute.xlu1 %1177  ;;  %v873_v63 = vsel %vm744_vm4, %v870_v58, %v872_v33  ;;  %v1345_v58 = vsel %vm1340_vm3, %v1328_v23, %v4280_v14 }
 0x105   : > { %v1131_v48 = vpop.permute.xlu0 %1130  ;;  %v1362_v42 = vsel %vm1357_vm6, %v1345_v58, %v4301_v37 }
 0x106   : > { %1064 = vrot.lane.b32.xlu1 %v4029_v13, %s3460_s13  ;;  %v777_v13 = vsel %vm744_vm4, %v774_v17, %v776_v2  ;;  %v1379_v55 = vsel %vm1374_vm7, %v1362_v42, %v4325_v8  ;;  %v1329_v8 = vsel %vm387_vm0, %v4019_v35, %v4282_v51 }
 0x107   : > { %806 = vrot.lane.b32.xlu0 %v775_v6, %s3457_s29  ;;  %v1396_v19 = vsel %vm1391_vm8, %v1379_v55, %v1129_v47  ;;  %v1346_v45 = vsel %vm1340_vm3, %v1329_v8, %v4303_v36  ;;  %v685_v36 = vld [vmem:[#allocation2 + $0x128] sm:$0xff] }
 0x108   : > { %v4384_v40 = vpop.permute.xlu1 %952  ;;  %v1413_v14 = vsel %vm1408_vm9, %v1396_v19, %v1178_v46  ;;  %v1363_v31 = vsel %vm1357_vm6, %v1346_v45, %v4327_v11  ;;  %v1118_v46 = vrot.slane %v686_v12, 1  ;;  %v1331_v45 = vsel %vm387_vm0, %v4122_v56, %v4369_v50 }
 0x109   : > { %v4386_v38 = vpop.permute.xlu0 %890  ;;  %v1380_v32 = vsel %vm1374_vm7, %v1363_v31, %v4350_v28  ;;  %v1116_v28 = vrot.slane %v685_v36, 1 }
 0x10a   : > { %1298 = vrot.lane.b32.xlu1 %v871_v16, %s3463_s22  ;;  %v874_v16 = vrot.slane %v4394_v15, 1  ;;  %v1397_v35 = vsel %vm1391_vm8, %v1380_v32, %v1131_v48  ;;  %v1348_v31 = vsel %vm1340_vm3, %v1331_v45, %v4386_v38 }
 0x10b   : > { %1144 = vrot.lane.b32.xlu0 %v1113_v10, %s3461_s14 }
 0x10c   : > { %v1232_v57 = vpop.permute.xlu1 %1231  ;;  %v875_v37 = vsel %vm744_vm4, %v872_v33, %v874_v16 }
 0x10d   : > { %v1180_v4 = vpop.permute.xlu0 %1179  ;;  %v1430_v20 = vsel %vm1425_vm10, %v1413_v14, %v1232_v57  ;;  %v705_v57 = vld [vmem:[#allocation2 + $0x1c8] sm:$0xff] }
 0x10e   : > { %904 = vrot.lane.b32.xlu1 %v873_v63, %s3456_s28  ;;  %v1414_v51 = vsel %vm1408_vm9, %v1397_v35, %v1180_v4 }
 0x10f   : > { %808 = vrot.lane.b32.xlu0 %v777_v13, %s3457_s29  ;;  %s3467_s29 = smov 64  }
 0x110   : > { %v4407_v7 = vpop.permute.xlu1 %1050 }
 0x111   : > { %v4409_v21 = vpop.permute.xlu0 %954 }
 0x112   : > { %1193 = vrot.lane.b32.xlu1 %v4312_v27, %s3459_s12  ;;  %v1365_v32 = vsel %vm1357_vm6, %v1348_v31, %v4409_v21 }
 0x113   : > { %1146 = vrot.lane.b32.xlu0 %v1115_v18, %s3461_s14  ;;  %v726_v18 = vld [vmem:[#allocation2 + $0x270] sm:$0xff] }
 0x114   : > { %v1285_v59 = vpop.permute.xlu1 %1284 }
 0x115   : > { %v1234_v22 = vpop.permute.xlu0 %1233  ;;  %v1447_v25 = vsel %vm1442_vm11, %v1430_v20, %v1285_v59 }
 0x116   : > { %968 = vrot.lane.b32.xlu1 %v684_v3, %s3458_s30  ;;  %3346 = vmatprep.mubr.msk.f32.mxu1 %vm1660_vm12, %v1447_v25  ;;  %v1431_v11 = vsel %vm1425_vm10, %v1414_v51, %v1234_v22 }
 0x117   : > { %906 = vrot.lane.b32.xlu0 %v875_v37, %s3456_s28 }
 0x118   : > { %v4433_v1 = vpop.permute.xlu1 %1052 }
 0x119   : > { %v4435_v30 = vpop.permute.xlu0 %794  ;;  %v1382_v56 = vsel %vm1374_vm7, %v1365_v32, %v4433_v1  ;;  %v2237_v1 = vld [vmem:[#allocation3 + $0x29] sm:$0xff] }
 0x11a   : > { %1247 = vrot.lane.b32.xlu1 %v775_v6, %s3462_s21  ;;  %v1117_v6 = vsel %vm744_vm4, %v1114_v49, %v1116_v28  ;;  %v1219_v49 = vrot.slane %v705_v57, 1 }
 0x11b   : > { %1195 = vrot.lane.b32.xlu0 %v4374_v54, %s3459_s12 }
 0x11c   : > { %v1287_v60 = vpop.permute.xlu1 %1286  ;;  %v1220_v14 = vsel %vm744_vm4, %v776_v2, %v1219_v49 }
 0x11d   : > { %v1133_v47 = vpop.permute.xlu0 %1132  ;;  %v1448_v24 = vsel %vm1442_vm11, %v1431_v11, %v1287_v60 }
 0x11e   : > { %1066 = vrot.lane.b32.xlu1 %v4035_v43, %s3460_s13  ;;  %3347 = vmatmul.mubr.msk.f32.gmra.mxu1 %vm1660_vm12, %v1448_v24  ;;  %v1119_v43 = vsel %vm744_vm4, %v1116_v28, %v1118_v46  ;;  %v2235_v24 = vld [vmem:[#allocation3 + $0x19] sm:$0xff] }
 0x11f   : > { %970 = vrot.lane.b32.xlu0 %v685_v36, %s3458_s30  ;;  %v2248_v36 = vld [vmem:[#allocation3 + $0x2] sm:$0xff] }
 0x120   : > { %v4451_v5 = vpop.permute.xlu1 %892 }
 0x121   : > { %v4453_v17 = vpop.permute.xlu0 %796 }
 0x122   : > { %1300 = vrot.lane.b32.xlu1 %v873_v63, %s3463_s22  ;;  %v706_v63 = vld [vmem:[#allocation2 + $0x1d0] sm:$0xff] }
 0x123   : > { %1249 = vrot.lane.b32.xlu0 %v777_v13, %s3462_s21  ;;  %v725_v13 = vld [vmem:[#allocation2 + $0x268] sm:$0xff]  ;;  %v1221_v4 = vrot.slane %v706_v63, 1 }
 0x124   : > { %v1182_v48 = vpop.permute.xlu1 %1181  ;;  %v1272_v42 = vrot.slane %v725_v13, 1 }
 0x125   : > { %v1135_v10 = vpop.permute.xlu0 %1134  ;;  %v1222_v19 = vsel %vm744_vm4, %v1219_v49, %v1221_v4  ;;  %v1332_v49 = vsel %vm387_vm0, %v4139_v44, %v4435_v30 }
 0x126   : > { %1148 = vrot.lane.b32.xlu1 %v1117_v6, %s3461_s14  ;;  %v1273_v2 = vsel %vm744_vm4, %v874_v16, %v1272_v42  ;;  %v2233_v16 = vld [vmem:[#allocation3 + $0x9] sm:$0xff]  ;;  %v1399_v50 = vsel %vm1391_vm8, %v1382_v56, %v1135_v10  ;;  %v2239_v6 = vld [vmem:[#allocation3 + $0x39] sm:$0xff]  ;;  %v1349_v4 = vsel %vm1340_vm3, %v1332_v49, %v4451_v5  ;;  %v1333_v5 = vsel %vm387_vm0, %v4161_v41, %v4453_v17 }
 0x127   : > { %1068 = vrot.lane.b32.xlu0 %v4070_v53, %s3460_s13  ;;  %v1330_v53 = vsel %vm387_vm0, %v4091_v61, %v4352_v9  ;;  %v4523_v10 = vld [vmem:[#allocation3 + $0x49] sm:$0xff] }
 0x128   : > { %v4462_v33 = vpop.permute.xlu1 %956  ;;  %v1347_v55 = vsel %vm1340_vm3, %v1330_v53, %v4367_v26 }
 0x129   : > { %v4464_v3 = vpop.permute.xlu0 %894  ;;  %v1364_v20 = vsel %vm1357_vm6, %v1347_v55, %v4384_v40 }
 0x12a   : > { %1150 = vrot.lane.b32.xlu1 %v1119_v43, %s3461_s14  ;;  %v1381_v59 = vsel %vm1374_vm7, %v1364_v20, %v4407_v7 }
 0x12b   : > { %1302 = vrot.lane.b32.xlu0 %v875_v37, %s3463_s22  ;;  %v1274_v37 = vrot.slane %v726_v18, 1  ;;  %v1398_v22 = vsel %vm1391_vm8, %v1381_v59, %v1133_v47 }
 0x12c   : > { %v1236_v23 = vpop.permute.xlu1 %1235  ;;  %v1415_v26 = vsel %vm1408_vm9, %v1398_v22, %v1182_v48 }
 0x12d   : > { %v1184_v58 = vpop.permute.xlu0 %1183  ;;  %v1275_v34 = vsel %vm744_vm4, %v1272_v42, %v1274_v37  ;;  %v1432_v40 = vsel %vm1425_vm10, %v1415_v26, %v1236_v23  ;;  %v1366_v23 = vsel %vm1357_vm6, %v1349_v4, %v4462_v33  ;;  %v1350_v33 = vsel %vm1340_vm3, %v1333_v5, %v4464_v3 }
 0x12e   : > { %1199 = vrot.lane.b32.xlu1 %v725_v13, %s3459_s12  ;;  %v1416_v38 = vsel %vm1408_vm9, %v1399_v50, %v1184_v58  ;;  %vm2866_vm4 = vcmask 588800  }
 0x12f   : > { %1197 = vrot.lane.b32.xlu0 %v4394_v15, %s3459_s12  ;;  %v2232_v15 = vld [vmem:[#allocation3 + $0x1] sm:$0xff] }
 0x130   : > { %v1055_v61 = vpop.permute.xlu1 %1054 }
 0x131   : > { %v4482_v9 = vpop.permute.xlu0 %958  ;;  %v1383_v53 = vsel %vm1374_vm7, %v1366_v23, %v1055_v61  ;;  %v4582_v23 = vpop.f32.mrf.mxu1 }
 0x132   : > { %1253 = vrot.lane.b32.xlu1 %v1222_v19, %s3462_s21  ;;  %v1367_v37 = vsel %vm1357_vm6, %v1350_v33, %v4482_v9 }
 0x133   : > { %1251 = vrot.lane.b32.xlu0 %v1220_v14, %s3462_s21 }
 0x134   : > { %v1289_v25 = vpop.permute.xlu1 %1288 }
 0x135   : > { %v1238_v8 = vpop.permute.xlu0 %1237  ;;  %v1449_v7 = vsel %vm1442_vm11, %v1432_v40, %v1289_v25 }
 0x136   : > { %1306 = vrot.lane.b32.xlu1 %v1275_v34, %s3463_s22  ;;  %3349 = vmatprep.mubr.msk.f32.mxu1 %vm1660_vm12, %v1449_v7  ;;  %v1433_v11 = vsel %vm1425_vm10, %v1416_v38, %v1238_v8 }
 0x137   : > { %1304 = vrot.lane.b32.xlu0 %v1273_v2, %s3463_s22 }
 0x138   : > { %v1057_v35 = vpop.permute.xlu1 %1056 }
 0x139   : > { %v4506_v51 = vpop.permute.xlu0 %798  ;;  %v1384_v59 = vsel %vm1374_vm7, %v1367_v37, %v1057_v35 }
 0x13a   : > { %2294 = vrot.lane.b32.xlu1 %v2233_v16, %s3456_s28 }
 0x13b   : > { %2292 = vrot.lane.b32.xlu0 %v2232_v15, %s3456_s28  ;;  %v1334_v15 = vsel %vm387_vm0, %v4172_v39, %v4506_v51 }
 0x13c   : > { %v1291_v60 = vpop.permute.xlu1 %1290 }
 0x13d   : > { %v1137_v47 = vpop.permute.xlu0 %1136  ;;  %v1450_v21 = vsel %vm1442_vm11, %v1433_v11, %v1291_v60 }
 0x13e   : > { %3350 = vmatmul.mubr.msk.f32.gmra.mxu1 %vm1660_vm12, %v1450_v21  ;;  %2476 = vrot.lane.b32.xlu1 %v2237_v1, %s3463_s22  ;;  %v1400_v42 = vsel %vm1391_vm8, %v1383_v53, %v1137_v47  ;;  %v4584_v53 = vpop.f32.mrf.mxu1 }
 0x13f   : > { %2356 = vrot.lane.b32.xlu0 %v2248_v36, %s3460_s13 }
 0x140   : > { %v897_v28 = vpop.permute.xlu1 %896 }
 0x141   : > { %v4519_v12 = vpop.permute.xlu0 %800  ;;  %v1351_v16 = vsel %vm1340_vm3, %v1334_v15, %v897_v28 }
 0x142   : > { %2480 = vrot.lane.b32.xlu1 %v2239_v6, %s3463_s22  ;;  %v1335_v39 = vsel %vm387_vm0, %v4205_v62, %v4519_v12 }
 0x143   : > { %2472 = vrot.lane.b32.xlu0 %v2235_v24, %s3463_s22 }
 0x144   : > { %v1186_v46 = vpop.permute.xlu1 %1185 }
 0x145   : > { %v1139_v48 = vpop.permute.xlu0 %1138  ;;  %v1417_v55 = vsel %vm1408_vm9, %v1400_v42, %v1186_v46 }
 0x146   : > { %2484 = vrot.lane.b32.xlu1 %v4523_v10, %s3463_s22  ;;  %v1401_v22 = vsel %vm1391_vm8, %v1384_v59, %v1139_v48 }
 0x147   : > { %2298 = vrot.lane.b32.xlu0 %v2235_v24, %s3456_s28 }
 0x148   : > { %v961_v43 = vpop.permute.xlu1 %960 }
 0x149   : > { %v899_v57 = vpop.permute.xlu0 %898  ;;  %v1368_v32 = vsel %vm1357_vm6, %v1351_v16, %v961_v43 }
 0x14a   : > { %v1352_v51 = vsel %vm1340_vm3, %v1335_v39, %v899_v57 }
 0x14b   : > { %2622 = vrot.lane.b32.xlu0 %v2237_v1, %s3464_s25 }
 0x14c   : > { %v1240_v63 = vpop.permute.xlu1 %1239 }
 0x14d   : > { %v1188_v13 = vpop.permute.xlu0 %1187  ;;  %v1434_v44 = vsel %vm1425_vm10, %v1417_v55, %v1240_v63 }
 0x14e   : > { %v1418_v41 = vsel %vm1408_vm9, %v1401_v22, %v1188_v13 }
 0x14f   : > { %2302 = vrot.lane.b32.xlu0 %v2237_v1, %s3456_s28 }
 0x150   : > { %v1059_v58 = vpop.permute.xlu1 %1058 }
 0x151   : > { %v963_v18 = vpop.permute.xlu0 %962  ;;  %v1385_v50 = vsel %vm1374_vm7, %v1368_v32, %v1059_v58 }
 0x152   : > { %v1369_v1 = vsel %vm1357_vm6, %v1352_v51, %v963_v18  ;;  %v4634_v51 = vld [vmem:[%s5321_s6] ss:$0 sm:$0xff] }
 0x153   : > { %2626 = vrot.lane.b32.xlu0 %v2239_v6, %s3464_s25 }
 0x154   : > { %v1293_v30 = vpop.permute.xlu1 %1292 }
 0x155   : > { %v1242_v19 = vpop.permute.xlu0 %1241  ;;  %v1451_v14 = vsel %vm1442_vm11, %v1434_v44, %v1293_v30 }
 0x156   : > { %3352 = vmatprep.mubr.msk.f32.mxu1 %vm1660_vm12, %v1451_v14  ;;  %v1435_v17 = vsel %vm1425_vm10, %v1418_v41, %v1242_v19  ;;  %v4589_v19 = vpop.f32.mrf.mxu1 }
 0x157   : > { %2306 = vrot.lane.b32.xlu0 %v2239_v6, %s3456_s28 }
 0x158   : > { %v1061_v20 = vpop.permute.xlu1 %1060  ;;  %v4595_v22 = vpop.f32.mrf.mxu1 }
 0x159   : > { %v803_v61 = vpop.permute.xlu0 %802  ;;  %v1386_v6 = vsel %vm1374_vm7, %v1369_v1, %v1061_v20 }
 0x15a   : > { %v1336_v44 = vsel %vm387_vm0, %v4230_v29, %v803_v61 }
 0x15b   : > { %2630 = vrot.lane.b32.xlu0 %v4523_v10, %s3464_s25 }
 0x15c   : > { %v1295_v26 = vpop.permute.xlu1 %1294 }
 0x15d   : > { %v1141_v34 = vpop.permute.xlu0 %1140  ;;  %v1452_v3 = vsel %vm1442_vm11, %v1435_v17, %v1295_v26 }
 0x15e   : > { %3353 = vmatmul.mubr.msk.f32.gmra.mxu1 %vm1660_vm12, %v1452_v3  ;;  %v1402_v38 = vsel %vm1391_vm8, %v1385_v50, %v1141_v34  ;;  %v4603_v3 = vpop.f32.mrf.mxu1 }
 0x160   : > { %v901_v9 = vpop.permute.xlu1 %900  ;;  %v4609_v15 = vpop.f32.mrf.mxu1 }
 0x161   : > { %v805_v2 = vpop.permute.xlu0 %804  ;;  %v1353_v30 = vsel %vm1340_vm3, %v1336_v44, %v901_v9 }
 0x162   : > { %v1337_v26 = vsel %vm387_vm0, %v4289_v52, %v805_v2 }
 0x164   : > { %v1190_v40 = vpop.permute.xlu1 %1189 }
 0x165   : > { %v1143_v25 = vpop.permute.xlu0 %1142  ;;  %v1419_v36 = vsel %vm1408_vm9, %v1402_v38, %v1190_v40 }
 0x166   : > { %v1403_v46 = vsel %vm1391_vm8, %v1386_v6, %v1143_v25 }
 0x168   : > { %v965_v8 = vpop.permute.xlu1 %964 }
 0x169   : > { %v903_v7 = vpop.permute.xlu0 %902  ;;  %v1370_v14 = vsel %vm1357_vm6, %v1353_v30, %v965_v8 }
 0x16a   : > { %v1354_v34 = vsel %vm1340_vm3, %v1337_v26, %v903_v7  ;;  %v2858_v26 = vld [vmem:[%s5324_s9 + $0x40] sm:$0xff] }
 0x16b   : > { %3364 = vmatprep.subr.mxu0 %v2858_v26  ;;  %3408 = vmatprep.subr.mxu1 %v2858_v26 }
 0x16c   : > { %v1244_v45 = vpop.permute.xlu1 %1243  ;;  %3365 = vmatpush3.msra.mxu0 %v2858_v26  ;;  %3417 = vmatpush3.msra.mxu1 %v2858_v26 }
 0x16d   : > { %v1192_v31 = vpop.permute.xlu0 %1191  ;;  %v1436_v11 = vsel %vm1425_vm10, %v1419_v36, %v1244_v45  ;;  %v4622_v36 = vld [vmem:[%s5320_s5] ss:$0 sm:$0xff] }
 0x16e   : > { %v1420_v48 = vsel %vm1408_vm9, %v1403_v46, %v1192_v31 }
 0x170   : > { %v1063_v35 = vpop.permute.xlu1 %1062 }
 0x171   : > { %v967_v56 = vpop.permute.xlu0 %966  ;;  %v1387_v37 = vsel %vm1374_vm7, %v1370_v14, %v1063_v35  ;;  %v4617_v35 = vld [vmem:[%s5319_s4] ss:$0 sm:$0xff] }
 0x172   : > { %v1371_v9 = vsel %vm1357_vm6, %v1354_v34, %v967_v56  ;;  %v2857_v34 = vld [vmem:[%s5324_s9 + $0x38] sm:$0xff] }
 0x173   : > { %3366 = vmatprep.subr.mxu0 %v2857_v34  ;;  %3409 = vmatprep.subr.mxu1 %v2857_v34 }
 0x174   : > { %v1297_v60 = vpop.permute.xlu1 %1296  ;;  %3367 = vmatpush3.msra.mxu0 %v2857_v34  ;;  %3418 = vmatpush3.msra.mxu1 %v2857_v34 }
 0x175   : > { %v1246_v47 = vpop.permute.xlu0 %1245  ;;  %v1453_v21 = vsel %vm1442_vm11, %v1436_v11, %v1297_v60 }
 0x176   : > { %3355 = vmatprep.mubr.msk.f32.mxu1 %vm1660_vm12, %v1453_v21  ;;  %v1437_v43 = vsel %vm1425_vm10, %v1420_v48, %v1246_v47 }
 0x178   : > { %v1065_v24 = vpop.permute.xlu1 %1064 }
 0x179   : > { %v807_v28 = vpop.permute.xlu0 %806  ;;  %v1388_v8 = vsel %vm1374_vm7, %v1371_v9, %v1065_v24  ;;  %v2856_v9 = vld [vmem:[%s5324_s9 + $0x30] sm:$0xff] }
 0x17a   : > { %v1338_v11 = vsel %vm387_vm0, %v4312_v27, %v807_v28  ;;  %3368 = vmatprep.subr.mxu0 %v2856_v9  ;;  %3410 = vmatprep.subr.mxu1 %v2856_v9 }
 0x17b   : > { %3369 = vmatpush3.msra.mxu0 %v2856_v9  ;;  %3419 = vmatpush3.msra.mxu1 %v2856_v9 }
 0x17c   : > { %v1299_v63 = vpop.permute.xlu1 %1298 }
 0x17d   : > { %v1145_v13 = vpop.permute.xlu0 %1144  ;;  %v1454_v62 = vsel %vm1442_vm11, %v1437_v43, %v1299_v63 }
 0x17e   : > { %3356 = vmatmul.mubr.msk.f32.gmra.mxu1 %vm1660_vm12, %v1454_v62  ;;  %v1404_v20 = vsel %vm1391_vm8, %v1387_v37, %v1145_v13 }
 0x180   : > { %v905_v12 = vpop.permute.xlu1 %904 }
 0x181   : > { %v809_v57 = vpop.permute.xlu0 %808  ;;  %v1355_v21 = vsel %vm1340_vm3, %v1338_v11, %v905_v12  ;;  %v2850_v11 = vld [vmem:[%s5324_s9] sm:$0xff] }
 0x182   : > { %v1339_v60 = vsel %vm387_vm0, %v4374_v54, %v809_v57  ;;  %vm2799_vm0 = vcmask 392192  }
 0x184   : > { %v1194_v49 = vpop.permute.xlu1 %1193 }
 0x185   : > { %v1147_v4 = vpop.permute.xlu0 %1146  ;;  %v1421_v59 = vsel %vm1408_vm9, %v1404_v20, %v1194_v49 }
 0x186   : > { %v1405_v45 = vsel %vm1391_vm8, %v1388_v8, %v1147_v4  ;;  %v2855_v8 = vld [vmem:[%s5324_s9 + $0x28] sm:$0xff] }
 0x187   : > { %3370 = vmatprep.subr.mxu0 %v2855_v8  ;;  %3411 = vmatprep.subr.mxu1 %v2855_v8 }
 0x188   : > { %v969_v58 = vpop.permute.xlu1 %968  ;;  %3371 = vmatpush3.msra.mxu0 %v2855_v8  ;;  %3420 = vmatpush3.msra.mxu1 %v2855_v8 }
 0x189   : > { %v907_v18 = vpop.permute.xlu0 %906  ;;  %v1372_v1 = vsel %vm1357_vm6, %v1355_v21, %v969_v58 }
 0x18a   : > { %v1356_v39 = vsel %vm1340_vm3, %v1339_v60, %v907_v18 }
 0x18c   : > { %v1248_v42 = vpop.permute.xlu1 %1247 }
 0x18d   : > { %v1196_v55 = vpop.permute.xlu0 %1195  ;;  %v1438_v41 = vsel %vm1425_vm10, %v1421_v59, %v1248_v42 }
 0x18e   : > { %v1422_v31 = vsel %vm1408_vm9, %v1405_v45, %v1196_v55  ;;  %v2854_v45 = vld [vmem:[%s5324_s9 + $0x20] sm:$0xff] }
 0x18f   : > { %3372 = vmatprep.subr.mxu0 %v2854_v45  ;;  %3412 = vmatprep.subr.mxu1 %v2854_v45 }
 0x190   : > { %v1067_v5 = vpop.permute.xlu1 %1066  ;;  %3373 = vmatpush3.msra.mxu0 %v2854_v45  ;;  %3421 = vmatpush3.msra.mxu1 %v2854_v45 }
 0x191   : > { %v971_v33 = vpop.permute.xlu0 %970  ;;  %v1389_v54 = vsel %vm1374_vm7, %v1372_v1, %v1067_v5 }
 0x192   : > { %v1373_v24 = vsel %vm1357_vm6, %v1356_v39, %v971_v33 }
 0x194   : > { %v1301_v17 = vpop.permute.xlu1 %1300 }
 0x195   : > { %v1250_v29 = vpop.permute.xlu0 %1249  ;;  %v1455_v61 = vsel %vm1442_vm11, %v1438_v41, %v1301_v17 }
 0x196   : > { %3358 = vmatprep.mubr.msk.f32.mxu1 %vm1660_vm12, %v1455_v61  ;;  %v1439_v52 = vsel %vm1425_vm10, %v1422_v31, %v1250_v29  ;;  %v2853_v31 = vld [vmem:[%s5324_s9 + $0x18] sm:$0xff] }
 0x197   : > { %3374 = vmatprep.subr.mxu0 %v2853_v31  ;;  %3413 = vmatprep.subr.mxu1 %v2853_v31 }
 0x198   : > { %v1149_v40 = vpop.permute.xlu1 %1148  ;;  %3375 = vmatpush3.msra.mxu0 %v2853_v31  ;;  %3422 = vmatpush3.msra.mxu1 %v2853_v31 }
 0x199   : > { %v1069_v25 = vpop.permute.xlu0 %1068  ;;  %v1406_v48 = vsel %vm1391_vm8, %v1389_v54, %v1149_v40 }
 0x19a   : > { %v1390_v46 = vsel %vm1374_vm7, %v1373_v24, %v1069_v25 }
 0x19c   : > { %v1151_v2 = vpop.permute.xlu1 %1150 }
 0x19d   : > { %v1303_v16 = vpop.permute.xlu0 %1302  ;;  %v1407_v43 = vsel %vm1391_vm8, %v1390_v46, %v1151_v2 }
 0x19e   : > { %v1456_v7 = vsel %vm1442_vm11, %v1439_v52, %v1303_v16  ;;  %v3342_v32 = vpop.f32.mrf.mxu1 }
 0x19f   : > { %3359 = vmatmul.mubr.msk.f32.gmra.mxu1 %vm1660_vm12, %v1456_v7  ;;  %v2852_v7 = vld [vmem:[%s5324_s9 + $0x10] sm:$0xff] }
 0x1a0   : > { %v1200_v56 = vpop.permute.xlu1 %1199  ;;  %v1778_v38 = vpop.f32.mrf.mxu1  ;;  %3376 = vmatprep.subr.mxu0 %v2852_v7  ;;  %3414 = vmatprep.subr.mxu1 %v2852_v7 }
 0x1a1   : > { %v1198_v50 = vpop.permute.xlu0 %1197  ;;  %v1779_v47 = vadd.f32 %v4617_v35, %v1778_v38  ;;  %v1424_v13 = vsel %vm1408_vm9, %v1407_v43, %v1200_v56  ;;  %3377 = vmatpush3.msra.mxu0 %v2852_v7  ;;  %3423 = vmatpush3.msra.mxu1 %v2852_v7 }
 0x1a2   : > { %v1423_v62 = vsel %vm1408_vm9, %v1406_v48, %v1198_v50  ;;  %v2851_v50 = vld [vmem:[%s5324_s9 + $0x8] sm:$0xff] }
 0x1a3   : > { %v1864_v27 = vmul.f32 %v4622_v36, %v1779_v47  ;;  %3378 = vmatprep.subr.mxu0 %v2851_v50  ;;  %3415 = vmatprep.subr.mxu1 %v2851_v50 }
 0x1a4   : > { %v1254_v28 = vpop.permute.xlu1 %1253  ;;  %3379 = vmatpush3.msra.mxu0 %v2851_v50  ;;  %3424 = vmatpush3.msra.mxu1 %v2851_v50 }
 0x1a5   : > { %v1252_v6 = vpop.permute.xlu0 %1251  ;;  %v1887_v63 = vadd.f32 %v4634_v51, %v1864_v27  ;;  %v1441_v57 = vsel %vm1425_vm10, %v1424_v13, %v1254_v28  ;;  %3380 = vmatprep.subr.mxu0 %v2850_v11  ;;  %3416 = vmatprep.subr.mxu1 %v2850_v11 }
 0x1a6   : > { %v1440_v49 = vsel %vm1425_vm10, %v1423_v62, %v1252_v6  ;;  %3381 = vmatpush3.msra.mxu0 %v2850_v11  ;;  %3425 = vmatpush3.msra.mxu1 %v2850_v11 }
 0x1a7   : > { %v1903_v12 = vmax.f32 %v1887_v63, 0.0 }
 0x1a8   : > { %v1307_v4 = vpop.permute.xlu1 %1306 }
 0x1a9   : > { %v1305_v58 = vpop.permute.xlu0 %1304  ;;  %v1458_v18 = vsel %vm1442_vm11, %v1441_v57, %v1307_v4  ;;  %2200 = vst.msk [vmem:[#allocation3 + $0x11] sm:$0xff] %vm1340_vm3, %v1903_v12 }
 0x1aa   : > { %v1457_v42 = vsel %vm1442_vm11, %v1440_v49, %v1305_v58 }
 0x1ab   : > { %3361 = vmatprep.mubr.msk.f32.mxu1 %vm1660_vm12, %v1457_v42 }
 0x1ac   : > { %3362 = vmatmul.mubr.msk.f32.gmra.mxu1 %vm1660_vm12, %v1458_v18  ;;  %v4750_v62 = vpop.permute.xlu1 %2294 }
 0x1ad   : > { %v4744_v43 = vpop.permute.xlu0 %2292 }
 0x1b0   : > { %v2249_v55 = vld [vmem:[#allocation3 + $0xa] sm:$0xff]  ;;  %v4658_v30 = vld [vmem:[#allocation3 + $0x18] sm:$0xff]  ;;  %v4761_v49 = vpop.permute.xlu1 %2476 }
 0x1b1   : > { %v4653_v44 = vld [vmem:[#allocation3 + $0x10] sm:$0xff]  ;;  %2358 = vrot.lane.b32.xlu1 %v2249_v55, %s3460_s13  ;;  %v4748_v63 = vpop.permute.xlu0 %2356 }
 0x1b2   : > { %2420 = vrot.lane.b32.xlu0 %v4653_v44, %s3459_s12  ;;  %v2234_v14 = vld [vmem:[#allocation3 + $0x11] sm:$0xff] }
 0x1b3   : > { %v2250_v5 = vld [vmem:[#allocation3 + $0x12] sm:$0xff] }
 0x1b4   : > { %v4771_v18 = vpop.permute.xlu1 %2480 }
 0x1b5   : > { %2422 = vrot.lane.b32.xlu1 %v4658_v30, %s3459_s12  ;;  %v4756_v57 = vpop.permute.xlu0 %2472 }
 0x1b6   : > { %2470 = vrot.lane.b32.xlu0 %v2234_v14, %s3463_s22 }
 0x1b9   : > { %2296 = vrot.lane.b32.xlu1 %v2234_v14, %s3456_s28  ;;  %v4769_v58 = vpop.permute.xlu0 %2298 }
 0x1bd   : > { %2520 = vrot.lane.b32.xlu1 %v2250_v5, %s3465_s26  ;;  %v4776_v14 = vpop.permute.xlu0 %2622 }
 0x1be   : > { %v3345_v33 = vpop.f32.mrf.mxu1 }
 0x1c0   : > { %v1788_v37 = vpop.f32.mrf.mxu1 }
 0x1c1   : > { %v1789_v20 = vadd.f32 %v4617_v35, %v1788_v37  ;;  %2360 = vrot.lane.b32.xlu1 %v2250_v5, %s3460_s13  ;;  %v4781_v37 = vpop.permute.xlu1 %2484 }
 0x1c3   : > { %v1866_v59 = vmul.f32 %v4622_v36, %v1789_v20 }
 0x1c5   : > { %v1889_v41 = vadd.f32 %v4634_v51, %v1866_v59 }
 0x1c7   : > { %v1905_v17 = vmax.f32 %v1889_v41, 0.0  ;;  %v4784_v41 = vpop.permute.xlu0 %2302 }
 0x1c9   : > { %2202 = vst.msk [vmem:[#allocation3 + $0x21] sm:$0xff] %vm1340_vm3, %v1905_v17 }
 0x1cb   : > { %v4791_v34 = vpop.permute.xlu0 %2626 }
 0x1d0   : > { %v4670_v29 = vld [vmem:[#allocation3 + $0x20] sm:$0xff]  ;;  %v4687_v40 = vld [vmem:[#allocation3 + $0x28] sm:$0xff] }
 0x1d1   : > { %v2251_v61 = vld [vmem:[#allocation3 + $0x1a] sm:$0xff]  ;;  %2570 = vrot.lane.b32.xlu1 %v4670_v29, %s3466_s27  ;;  %v2252_v16 = vld [vmem:[#allocation3 + $0x22] sm:$0xff] }
 0x1d2   : > { %2522 = vrot.lane.b32.xlu0 %v2251_v61, %s3465_s26  ;;  %v2236_v25 = vld [vmem:[#allocation3 + $0x21] sm:$0xff] }
 0x1d5   : > { %2424 = vrot.lane.b32.xlu1 %v4670_v29, %s3459_s12 }
 0x1d6   : > { %2362 = vrot.lane.b32.xlu0 %v2251_v61, %s3460_s13 }
 0x1d9   : > { %2620 = vrot.lane.b32.xlu1 %v2236_v25, %s3464_s25 }
 0x1da   : > { %2572 = vrot.lane.b32.xlu0 %v4687_v40, %s3466_s27 }
 0x1dd   : > { %2474 = vrot.lane.b32.xlu1 %v2236_v25, %s3463_s22 }
 0x1de   : > { %2426 = vrot.lane.b32.xlu0 %v4687_v40, %s3459_s12  ;;  %v3348_v52 = vpop.f32.mrf.mxu1 }
 0x1e0   : > { %v1798_v2 = vpop.f32.mrf.mxu1 }
 0x1e1   : > { %v1799_v32 = vadd.f32 %v4617_v35, %v1798_v2  ;;  %2670 = vrot.lane.b32.xlu1 %v2252_v16, %s3467_s29 }
 0x1e2   : > { %2300 = vrot.lane.b32.xlu0 %v2236_v25, %s3456_s28  ;;  %v4799_v25 = vpop.permute.xlu0 %2306 }
 0x1e3   : > { %v1868_v56 = vmul.f32 %v4622_v36, %v1799_v32 }
 0x1e5   : > { %v1891_v38 = vadd.f32 %v4634_v51, %v1868_v56  ;;  %2364 = vrot.lane.b32.xlu1 %v2252_v16, %s3460_s13  ;;  %v2243_v56 = vld [vmem:[#allocation3 + $0x59] sm:$0xff] }
 0x1e6   : > { %2524 = vrot.lane.b32.xlu0 %v2252_v16, %s3465_s26  ;;  %v4803_v45 = vpop.permute.xlu0 %2630 }
 0x1e7   : > { %v1907_v60 = vmax.f32 %v1891_v38, 0.0 }
 0x1e9   : > { %2204 = vst.msk [vmem:[#allocation3 + $0x31] sm:$0xff] %vm1340_vm3, %v1907_v60 }
 0x1f0   : > { %v2253_v47 = vld [vmem:[#allocation3 + $0x2a] sm:$0xff]  ;;  %v4728_v39 = vld [vmem:[#allocation3 + $0x38] sm:$0xff] }
 0x1f1   : > { %2672 = vrot.lane.b32.xlu1 %v2253_v47, %s3467_s29  ;;  %2526 = vrot.lane.b32.xlu0 %v2253_v47, %s3465_s26  ;;  %v4723_v21 = vld [vmem:[#allocation3 + $0x30] sm:$0xff] }
 0x1f2   : > { %v2238_v1 = vld [vmem:[#allocation3 + $0x31] sm:$0xff] }
 0x1f3   : > { %v2254_v46 = vld [vmem:[#allocation3 + $0x32] sm:$0xff] }
 0x1f5   : > { %2574 = vrot.lane.b32.xlu1 %v4723_v21, %s3466_s27  ;;  %2366 = vrot.lane.b32.xlu0 %v2253_v47, %s3460_s13 }
 0x1f9   : > { %2428 = vrot.lane.b32.xlu1 %v4723_v21, %s3459_s12  ;;  %2576 = vrot.lane.b32.xlu0 %v4728_v39, %s3466_s27 }
 0x1fd   : > { %2624 = vrot.lane.b32.xlu1 %v2238_v1, %s3464_s25  ;;  %2430 = vrot.lane.b32.xlu0 %v4728_v39, %s3459_s12 }
 0x1fe   : > { %v3351_v24 = vpop.f32.mrf.mxu1 }
 0x200   : > { %v1808_v27 = vpop.f32.mrf.mxu1 }
 0x201   : > { %v1809_v28 = vadd.f32 %v4617_v35, %v1808_v27  ;;  %2478 = vrot.lane.b32.xlu1 %v2238_v1, %s3463_s22  ;;  %2304 = vrot.lane.b32.xlu0 %v2238_v1, %s3456_s28 }
 0x203   : > { %v1870_v6 = vmul.f32 %v4622_v36, %v1809_v28  ;;  %v2216_v28 = vld [vmem:[#allocation3] sm:$0xff] }
 0x205   : > { %v1893_v54 = vadd.f32 %v4634_v51, %v1870_v6  ;;  %2674 = vrot.lane.b32.xlu1 %v2254_v46, %s3467_s29  ;;  %2528 = vrot.lane.b32.xlu0 %v2254_v46, %s3465_s26 }
 0x207   : > { %v1909_v48 = vmax.f32 %v1893_v54, 0.0 }
 0x209   : > { %2206 = vst.msk [vmem:[#allocation3 + $0x41] sm:$0xff] %vm1340_vm3, %v1909_v48  ;;  %2368 = vrot.lane.b32.xlu1 %v2254_v46, %s3460_s13  ;;  %v2718_v48 = vsel %vm1340_vm3, %v2216_v28, %v4744_v43 }
 0x210   : > { %v2255_v13 = vld [vmem:[#allocation3 + $0x3a] sm:$0xff]  ;;  %v4763_v4 = vld [vmem:[#allocation3 + $0x48] sm:$0xff] }
 0x211   : > { %2676 = vrot.lane.b32.xlu1 %v2255_v13, %s3467_s29  ;;  %2530 = vrot.lane.b32.xlu0 %v2255_v13, %s3465_s26  ;;  %v4754_v12 = vld [vmem:[#allocation3 + $0x40] sm:$0xff] }
 0x212   : > { %v2240_v42 = vld [vmem:[#allocation3 + $0x41] sm:$0xff] }
 0x213   : > { %v2256_v59 = vld [vmem:[#allocation3 + $0x42] sm:$0xff] }
 0x215   : > { %2578 = vrot.lane.b32.xlu1 %v4754_v12, %s3466_s27  ;;  %2370 = vrot.lane.b32.xlu0 %v2255_v13, %s3460_s13 }
 0x219   : > { %2432 = vrot.lane.b32.xlu1 %v4754_v12, %s3459_s12  ;;  %2580 = vrot.lane.b32.xlu0 %v4763_v4, %s3466_s27 }
 0x21d   : > { %2628 = vrot.lane.b32.xlu1 %v2240_v42, %s3464_s25  ;;  %2434 = vrot.lane.b32.xlu0 %v4763_v4, %s3459_s12 }
 0x21e   : > { %v3354_v55 = vpop.f32.mrf.mxu1 }
 0x220   : > { %v1818_v5 = vpop.f32.mrf.mxu1 }
 0x221   : > { %v1819_v33 = vadd.f32 %v4617_v35, %v1818_v5  ;;  %2482 = vrot.lane.b32.xlu1 %v2240_v42, %s3463_s22  ;;  %2308 = vrot.lane.b32.xlu0 %v2240_v42, %s3456_s28  ;;  %v2734_v42 = vsel %vm1374_vm7, %v2718_v48, %v4748_v63 }
 0x223   : > { %v1872_v20 = vmul.f32 %v4622_v36, %v1819_v33  ;;  %v4789_v26 = vpop.permute.xlu1 %2358 }
 0x224   : > { %v2421_v2 = vpop.permute.xlu0 %2420 }
 0x225   : > { %v1895_v17 = vadd.f32 %v4634_v51, %v1872_v20  ;;  %2678 = vrot.lane.b32.xlu1 %v2256_v59, %s3467_s29  ;;  %2532 = vrot.lane.b32.xlu0 %v2256_v59, %s3465_s26  ;;  %v2750_v5 = vsel %vm1408_vm9, %v2734_v42, %v2421_v2  ;;  %v2217_v2 = vld [vmem:[#allocation3 + $0x8] sm:$0xff] }
 0x227   : > { %v1911_v61 = vmax.f32 %v1895_v17, 0.0  ;;  %v4797_v9 = vpop.permute.xlu1 %2422 }
 0x228   : > { %v2471_v50 = vpop.permute.xlu0 %2470 }
 0x229   : > { %2208 = vst.msk [vmem:[#allocation3 + $0x51] sm:$0xff] %vm1340_vm3, %v1911_v61  ;;  %2372 = vrot.lane.b32.xlu1 %v2256_v59, %s3460_s13  ;;  %2310 = vrot.lane.b32.xlu0 %v4523_v10, %s3456_s28  ;;  %v2766_v59 = vsel %vm1442_vm11, %v2750_v5, %v2471_v50 }
 0x22b   : > { %v4805_v31 = vpop.permute.xlu1 %2296 }
 0x22f   : > { %v2521_v16 = vpop.permute.xlu1 %2520 }
 0x230   : > { %v2257_v8 = vld [vmem:[#allocation3 + $0x4a] sm:$0xff]  ;;  %v4812_v10 = vld [vmem:[#allocation3 + $0x58] sm:$0xff]  ;;  %v2783_v43 = vsel %vm2782_vm15, %v2766_v59, %v2521_v16  ;;  %v2719_v16 = vsel %vm1340_vm3, %v2217_v2, %v4750_v62 }
 0x231   : > { %2680 = vrot.lane.b32.xlu1 %v2257_v8, %s3467_s29  ;;  %2534 = vrot.lane.b32.xlu0 %v2257_v8, %s3465_s26  ;;  %v4807_v52 = vld [vmem:[#allocation3 + $0x50] sm:$0xff] }
 0x232   : > { %v2242_v7 = vld [vmem:[#allocation3 + $0x51] sm:$0xff] }
 0x233   : > { %v4822_v38 = vpop.permute.xlu1 %2360  ;;  %v2258_v24 = vld [vmem:[#allocation3 + $0x52] sm:$0xff] }
 0x235   : > { %2582 = vrot.lane.b32.xlu1 %v4807_v52, %s3466_s27  ;;  %2374 = vrot.lane.b32.xlu0 %v2257_v8, %s3460_s13 }
 0x239   : > { %2436 = vrot.lane.b32.xlu1 %v4807_v52, %s3459_s12  ;;  %2584 = vrot.lane.b32.xlu0 %v4812_v10, %s3466_s27 }
 0x23d   : > { %2632 = vrot.lane.b32.xlu1 %v2242_v7, %s3464_s25  ;;  %2438 = vrot.lane.b32.xlu0 %v4812_v10, %s3459_s12 }
 0x23e   : > { %v3357_v32 = vpop.f32.mrf.mxu1 }
 0x240   : > { %v1828_v11 = vpop.f32.mrf.mxu1 }
 0x241   : > { %v1829_v60 = vadd.f32 %v4617_v35, %v1828_v11  ;;  %2486 = vrot.lane.b32.xlu1 %v2242_v7, %s3463_s22  ;;  %2634 = vrot.lane.b32.xlu0 %v2243_v56, %s3464_s25  ;;  %v2735_v11 = vsel %vm1374_vm7, %v2719_v16, %v4789_v26 }
 0x243   : > { %v1874_v0 = vmul.f32 %v4622_v36, %v1829_v60  ;;  %v2571_v47 = vpop.permute.xlu1 %2570  ;;  %v2751_v60 = vsel %vm1408_vm9, %v2735_v11, %v4797_v9 }
 0x244   : > { %v2523_v1 = vpop.permute.xlu0 %2522  ;;  %v2800_v63 = vsel %vm2799_vm0, %v2783_v43, %v2571_v47  ;;  %v2767_v47 = vsel %vm1442_vm11, %v2751_v60, %v4756_v57 }
 0x245   : > { %v1897_v27 = vadd.f32 %v4634_v51, %v1874_v0  ;;  %2682 = vrot.lane.b32.xlu1 %v2258_v24, %s3467_s29  ;;  %2312 = vrot.lane.b32.xlu0 %v2242_v7, %s3456_s28  ;;  %v2245_v0 = vld [vmem:[#allocation3 + $0x69] sm:$0xff] }
 0x247   : > { %v1913_v6 = vmax.f32 %v1897_v27, 0.0  ;;  %v4831_v54 = vpop.permute.xlu1 %2424  ;;  %v2784_v27 = vsel %vm2782_vm15, %v2767_v47, %v2523_v1  ;;  %v2720_v47 = vsel %vm1340_vm3, %v4653_v44, %v4805_v31 }
 0x248   : > { %v4833_v46 = vpop.permute.xlu0 %2362 }
 0x249   : > { %2210 = vst.msk [vmem:[#allocation3 + $0x61] sm:$0xff] %vm1340_vm3, %v1913_v6  ;;  %2488 = vrot.lane.b32.xlu1 %v2243_v56, %s3463_s22  ;;  %2536 = vrot.lane.b32.xlu0 %v2258_v24, %s3465_s26 }
 0x24b   : > { %v2621_v13 = vpop.permute.xlu1 %2620 }
 0x24c   : > { %v2573_v55 = vpop.permute.xlu0 %2572  ;;  %v2817_v17 = vsel %vm2816_vm1, %v2800_v63, %v2621_v13 }
 0x24d   : > { %2314 = vrot.lane.b32.xlu0 %v2243_v56, %s3456_s28  ;;  %v2801_v9 = vsel %vm2799_vm0, %v2784_v27, %v2573_v55 }
 0x24e   : > { %v2818_v57 = vsel %vm2816_vm1, %v2801_v9, %v4776_v14 }
 0x24f   : > { %v4844_v33 = vpop.permute.xlu1 %2474 }
 0x250   : > { %v2259_v20 = vld [vmem:[#allocation3 + $0x5a] sm:$0xff]  ;;  %v4852_v61 = vpop.permute.xlu0 %2426  ;;  %v4862_v56 = vld [vmem:[#allocation3 + $0x68] sm:$0xff] }
 0x251   : > { %2684 = vrot.lane.b32.xlu1 %v2259_v20, %s3467_s29  ;;  %2538 = vrot.lane.b32.xlu0 %v2259_v20, %s3465_s26  ;;  %v4860_v32 = vld [vmem:[#allocation3 + $0x60] sm:$0xff] }
 0x252   : > { %v2244_v6 = vld [vmem:[#allocation3 + $0x61] sm:$0xff] }
 0x253   : > { %v2671_v8 = vpop.permute.xlu1 %2670  ;;  %v2260_v63 = vld [vmem:[#allocation3 + $0x62] sm:$0xff] }
 0x254   : > { %v2834_v7 = vsel %vm2833_vm2, %v2817_v17, %v2671_v8  ;;  %v4868_v50 = vpop.permute.xlu0 %2300 }
 0x255   : > { %2376 = vrot.lane.b32.xlu1 %v2258_v24, %s3460_s13  ;;  %2378 = vrot.lane.b32.xlu0 %v2259_v20, %s3460_s13 }
 0x256   : > { %3382 = vmatprep.mubr.msk.f32.mxu0 %vm2866_vm4, %v2834_v7 }
 0x257   : > { %v4880_v24 = vpop.permute.xlu1 %2364 }
 0x258   : > { %v2525_v28 = vpop.permute.xlu0 %2524 }
 0x259   : > { %2586 = vrot.lane.b32.xlu1 %v4860_v32, %s3466_s27  ;;  %2588 = vrot.lane.b32.xlu0 %v4862_v56, %s3466_s27 }
 0x25d   : > { %2440 = vrot.lane.b32.xlu1 %v4860_v32, %s3459_s12  ;;  %2442 = vrot.lane.b32.xlu0 %v4862_v56, %s3459_s12 }
 0x25f   : > { %v3360_v62 = vpop.f32.mrf.mxu1 }
 0x261   : > { %v1838_v26 = vpop.f32.mrf.mxu1  ;;  %2636 = vrot.lane.b32.xlu1 %v2244_v6, %s3464_s25  ;;  %2638 = vrot.lane.b32.xlu0 %v2245_v0, %s3464_s25 }
 0x262   : > { %v1839_v48 = vadd.f32 %v4617_v35, %v1838_v26  ;;  %v4913_v26 = vld [vmem:[#allocation3 + $0x79] sm:$0xff] }
 0x263   : > { %v2673_v42 = vpop.permute.xlu1 %2672  ;;  %v2527_v5 = vpop.permute.xlu0 %2526 }
 0x264   : > { %v1876_v13 = vmul.f32 %v4622_v36, %v1839_v48  ;;  %v2835_v20 = vsel %vm2833_vm2, %v2818_v57, %v2673_v42 }
 0x265   : > { %2490 = vrot.lane.b32.xlu1 %v2244_v6, %s3463_s22  ;;  %2316 = vrot.lane.b32.xlu0 %v2244_v6, %s3456_s28 }
 0x266   : > { %v1899_v1 = vadd.f32 %v4634_v51, %v1876_v13  ;;  %3383 = vmatmul.mubr.msk.f32.vlgmr.msra.gmra.mxu0 %vm2866_vm4, %v2835_v20 }
 0x267   : > { %v2575_v59 = vpop.permute.xlu1 %2574  ;;  %v4895_v43 = vpop.permute.xlu0 %2366 }
 0x268   : > { %v1915_v55 = vmax.f32 %v1899_v1, 0.0 }
 0x269   : > { %2686 = vrot.lane.b32.xlu1 %v2260_v63, %s3467_s29  ;;  %2492 = vrot.lane.b32.xlu0 %v2245_v0, %s3463_s22 }
 0x26a   : > { %2212 = vst.msk [vmem:[#allocation3 + $0x71] sm:$0xff] %vm1340_vm3, %v1915_v55 }
 0x26b   : > { %v4900_v17 = vpop.permute.xlu1 %2428  ;;  %v2577_v8 = vpop.permute.xlu0 %2576 }
 0x26c   : > { %v3363_v14 = vpop.f32.mrf.mxu1 }
 0x26e   : > { %v1848_v2 = vpop.f32.mrf.mxu1 }
 0x26f   : > { %v1849_v7 = vadd.f32 %v4617_v35, %v1848_v2  ;;  %v2625_v11 = vpop.permute.xlu1 %2624  ;;  %v2736_v35 = vsel %vm1374_vm7, %v2720_v47, %v4822_v38 }
 0x270   : > { %v2752_v6 = vsel %vm1408_vm9, %v2736_v35, %v4831_v54  ;;  %v2722_v35 = vsel %vm1340_vm3, %v4670_v29, %v4868_v50  ;;  %v2267_v50 = vld [vmem:[#allocation3 + $0x89] sm:$0xff] }
 0x271   : > { %v1878_v16 = vmul.f32 %v4622_v36, %v1849_v7  ;;  %v2261_v60 = vld [vmem:[#allocation3 + $0x6a] sm:$0xff]  ;;  %v4917_v36 = vpop.permute.xlu0 %2430  ;;  %v2768_v13 = vsel %vm1442_vm11, %v2752_v6, %v4844_v33  ;;  %v4930_v54 = vld [vmem:[#allocation3 + $0x72] sm:$0xff]  ;;  %v2721_v33 = vsel %vm1340_vm3, %v4658_v30, %v4769_v58  ;;  %v2738_v6 = vsel %vm1374_vm7, %v2722_v35, %v4880_v24 }
 0x272   : > { %v4904_v62 = vld [vmem:[#allocation3 + $0x71] sm:$0xff]  ;;  %2688 = vrot.lane.b32.xlu0 %v2261_v60, %s3467_s29 }
 0x273   : > { %2320 = vrot.lane.b32.xlu1 %v4904_v62, %s3456_s28  ;;  %v1901_v27 = vadd.f32 %v4634_v51, %v1878_v16  ;;  %v2479_v48 = vpop.permute.xlu1 %2478  ;;  %v2785_v51 = vsel %vm2782_vm15, %v2768_v13, %v2525_v28  ;;  %v2737_v28 = vsel %vm1374_vm7, %v2721_v33, %v4833_v46  ;;  %v4946_v20 = vld [vmem:[#allocation3 + $0x70] sm:$0xff]  ;;  %v4973_v16 = vld [vmem:[#allocation3 + $0x78] sm:$0xff] }
 0x274   : > { %v2802_v44 = vsel %vm2799_vm0, %v2785_v51, %v2575_v59  ;;  %v2753_v1 = vsel %vm1408_vm9, %v2737_v28, %v4852_v61 }
 0x275   : > { %v1917_v9 = vmax.f32 %v1901_v27, 0.0  ;;  %v2819_v31 = vsel %vm2816_vm1, %v2802_v44, %v2625_v11  ;;  %v4935_v42 = vpop.permute.xlu0 %2304  ;;  %v2769_v30 = vsel %vm1442_vm11, %v2753_v1, %v4761_v49 }
 0x276   : > { %2322 = vrot.lane.b32.xlu0 %v4913_v26, %s3456_s28  ;;  %v2786_v58 = vsel %vm2782_vm15, %v2769_v30, %v2527_v5 }
 0x277   : > { %2540 = vrot.lane.b32.xlu1 %v2260_v63, %s3465_s26  ;;  %2214 = vst.msk [vmem:[#allocation3 + $0x81] sm:$0xff] %vm1340_vm3, %v1917_v9  ;;  %v2675_v38 = vpop.permute.xlu1 %2674  ;;  %v2803_v46 = vsel %vm2799_vm0, %v2786_v58, %v2577_v8  ;;  %v2754_v9 = vsel %vm1408_vm9, %v2738_v6, %v4900_v17 }
 0x278   : > { %v2836_v57 = vsel %vm2833_vm2, %v2819_v31, %v2675_v38  ;;  %v2770_v44 = vsel %vm1442_vm11, %v2754_v9, %v2479_v48  ;;  %v2723_v48 = vsel %vm1340_vm3, %v4687_v40, %v4784_v41 }
 0x279   : > { %3385 = vmatprep.mubr.msk.f32.mxu0 %vm2866_vm4, %v2836_v57 }
 0x27a   : > { %2384 = vrot.lane.b32.xlu0 %v4930_v54, %s3460_s13 }
 0x27b   : > { %2318 = vrot.lane.b32.xlu1 %v2245_v0, %s3456_s28  ;;  %v2529_v0 = vpop.permute.xlu0 %2528  ;;  %v4954_v55 = vpop.permute.xlu1 %2368 }
 0x27c   : > { %v2787_v31 = vsel %vm2782_vm15, %v2770_v44, %v2529_v0  ;;  %v2269_v0 = vld [vmem:[#allocation3 + $0x8a] sm:$0xff] }
 0x27e   : > { %2590 = vrot.lane.b32.xlu0 %v4946_v20, %s3466_s27  ;;  %v2263_v59 = vld [vmem:[#allocation3 + $0x7a] sm:$0xff]  ;;  %v2265_v11 = vld [vmem:[#allocation3 + $0x88] sm:$0xff] }
 0x27f   : > { %2380 = vrot.lane.b32.xlu1 %v2260_v63, %s3460_s13  ;;  %v2820_v63 = vsel %vm2816_vm1, %v2803_v46, %v4791_v34  ;;  %v2264_v49 = vld [vmem:[#allocation3 + $0x80] sm:$0xff] }
 0x280   : > { %v2266_v27 = vld [vmem:[#allocation3 + $0x81] sm:$0xff] }
 0x281   : > { %v2268_v28 = vld [vmem:[#allocation3 + $0x82] sm:$0xff] }
 0x282   : > { %2386 = vrot.lane.b32.xlu0 %v2263_v59, %s3460_s13 }
 0x283   : > { %2542 = vrot.lane.b32.xlu1 %v2261_v60, %s3465_s26  ;;  %v2677_v61 = vpop.permute.xlu1 %2676  ;;  %v2531_v14 = vpop.permute.xlu0 %2530 }
 0x284   : > { %v2837_v2 = vsel %vm2833_vm2, %v2820_v63, %v2677_v61 }
 0x285   : > { %3386 = vmatmul.mubr.msk.f32.gmra.mxu0 %vm2866_vm4, %v2837_v2 }
 0x286   : > { %2448 = vrot.lane.b32.xlu0 %v2264_v49, %s3459_s12 }
 0x287   : > { %2382 = vrot.lane.b32.xlu1 %v2261_v60, %s3460_s13  ;;  %v2579_v5 = vpop.permute.xlu1 %2578  ;;  %v4965_v8 = vpop.permute.xlu0 %2370 }
 0x288   : > { %v2804_v29 = vsel %vm2799_vm0, %v2787_v31, %v2579_v5  ;;  %v2725_v31 = vsel %vm1340_vm3, %v4728_v39, %v4799_v25 }
 0x28a   : > { %2640 = vrot.lane.b32.xlu0 %v4904_v62, %s3464_s25 }
 0x28b   : > { %2444 = vrot.lane.b32.xlu1 %v4946_v20, %s3459_s12  ;;  %v4971_v34 = vpop.permute.xlu1 %2432  ;;  %v2581_v7 = vpop.permute.xlu0 %2580 }
 0x28e   : > { %2450 = vrot.lane.b32.xlu0 %v2265_v11, %s3459_s12 }
 0x28f   : > { %2592 = vrot.lane.b32.xlu1 %v4973_v16, %s3466_s27  ;;  %v2629_v60 = vpop.permute.xlu1 %2628  ;;  %v4978_v47 = vpop.permute.xlu0 %2434 }
 0x290   : > { %v2821_v24 = vsel %vm2816_vm1, %v2804_v29, %v2629_v60 }
 0x292   : > { %2498 = vrot.lane.b32.xlu0 %v2266_v27, %s3463_s22 }
 0x293   : > { %2446 = vrot.lane.b32.xlu1 %v4973_v16, %s3459_s12  ;;  %v2483_v13 = vpop.permute.xlu1 %2482  ;;  %v4990_v51 = vpop.permute.xlu0 %2308 }
 0x296   : > { %2690 = vrot.lane.b32.xlu0 %v4930_v54, %s3467_s29 }
 0x297   : > { %2494 = vrot.lane.b32.xlu1 %v4904_v62, %s3463_s22  ;;  %v2679_v38 = vpop.permute.xlu1 %2678  ;;  %v2533_v33 = vpop.permute.xlu0 %2532  ;;  %v2739_v62 = vsel %vm1374_vm7, %v2723_v48, %v4895_v43 }
 0x298   : > { %v2838_v17 = vsel %vm2833_vm2, %v2821_v24, %v2679_v38  ;;  %v2755_v57 = vsel %vm1408_vm9, %v2739_v62, %v4917_v36  ;;  %v2275_v38 = vld [vmem:[#allocation3 + $0x9a] sm:$0xff] }
 0x299   : > { %3388 = vmatprep.mubr.msk.f32.mxu0 %vm2866_vm4, %v2838_v17  ;;  %v2771_v40 = vsel %vm1442_vm11, %v2755_v57, %v4771_v18 }
 0x29a   : > { %2500 = vrot.lane.b32.xlu0 %v2267_v50, %s3463_s22  ;;  %v2788_v41 = vsel %vm2782_vm15, %v2771_v40, %v2531_v14 }
 0x29b   : > { %2642 = vrot.lane.b32.xlu1 %v4913_v26, %s3464_s25  ;;  %v5018_v1 = vpop.permute.xlu1 %2372  ;;  %v5020_v30 = vpop.permute.xlu0 %2310  ;;  %v2805_v43 = vsel %vm2799_vm0, %v2788_v41, %v2581_v7  ;;  %v2272_v7 = vld [vmem:[#allocation3 + $0x91] sm:$0xff] }
 0x29e   : > { %2548 = vrot.lane.b32.xlu0 %v2268_v28, %s3465_s26 }
 0x29f   : > { %2496 = vrot.lane.b32.xlu1 %v4913_v26, %s3463_s22  ;;  %v2822_v26 = vsel %vm2816_vm1, %v2805_v43, %v4803_v45 }
 0x2a2   : > { %2546 = vrot.lane.b32.xlu0 %v2263_v59, %s3465_s26 }
 0x2a3   : > { %2544 = vrot.lane.b32.xlu1 %v4930_v54, %s3465_s26  ;;  %v2681_v36 = vpop.permute.xlu1 %2680  ;;  %v2535_v58 = vpop.permute.xlu0 %2534  ;;  %v2270_v54 = vld [vmem:[#allocation3 + $0x90] sm:$0xff] }
 0x2a4   : > { %v2839_v18 = vsel %vm2833_vm2, %v2822_v26, %v2681_v36 }
 0x2a5   : > { %3389 = vmatmul.mubr.msk.f32.gmra.mxu0 %vm2866_vm4, %v2839_v18 }
 0x2a6   : > { %2594 = vrot.lane.b32.xlu0 %v2264_v49, %s3466_s27  ;;  %v2724_v49 = vsel %vm1340_vm3, %v4723_v21, %v4935_v42  ;;  %v2273_v42 = vld [vmem:[#allocation3 + $0x99] sm:$0xff] }
 0x2a7   : > { %2692 = vrot.lane.b32.xlu1 %v2263_v59, %s3467_s29  ;;  %v2583_v46 = vpop.permute.xlu1 %2582  ;;  %v5032_v61 = vpop.permute.xlu0 %2374  ;;  %v2271_v59 = vld [vmem:[#allocation3 + $0x98] sm:$0xff]  ;;  %v2740_v5 = vsel %vm1374_vm7, %v2724_v49, %v4954_v55 }
 0x2aa   : > { %2596 = vrot.lane.b32.xlu0 %v2265_v11, %s3466_s27  ;;  %v2756_v11 = vsel %vm1408_vm9, %v2740_v5, %v4971_v34 }
 0x2ab   : > { %2550 = vrot.lane.b32.xlu1 %v2269_v0, %s3465_s26  ;;  %v2437_v63 = vpop.permute.xlu1 %2436  ;;  %v2585_v45 = vpop.permute.xlu0 %2584  ;;  %v2772_v35 = vsel %vm1442_vm11, %v2756_v11, %v2483_v13  ;;  %v2274_v13 = vld [vmem:[#allocation3 + $0x92] sm:$0xff] }
 0x2ac   : > { %v2789_v6 = vsel %vm2782_vm15, %v2772_v35, %v2533_v33 }
 0x2ad   : > { %v2806_v21 = vsel %vm2799_vm0, %v2789_v6, %v2583_v46  ;;  %v2726_v46 = vsel %vm1340_vm3, %v4754_v12, %v4990_v51  ;;  %v2727_v12 = vsel %vm1340_vm3, %v4763_v4, %v5020_v30 }
 0x2ae   : > { %2644 = vrot.lane.b32.xlu0 %v2266_v27, %s3464_s25  ;;  %v2743_v51 = vsel %vm1374_vm7, %v2727_v12, %v5032_v61 }
 0x2af   : > { %2598 = vrot.lane.b32.xlu1 %v2270_v54, %s3466_s27  ;;  %v2633_v14 = vpop.permute.xlu1 %2632  ;;  %v5038_v2 = vpop.permute.xlu0 %2438  ;;  %v2742_v54 = vsel %vm1374_vm7, %v2726_v46, %v5018_v1 }
 0x2b0   : > { %v2823_v9 = vsel %vm2816_vm1, %v2806_v21, %v2633_v14  ;;  %v2759_v1 = vsel %vm1408_vm9, %v2743_v51, %v5038_v2 }
 0x2b2   : > { %2646 = vrot.lane.b32.xlu0 %v2267_v50, %s3464_s25  ;;  %v2741_v50 = vsel %vm1374_vm7, %v2725_v31, %v4965_v8 }
 0x2b3   : > { %2600 = vrot.lane.b32.xlu1 %v2271_v59, %s3466_s27  ;;  %v2487_v60 = vpop.permute.xlu1 %2486  ;;  %v2635_v27 = vpop.permute.xlu0 %2634  ;;  %v2757_v24 = vsel %vm1408_vm9, %v2741_v50, %v4978_v47 }
 0x2b4   : > { %v2773_v33 = vsel %vm1442_vm11, %v2757_v24, %v4781_v37 }
 0x2b5   : > { %v2790_v62 = vsel %vm2782_vm15, %v2773_v33, %v2535_v58 }
 0x2b6   : > { %2694 = vrot.lane.b32.xlu0 %v2268_v28, %s3467_s29  ;;  %v2807_v39 = vsel %vm2799_vm0, %v2790_v62, %v2585_v45 }
 0x2b7   : > { %2648 = vrot.lane.b32.xlu1 %v2272_v7, %s3464_s25  ;;  %v2683_v55 = vpop.permute.xlu1 %2682  ;;  %v5055_v44 = vpop.permute.xlu0 %2312  ;;  %v2824_v25 = vsel %vm2816_vm1, %v2807_v39, %v2635_v27 }
 0x2b8   : > { %v2840_v34 = vsel %vm2833_vm2, %v2823_v9, %v2683_v55  ;;  %v2728_v39 = vsel %vm1340_vm3, %v4807_v52, %v5055_v44 }
 0x2b9   : > { %3391 = vmatprep.mubr.msk.f32.mxu0 %vm2866_vm4, %v2840_v34 }
 0x2ba   : > { %2696 = vrot.lane.b32.xlu0 %v2269_v0, %s3467_s29 }
 0x2bb   : > { %2650 = vrot.lane.b32.xlu1 %v2273_v42, %s3464_s25  ;;  %v2537_v29 = vpop.permute.xlu0 %2536  ;;  %v2489_v17 = vpop.permute.xlu1 %2488  ;;  %s3240_s25 = sshll.u32 %s5329_s18, 7 }
 0x2bc   : > { %s5199_s18 = scalar_lea.vmem %s5326_s11, %s3240_s25 }
 0x2bf   : > { %2698 = vrot.lane.b32.xlu1 %v2274_v13, %s3467_s29  ;;  %v2315_v48 = vpop.permute.xlu0 %2314 }
 0x2c0   : > { %v2729_v28 = vsel %vm1340_vm3, %v4812_v10, %v2315_v48  ;;  %v2758_v10 = vsel %vm1408_vm9, %v2742_v54, %v2437_v63  ;;  %v3308_v48 = vpop.f32.mrf.mxu0 }
 0x2c1   : > { %v2774_v59 = vsel %vm1442_vm11, %v2758_v10, %v2487_v60  ;;  %v2775_v60 = vsel %vm1442_vm11, %v2759_v1, %v2489_v17 }
 0x2c2   : > { %v2791_v14 = vsel %vm2782_vm15, %v2774_v59, %v2537_v29 }
 0x2c3   : > { %2700 = vrot.lane.b32.xlu1 %v2275_v38, %s3467_s29  ;;  %v2685_v8 = vpop.permute.xlu1 %2684  ;;  %v2539_v57 = vpop.permute.xlu0 %2538 }
 0x2c4   : > { %v2841_v47 = vsel %vm2833_vm2, %v2824_v25, %v2685_v8  ;;  %v2792_v35 = vsel %vm2782_vm15, %v2775_v60, %v2539_v57  ;;  %v1574_v8 = vpop.f32.mrf.mxu0 }
 0x2c5   : > { %3392 = vmatmul.mubr.msk.f32.gmra.mxu0 %vm2866_vm4, %v2841_v47 }
 0x2c7   : > { %v2377_v40 = vpop.permute.xlu1 %2376  ;;  %v2379_v41 = vpop.permute.xlu0 %2378 }
 0x2c8   : > { %v5080_v37 = vsel %vm1374_vm7, %v2729_v28, %v2379_v41  ;;  %v2744_v25 = vsel %vm1374_vm7, %v2728_v39, %v2377_v40 }
 0x2cb   : > { %v2587_v43 = vpop.permute.xlu1 %2586  ;;  %v2589_v36 = vpop.permute.xlu0 %2588 }
 0x2cc   : > { %v2808_v5 = vsel %vm2799_vm0, %v2791_v14, %v2587_v43  ;;  %v2809_v6 = vsel %vm2799_vm0, %v2792_v35, %v2589_v36 }
 0x2cf   : > { %v2441_v26 = vpop.permute.xlu1 %2440  ;;  %v5082_v58 = vpop.permute.xlu0 %2442 }
 0x2d0   : > { %v2760_v57 = vsel %vm1408_vm9, %v2744_v25, %v2441_v26 }
 0x2d3   : > { %v2637_v18 = vpop.permute.xlu1 %2636  ;;  %v2639_v0 = vpop.permute.xlu0 %2638 }
 0x2d4   : > { %v2825_v7 = vsel %vm2816_vm1, %v2808_v5, %v2637_v18  ;;  %v2826_v21 = vsel %vm2816_vm1, %v2809_v6, %v2639_v0  ;;  %v5135_v18 = vpop.f32.mrf.mxu0  ;;  %v2761_v5 = vsel %vm1408_vm9, %v5080_v37, %v5082_v58 }
 0x2d6   : > { %v5140_v40 = vpop.f32.mrf.mxu0 }
 0x2d7   : > { %v2491_v45 = vpop.permute.xlu1 %2490  ;;  %v5092_v49 = vpop.permute.xlu0 %2316 }
 0x2d8   : > { %v2776_v41 = vsel %vm1442_vm11, %v2760_v57, %v2491_v45  ;;  %v5144_v10 = vpop.f32.mrf.mxu0  ;;  %v5175_v57 = vld [vmem:[%s5323_s8] ss:$0 sm:$0xff] }
 0x2da   : > { %v5148_v14 = vpop.f32.mrf.mxu0 }
 0x2db   : > { %v2687_v11 = vpop.permute.xlu1 %2686  ;;  %v2493_v63 = vpop.permute.xlu0 %2492 }
 0x2dc   : > { %v2842_v27 = vsel %vm2833_vm2, %v2825_v7, %v2687_v11  ;;  %v5156_v1 = vpop.f32.mrf.mxu0 }
 0x2dd   : > { %3394 = vmatprep.mubr.msk.f32.mxu0 %vm2866_vm4, %v2842_v27  ;;  %v2777_v27 = vsel %vm1442_vm11, %v2761_v5, %v2493_v63 }
 0x2e4   : > { %v2689_v4 = vpop.permute.xlu0 %2688 }
 0x2e5   : > { %v5109_v42 = vpop.permute.xlu1 %2320  ;;  %v2843_v30 = vsel %vm2833_vm2, %v2826_v21, %v2689_v4  ;;  %v5161_v4 = vpop.f32.mrf.mxu0 }
 0x2e6   : > { %3395 = vmatmul.mubr.msk.f32.gmra.mxu0 %vm2866_vm4, %v2843_v30 }
 0x2e7   : > { %v5163_v63 = vpop.f32.mrf.mxu0 }
 0x2e8   : > { %v5113_v9 = vpop.permute.xlu0 %2322 }
 0x2e9   : > { %v2541_v61 = vpop.permute.xlu1 %2540 }
 0x2ea   : > { %v2793_v43 = vsel %vm2782_vm15, %v2776_v41, %v2541_v61 }
 0x2ec   : > { %v5117_v55 = vpop.permute.xlu0 %2384 }
 0x2ed   : > { %v5115_v2 = vpop.permute.xlu1 %2318 }
 0x2f0   : > { %v2591_v13 = vpop.permute.xlu0 %2590 }
 0x2f1   : > { %v2381_v34 = vpop.permute.xlu1 %2380  ;;  %v2810_v36 = vsel %vm2799_vm0, %v2793_v43, %v2591_v13  ;;  %v2730_v13 = vsel %vm1340_vm3, %v4860_v32, %v5092_v49  ;;  %v5181_v43 = vld [vmem:[%s5325_s10] ss:$0 sm:$0xff]  ;;  %v2731_v32 = vsel %vm1340_vm3, %v4862_v56, %v5115_v2  ;;  %v1580_v49 = vadd.f32 %v3308_v48, %v5175_v57 }
 0x2f4   : > { %v5119_v29 = vpop.permute.xlu0 %2386 }
 0x2f5   : > { %v2543_v31 = vpop.permute.xlu1 %2542 }
 0x2f6   : > { %v2794_v12 = vsel %vm2782_vm15, %v2777_v27, %v2543_v31  ;;  %v2746_v31 = vsel %vm1374_vm7, %v2730_v13, %v2381_v34 }
 0x2f8   : > { %v5121_v24 = vpop.permute.xlu0 %2448 }
 0x2f9   : > { %v2383_v50 = vpop.permute.xlu1 %2382 }
 0x2fc   : > { %v2641_v17 = vpop.permute.xlu0 %2640 }
 0x2fd   : > { %v2445_v38 = vpop.permute.xlu1 %2444  ;;  %v2827_v0 = vsel %vm2816_vm1, %v2810_v36, %v2641_v17  ;;  %v5169_v17 = vpop.f32.mrf.mxu0 }
 0x300   : > { %v5123_v62 = vpop.permute.xlu0 %2450 }
 0x301   : > { %v2593_v33 = vpop.permute.xlu1 %2592 }
 0x302   : > { %v2811_v51 = vsel %vm2799_vm0, %v2794_v12, %v2593_v33  ;;  %v2762_v33 = vsel %vm1408_vm9, %v2746_v31, %v2445_v38  ;;  %v2747_v38 = vsel %vm1374_vm7, %v2731_v32, %v2383_v50 }
 0x304   : > { %v5130_v28 = vpop.permute.xlu0 %2498 }
 0x305   : > { %v2447_v47 = vpop.permute.xlu1 %2446 }
 0x308   : > { %v2691_v52 = vpop.permute.xlu0 %2690 }
 0x309   : > { %v2495_v46 = vpop.permute.xlu1 %2494  ;;  %v2844_v44 = vsel %vm2833_vm2, %v2827_v0, %v2691_v52  ;;  %v1575_v52 = vadd.f32 %v5175_v57, %v1574_v8  ;;  %v2732_v8 = vsel %vm1340_vm3, %v4946_v20, %v5109_v42 }
 0x30a   : > { %3397 = vmatprep.mubr.msk.f32.mxu0 %vm2866_vm4, %v2844_v44  ;;  %v2778_v41 = vsel %vm1442_vm11, %v2762_v33, %v2495_v46  ;;  %v2763_v46 = vsel %vm1408_vm9, %v2747_v38, %v2447_v47 }
 0x30c   : > { %v5142_v54 = vpop.permute.xlu0 %2500 }
 0x30d   : > { %v2643_v26 = vpop.permute.xlu1 %2642 }
 0x30e   : > { %v2828_v60 = vsel %vm2816_vm1, %v2811_v51, %v2643_v26 }
 0x310   : > { %v5146_v59 = vpop.permute.xlu0 %2548 }
 0x311   : > { %v2497_v45 = vpop.permute.xlu1 %2496 }
 0x312   : > { %v2779_v2 = vsel %vm1442_vm11, %v2763_v46, %v2497_v45  ;;  %v2748_v45 = vsel %vm1374_vm7, %v2732_v8, %v5117_v55  ;;  %v2733_v55 = vsel %vm1340_vm3, %v4973_v16, %v5113_v9 }
 0x313   : > { %v2764_v51 = vsel %vm1408_vm9, %v2748_v45, %v5121_v24  ;;  %v2749_v24 = vsel %vm1374_vm7, %v2733_v55, %v5119_v29 }
 0x314   : > { %v2547_v11 = vpop.permute.xlu0 %2546 }
 0x315   : > { %v2545_v7 = vpop.permute.xlu1 %2544  ;;  %v2796_v47 = vsel %vm2782_vm15, %v2779_v2, %v2547_v11 }
 0x316   : > { %v2795_v34 = vsel %vm2782_vm15, %v2778_v41, %v2545_v7 }
 0x318   : > { %v2595_v6 = vpop.permute.xlu0 %2594 }
 0x319   : > { %v2693_v35 = vpop.permute.xlu1 %2692  ;;  %v2812_v36 = vsel %vm2799_vm0, %v2795_v34, %v2595_v6 }
 0x31a   : > { %v2845_v21 = vsel %vm2833_vm2, %v2828_v60, %v2693_v35  ;;  %v2780_v35 = vsel %vm1442_vm11, %v2764_v51, %v5130_v28  ;;  %v2765_v28 = vsel %vm1408_vm9, %v2749_v24, %v5123_v62 }
 0x31b   : > { %3398 = vmatmul.mubr.msk.f32.gmra.mxu0 %vm2866_vm4, %v2845_v21  ;;  %v2797_v21 = vsel %vm2782_vm15, %v2780_v35, %v5146_v59  ;;  %v2781_v16 = vsel %vm1442_vm11, %v2765_v28, %v5142_v54  ;;  %v1590_v54 = vadd.f32 %v5135_v18, %v5175_v57  ;;  %v1600_v18 = vadd.f32 %v5144_v10, %v5175_v57 }
 0x31c   : > { %v2597_v58 = vpop.permute.xlu0 %2596  ;;  %v1610_v10 = vadd.f32 %v5156_v1, %v5175_v57  ;;  %v1620_v1 = vadd.f32 %v5163_v63, %v5175_v57  ;;  %v1630_v63 = vadd.f32 %v4582_v23, %v5175_v57  ;;  %v1640_v23 = vadd.f32 %v4589_v19, %v5175_v57 }
 0x31d   : > { %v2551_v37 = vpop.permute.xlu1 %2550  ;;  %v2813_v12 = vsel %vm2799_vm0, %v2796_v47, %v2597_v58  ;;  %v1650_v19 = vadd.f32 %v4603_v3, %v5175_v57 }
 0x31e   : > { %v2798_v59 = vsel %vm2782_vm15, %v2781_v16, %v2551_v37  ;;  %v1585_v37 = vadd.f32 %v5175_v57, %v5140_v40  ;;  %v1595_v40 = vadd.f32 %v5175_v57, %v5148_v14  ;;  %v1605_v14 = vadd.f32 %v5175_v57, %v5161_v4 }
 0x31f   : > { %v1615_v4 = vadd.f32 %v5175_v57, %v5169_v17  ;;  %v1645_v16 = vadd.f32 %v5175_v57, %v4609_v15 }
 0x320   : > { %v2645_v61 = vpop.permute.xlu0 %2644 }
 0x321   : > { %v2599_v30 = vpop.permute.xlu1 %2598  ;;  %v2829_v44 = vsel %vm2816_vm1, %v2812_v36, %v2645_v61 }
 0x322   : > { %v2814_v58 = vsel %vm2799_vm0, %v2797_v21, %v2599_v30 }
 0x324   : > { %v2647_v25 = vpop.permute.xlu0 %2646 }
 0x325   : > { %v2601_v39 = vpop.permute.xlu1 %2600  ;;  %v2830_v60 = vsel %vm2816_vm1, %v2813_v12, %v2647_v25 }
 0x326   : > { %v3384_v0 = vpop.f32.mrf.mxu0  ;;  %v2815_v29 = vsel %vm2799_vm0, %v2798_v59, %v2601_v39 }
 0x327   : > { %v2987_v26 = vadd.f32 %v3384_v0, %v5181_v43 }
 0x328   : > { %v2695_v56 = vpop.permute.xlu0 %2694  ;;  %v2981_v48 = vpop.f32.mrf.mxu0 }
 0x329   : > { %v2649_v5 = vpop.permute.xlu1 %2648  ;;  %v2846_v50 = vsel %vm2833_vm2, %v2829_v44, %v2695_v56  ;;  %v3061_v7 = vadd.f32 %v2987_v26, %v1580_v49  ;;  %v2982_v27 = vadd.f32 %v5181_v43, %v2981_v48 }
 0x32a   : > { %3400 = vmatprep.mubr.msk.f32.mxu0 %vm2866_vm4, %v2846_v50  ;;  %v2831_v61 = vsel %vm2816_vm1, %v2814_v58, %v2649_v5 }
 0x32b   : > { %3077 = vst.msk [vmem:[%s5199_s18 + $0x8] sm:$0xff] %vm1340_vm3, %v3061_v7  ;;  %v3060_v20 = vadd.f32 %v2982_v27, %v1575_v52 }
 0x32c   : > { %v2697_v11 = vpop.permute.xlu0 %2696 }
 0x32d   : > { %v2651_v42 = vpop.permute.xlu1 %2650  ;;  %v2847_v6 = vsel %vm2833_vm2, %v2830_v60, %v2697_v11  ;;  %3076 = vst.msk [vmem:[%s5199_s18] sm:$0xff] %vm1340_vm3, %v3060_v20  ;;  %v1625_v60 = vadd.f32 %v5175_v57, %v4584_v53  ;;  %v1635_v53 = vadd.f32 %v5175_v57, %v4595_v22 }
 0x32e   : > { %3401 = vmatmul.mubr.msk.f32.gmra.mxu0 %vm2866_vm4, %v2847_v6  ;;  %v2832_v30 = vsel %vm2816_vm1, %v2815_v29, %v2651_v42 }
 0x331   : > { %v2699_v13 = vpop.permute.xlu1 %2698 }
 0x332   : > { %v2848_v9 = vsel %vm2833_vm2, %v2831_v61, %v2699_v13 }
 0x333   : > { %3403 = vmatprep.mubr.msk.f32.mxu1 %vm2866_vm4, %v2848_v9 }
 0x335   : > { %v2701_v31 = vpop.permute.xlu1 %2700 }
 0x336   : > { %v2849_v62 = vsel %vm2833_vm2, %v2832_v30, %v2701_v31 }
 0x337   : > { %3404 = vmatmul.mubr.msk.f32.vlgmr.msra.gmra.mxu1 %vm2866_vm4, %v2849_v62 }
 0x345   : > { %v3387_v33 = vpop.f32.mrf.mxu0 }
 0x346   : > { %v2997_v25 = vadd.f32 %v3387_v33, %v5181_v43 }
 0x347   : > { %v2991_v41 = vpop.f32.mrf.mxu0 }
 0x348   : > { %v3063_v39 = vadd.f32 %v2997_v25, %v1590_v54  ;;  %v2992_v32 = vadd.f32 %v5181_v43, %v2991_v41 }
 0x34a   : > { %3079 = vst.msk [vmem:[%s5199_s18 + $0x18] sm:$0xff] %vm1340_vm3, %v3063_v39  ;;  %v3062_v49 = vadd.f32 %v2992_v32, %v1585_v37 }
 0x34c   : > { %3078 = vst.msk [vmem:[%s5199_s18 + $0x10] sm:$0xff] %vm1340_vm3, %v3062_v49 }
 0x365   : > { %v3390_v34 = vpop.f32.mrf.mxu0 }
 0x366   : > { %v3007_v38 = vadd.f32 %v3390_v34, %v5181_v43 }
 0x367   : > { %v3001_v36 = vpop.f32.mrf.mxu0 }
 0x368   : > { %v3065_v0 = vadd.f32 %v3007_v38, %v1600_v18  ;;  %v3002_v46 = vadd.f32 %v5181_v43, %v3001_v36 }
 0x36a   : > { %3081 = vst.msk [vmem:[%s5199_s18 + $0x28] sm:$0xff] %vm1340_vm3, %v3065_v0  ;;  %v3064_v52 = vadd.f32 %v3002_v46, %v1595_v40 }
 0x36c   : > { %3080 = vst.msk [vmem:[%s5199_s18 + $0x20] sm:$0xff] %vm1340_vm3, %v3064_v52 }
 0x385   : > { %v3393_v44 = vpop.f32.mrf.mxu0 }
 0x386   : > { %v3017_v26 = vadd.f32 %v3393_v44, %v5181_v43 }
 0x387   : > { %v3011_v5 = vpop.f32.mrf.mxu0 }
 0x388   : > { %v3067_v56 = vadd.f32 %v3017_v26, %v1610_v10  ;;  %v3012_v2 = vadd.f32 %v5181_v43, %v3011_v5 }
 0x38a   : > { %3083 = vst.msk [vmem:[%s5199_s18 + $0x38] sm:$0xff] %vm1340_vm3, %v3067_v56  ;;  %v3066_v50 = vadd.f32 %v3012_v2, %v1605_v14 }
 0x38c   : > { %3082 = vst.msk [vmem:[%s5199_s18 + $0x30] sm:$0xff] %vm1340_vm3, %v3066_v50 }
 0x3a6   : > { %v3396_v48 = vpop.f32.mrf.mxu0 }
 0x3a7   : > { %v3027_v8 = vadd.f32 %v3396_v48, %v5181_v43 }
 0x3a8   : > { %v3021_v47 = vpop.f32.mrf.mxu0 }
 0x3a9   : > { %v3069_v7 = vadd.f32 %v3027_v8, %v1620_v1  ;;  %v3022_v27 = vadd.f32 %v5181_v43, %v3021_v47 }
 0x3ab   : > { %3085 = vst.msk [vmem:[%s5199_s18 + $0x48] sm:$0xff] %vm1340_vm3, %v3069_v7  ;;  %v3068_v45 = vadd.f32 %v3022_v27, %v1615_v4 }
 0x3ad   : > { %3084 = vst.msk [vmem:[%s5199_s18 + $0x40] sm:$0xff] %vm1340_vm3, %v3068_v45 }
 0x3db   : > { %v3399_v12 = vpop.f32.mrf.mxu0 }
 0x3dc   : > { %v3037_v51 = vadd.f32 %v3399_v12, %v5181_v43 }
 0x3dd   : > { %v3031_v17 = vpop.f32.mrf.mxu0 }
 0x3de   : > { %v3071_v20 = vadd.f32 %v3037_v51, %v1630_v63  ;;  %v3032_v42 = vadd.f32 %v5181_v43, %v3031_v17 }
 0x3e0   : > { %3087 = vst.msk [vmem:[%s5199_s18 + $0x58] sm:$0xff] %vm1340_vm3, %v3071_v20  ;;  %v3070_v11 = vadd.f32 %v3032_v42, %v1625_v60 }
 0x3e2   : > { %3086 = vst.msk [vmem:[%s5199_s18 + $0x50] sm:$0xff] %vm1340_vm3, %v3070_v11 }
 0x3ee   : > { %v3402_v35 = vpop.f32.mrf.mxu0 }
 0x3ef   : > { %v3047_v6 = vadd.f32 %v3402_v35, %v5181_v43 }
 0x3f0   : > { %v3041_v55 = vpop.f32.mrf.mxu0 }
 0x3f1   : > { %v3073_v21 = vadd.f32 %v3047_v6, %v1640_v23  ;;  %v3042_v24 = vadd.f32 %v5181_v43, %v3041_v55 }
 0x3f3   : > { %3089 = vst.msk [vmem:[%s5199_s18 + $0x68] sm:$0xff] %vm1340_vm3, %v3073_v21  ;;  %v3072_v58 = vadd.f32 %v3042_v24, %v1635_v53 }
 0x3f5   : > { %3088 = vst.msk [vmem:[%s5199_s18 + $0x60] sm:$0xff] %vm1340_vm3, %v3072_v58 }
 0x3f7   : > { %v3405_v28 = vpop.f32.mrf.mxu1 }
 0x3f8   : > { %v3057_v61 = vadd.f32 %v3405_v28, %v5181_v43 }
 0x3f9   : > { %v3051_v13 = vpop.f32.mrf.mxu1 }
 0x3fa   : > { %v3075_v9 = vadd.f32 %v3057_v61, %v1650_v19  ;;  %v3052_v22 = vadd.f32 %v5181_v43, %v3051_v13 }
 0x3fc   : > { %3091 = vst.msk [vmem:[%s5199_s18 + $0x78] sm:$0xff] %vm1340_vm3, %v3075_v9  ;;  %v3074_v59 = vadd.f32 %v3052_v22, %v1645_v16 }
 0x3fe   : > { %3090 = vst.msk [vmem:[%s5199_s18 + $0x70] sm:$0xff] %vm1340_vm3, %v3074_v59 }
 0x3ff PF: > { %s21_s17 = sadd.s32 1, %s3453_s17  }
 0x400   : > { %p18_p4 = scmp.ge.s32.totalorder %s21_s17, 4  }
 0x402   :  { %20 = sbr.rel (!%p18_p4) target bundleno = 1 (0x1), region = 105 }

</bundles_post_ra>
